<compile_context>
chip_gen: v5e
topology: v5e:2x2
jax: 0.10.0
libtpu: 0.0.40
codegen_flags: <defaults>
</compile_context>

<pallas_src>
import jax
import jax.numpy as jnp
from jax.experimental import pallas as pl
from jax.experimental.pallas import tpu as pltpu

EPS = 1e-5
KS = 3          # kernel size from 'spadeinstance3x3'
NHIDDEN = 128   # fixed inside the PyTorch module


# ---------------------------------------------------------------------------
# Fused kernel: instance-norm + mlp_shared + mlp_gamma/mlp_beta + combine,
# one batch element per grid step.  The 128-channel activation stays in a
# VMEM scratch (zero-padded there; the zero border replaces a host-side pad).
# ---------------------------------------------------------------------------
def spade_fused_kernel(x_ref, segc_ref, w1_ref, b1_ref, wgb_ref, bgb_ref,
                       o_ref, apad_ref):
    """
    x_ref    : (1, HW, C)        f32   input features, spatially flattened
    segc_ref : (1, HW, 9*Lnc)    bf16  im2col'd, nearest-resized segmap
    w1_ref   : (9*Lnc, NH)       bf16  mlp_shared weight (im2col layout)
    b1_ref   : (1, NH)           f32   mlp_shared bias
    wgb_ref  : (3, 3*NH, 2C)     bf16  [gamma|beta] weights, kw folded into K
    bgb_ref  : (1, 2C)           f32   [gamma|beta] bias
    o_ref    : (1, HW, C)        f32   output
    apad_ref : (H+2, W+2, NH)    f32   VMEM scratch: zero-padded activation
    """
    H = apad_ref.shape[0] - 2
    W = apad_ref.shape[1] - 2
    HW = H * W
    C = o_ref.shape[2]
    nh = w1_ref.shape[1]

    # ---- InstanceNorm2d (affine=False): per-channel spatial stats, f32 -------
    x = x_ref[0]                                               # (HW, C) f32
    mean = jnp.mean(x, axis=0, keepdims=True)
    var = jnp.mean((x - mean) ** 2, axis=0, keepdims=True)     # biased var (PyTorch IN)
    xn = (x - mean) * jax.lax.rsqrt(var + EPS)

    # ---- mlp_shared: single im2col matmul (K = 9*label_nc) + bias + ReLU -----
    a = jnp.dot(segc_ref[0], w1_ref[...],
                preferred_element_type=jnp.float32)            # (HW, NH) f32
    a = jnp.maximum(a + b1_ref[...], 0.0)

    # ---- zero-padded activation kept entirely in VMEM ------------------------
    apad_ref[...] = jnp.zeros_like(apad_ref)                   # zero border
    apad_ref[1:H + 1, 1:W + 1, :] = a.reshape(H, W, nh)

    # ---- mlp_gamma + mlp_beta fused: 3 matmuls, K = 3*NH, Cout = 2C ----------
    acc = jnp.zeros((HW, 2 * C), jnp.float32)
    for dy in range(KS):
        patch = jnp.concatenate(
            [apad_ref[dy:dy + H, dx:dx + W, :].astype(jnp.bfloat16)
             for dx in range(KS)], axis=-1)                    # (H, W, 3*NH) bf16
        acc = acc + jnp.dot(patch.reshape(HW, KS * nh), wgb_ref[dy],
                            preferred_element_type=jnp.float32)
    gb = acc + bgb_ref[...]                                    # (HW, 2C) f32
    gamma = gb[:, :C]
    beta = gb[:, C:]

    # ---- SPADE combine (f32 elementwise) --------------------------------------
    out = xn * (1.0 + gamma) + beta
    o_ref[...] = out.reshape(o_ref.shape).astype(o_ref.dtype)


# ---------------------------------------------------------------------------
# Host-side wrapper (layout/weight repack + nearest resize + tiny seg im2col)
# ---------------------------------------------------------------------------
def _nearest_resize_nchw(seg, H, W):
    # PyTorch F.interpolate(mode='nearest'): src = floor(dst * in / out)
    Hs, Ws = seg.shape[2], seg.shape[3]
    idx_h = (jnp.arange(H) * Hs) // H
    idx_w = (jnp.arange(W) * Ws) // W
    return seg[:, :, idx_h][:, :, :, idx_w]


@jax.jit
def spade_forward(x_nchw, segmap_nchw, params):
    N, C, H, W = x_nchw.shape
    label_nc = segmap_nchw.shape[1]
    nh = params["w1"].shape[3]
    HW = H * W

    # features: NCHW -> (N, HW, C) to match the im2col-GEMM orientation in-kernel
    x = jnp.transpose(x_nchw, (0, 2, 3, 1)).reshape(N, HW, C)

    # nearest resize (matches F.interpolate mode='nearest')
    seg = _nearest_resize_nchw(segmap_nchw, H, W)               # (N, Lnc, H, W)

    # host-side im2col of the (small, label_nc-channel) segmap -> (N, HW, 9*Lnc)
    # TODO(synk): for large label_nc do this im2col inside the kernel instead.
    segp = jnp.pad(seg, ((0, 0), (0, 0), (1, 1), (1, 1)))
    taps = [segp[:, :, dy:dy + H, dx:dx + W]
            for dy in range(KS) for dx in range(KS)]
    segc = jnp.stack(taps, axis=1)                              # (N, 9, Lnc, H, W)
    segc = jnp.transpose(segc, (0, 3, 4, 1, 2)).reshape(
        N, HW, KS * KS * label_nc).astype(jnp.bfloat16)

    # weight repack: im2col layout for mlp_shared, [gamma|beta] with kw folded in
    w1 = params["w1"].reshape(KS * KS * label_nc, nh).astype(jnp.bfloat16)
    b1 = params["b1"].reshape(1, nh).astype(jnp.float32)
    wgb = jnp.concatenate([params["wg"], params["wb"]], axis=-1)       # (3,3,NH,2C)
    wgb = wgb.reshape(KS, KS * nh, 2 * C).astype(jnp.bfloat16)
    bgb = jnp.concatenate([params["bg"], params["bb"]]).reshape(1, 2 * C)
    bgb = bgb.astype(jnp.float32)

    # TODO(synk): at large H,W add a row-tile grid axis with a 2-row halo;
    # whole-image blocks are used here since the test resolution is tiny.
    out = pl.pallas_call(
        spade_fused_kernel,
        out_shape=jax.ShapeDtypeStruct((N, HW, C), jnp.float32),
        grid=(N,),
        in_specs=[
            pl.BlockSpec((1, HW, C), lambda n: (n, 0, 0)),                     # x
            pl.BlockSpec((1, HW, KS * KS * label_nc), lambda n: (n, 0, 0)),    # seg im2col
            pl.BlockSpec((KS * KS * label_nc, nh), lambda n: (0, 0)),          # w1
            pl.BlockSpec((1, nh), lambda n: (0, 0)),                           # b1
            pl.BlockSpec((KS, KS * nh, 2 * C), lambda n: (0, 0, 0)),           # wgb
            pl.BlockSpec((1, 2 * C), lambda n: (0, 0)),                        # bgb
        ],
        out_specs=pl.BlockSpec((1, HW, C), lambda n: (n, 0, 0)),
        scratch_shapes=[pltpu.VMEM((H + 2, W + 2, nh), jnp.float32)],
        compiler_params=pltpu.CompilerParams(
            dimension_semantics=("parallel",),      # shard batch across TCs (v7x)
            vmem_limit_bytes=32 * 1024 * 1024,
        ),
    )(x, segc, w1, b1, wgb, bgb)

    return out.reshape(N, H, W, C).transpose(0, 3, 1, 2)        # back to NCHW


# ---------------------------------------------------------------------------
# Pure-JAX (f32) reference for validation
# ---------------------------------------------------------------------------
def spade_reference(x_nchw, segmap_nchw, params):
    x = jnp.transpose(x_nchw, (0, 2, 3, 1))
    H, W = x.shape[1], x.shape[2]
    seg = jnp.transpose(_nearest_resize_nchw(segmap_nchw, H, W), (0, 2, 3, 1))

    mean = jnp.mean(x, axis=(1, 2), keepdims=True)
    var = jnp.mean((x - mean) ** 2, axis=(1, 2), keepdims=True)
    normalized = (x - mean) * jax.lax.rsqrt(var + EPS)

    dn = ("NHWC", "HWIO", "NHWC")
    conv = lambda a, w: jax.lax.conv_general_dilated(a, w, (1, 1), "SAME",
                                                     dimension_numbers=dn)
    actv = jnp.maximum(conv(seg, params["w1"]) + params["b1"], 0.0)
    gamma = conv(actv, params["wg"]) + params["bg"]
    beta = conv(actv, params["wb"]) + params["bb"]
    out = normalized * (1.0 + gamma) + beta
    return jnp.transpose(out, (0, 3, 1, 2))


if __name__ == "__main__":
    # SPADE('spadeinstance3x3', norm_nc=4, label_nc=3); nhidden = 128 (fixed)
    norm_nc, label_nc, nhidden = 4, 3, NHIDDEN
    N, H, W = 2, 16, 16
    Hs, Ws = 8, 8

    key = jax.random.PRNGKey(0)
    k = jax.random.split(key, 8)
    x = jax.random.normal(k[0], (N, norm_nc, H, W), jnp.float32)
    segmap = jax.random.normal(k[1], (N, label_nc, Hs, Ws), jnp.float32)

    params = {
        "w1": 0.1 * jax.random.normal(k[2], (KS, KS, label_nc, nhidden), jnp.float32),
        "b1": 0.1 * jax.random.normal(k[3], (nhidden,), jnp.float32),
        "wg": 0.1 * jax.random.normal(k[4], (KS, KS, nhidden, norm_nc), jnp.float32),
        "bg": 0.1 * jax.random.normal(k[5], (norm_nc,), jnp.float32),
        "wb": 0.1 * jax.random.normal(k[6], (KS, KS, nhidden, norm_nc), jnp.float32),
        "bb": 0.1 * jax.random.normal(k[7], (norm_nc,), jnp.float32),
    }

    out = jax.block_until_ready(spade_forward(x, segmap, params))
    ref = jax.block_until_ready(spade_reference(x, segmap, params))

    assert out.shape == (N, norm_nc, H, W)
    # tolerance loosened vs f32 reference because MXU operands are bf16
    assert jnp.allclose(out, ref, atol=1e-1, rtol=1e-1), \
        float(jnp.max(jnp.abs(out - ref)))

    print("KERNEL_OK")
</pallas_src>

<mosaic_0001>
module attributes {stable_mosaic.version = 11 : i64} {
  func.func @spade_fused_kernel(%arg0: i32, %arg1: memref<1x256x4xf32, #tpu.memory_space<vmem>>, %arg2: memref<1x256x27xbf16, #tpu.memory_space<vmem>>, %arg3: memref<27x128xbf16, #tpu.memory_space<vmem>>, %arg4: memref<1x128xf32, #tpu.memory_space<vmem>>, %arg5: memref<3x384x8xbf16, #tpu.memory_space<vmem>>, %arg6: memref<1x8xf32, #tpu.memory_space<vmem>>, %arg7: memref<1x256x4xf32, #tpu.memory_space<vmem>>, %arg8: memref<18x18x128xf32, #tpu.memory_space<vmem>>) attributes {dimension_semantics = [#tpu.dimension_semantics<parallel>], iteration_bounds = array<i64: 2>, scalar_prefetch = 0 : i64, scratch_operands = 1 : i64, tpu.core_type = #tpu.core_type<tc>, window_params = [{transform_indices = @transform_0, window_bounds = array<i64: 1, 256, 4>}, {transform_indices = @transform_1, window_bounds = array<i64: 1, 256, 27>}, {pipeline_mode = #tpu.pipeline_mode<synchronous>, transform_indices = @transform_2, window_bounds = array<i64: 27, 128>}, {pipeline_mode = #tpu.pipeline_mode<synchronous>, transform_indices = @transform_3, window_bounds = array<i64: 1, 128>}, {pipeline_mode = #tpu.pipeline_mode<synchronous>, transform_indices = @transform_4, window_bounds = array<i64: 3, 384, 8>}, {pipeline_mode = #tpu.pipeline_mode<synchronous>, transform_indices = @transform_5, window_bounds = array<i64: 1, 8>}, {transform_indices = @transform_6, window_bounds = array<i64: 1, 256, 4>}]} {
    %c0 = arith.constant 0 : index
    %c0_0 = arith.constant 0 : index
    %c0_1 = arith.constant 0 : index
    %0 = vector.load %arg1[%c0, %c0_0, %c0_1] : memref<1x256x4xf32, #tpu.memory_space<vmem>>, vector<1x256x4xf32>
    %1 = vector.shape_cast %0 : vector<1x256x4xf32> to vector<256x4xf32>
    %cst = arith.constant dense<0.000000e+00> : vector<4xf32>
    %2 = vector.multi_reduction <add>, %1, %cst [0] : vector<256x4xf32> to vector<4xf32>
    %3 = vector.shape_cast %2 : vector<4xf32> to vector<1x4xf32>
    %cst_2 = arith.constant 2.560000e+02 : f32
    %4 = vector.broadcast %cst_2 : f32 to vector<1x4xf32>
    %5 = arith.divf %3, %4 : vector<1x4xf32>
    %6 = vector.broadcast %5 : vector<1x4xf32> to vector<256x4xf32>
    %7 = arith.subf %1, %6 : vector<256x4xf32>
    %8 = arith.mulf %7, %7 : vector<256x4xf32>
    %cst_3 = arith.constant dense<0.000000e+00> : vector<4xf32>
    %9 = vector.multi_reduction <add>, %8, %cst_3 [0] : vector<256x4xf32> to vector<4xf32>
    %10 = vector.shape_cast %9 : vector<4xf32> to vector<1x4xf32>
    %cst_4 = arith.constant 2.560000e+02 : f32
    %11 = vector.broadcast %cst_4 : f32 to vector<1x4xf32>
    %12 = arith.divf %10, %11 : vector<1x4xf32>
    %13 = vector.broadcast %5 : vector<1x4xf32> to vector<256x4xf32>
    %14 = arith.subf %1, %13 : vector<256x4xf32>
    %cst_5 = arith.constant 9.99999974E-6 : f32
    %15 = vector.broadcast %cst_5 : f32 to vector<1x4xf32>
    %16 = arith.addf %12, %15 : vector<1x4xf32>
    %17 = math.rsqrt %16 : vector<1x4xf32>
    %18 = vector.broadcast %17 : vector<1x4xf32> to vector<256x4xf32>
    %19 = arith.mulf %14, %18 : vector<256x4xf32>
    %c0_6 = arith.constant 0 : index
    %c0_7 = arith.constant 0 : index
    %c0_8 = arith.constant 0 : index
    %20 = vector.load %arg2[%c0_6, %c0_7, %c0_8] : memref<1x256x27xbf16, #tpu.memory_space<vmem>>, vector<1x256x27xbf16>
    %21 = vector.shape_cast %20 : vector<1x256x27xbf16> to vector<256x27xbf16>
    %c0_9 = arith.constant 0 : index
    %c0_10 = arith.constant 0 : index
    %22 = vector.load %arg3[%c0_9, %c0_10] : memref<27x128xbf16, #tpu.memory_space<vmem>>, vector<27x128xbf16>
    %cst_11 = arith.constant dense<0.000000e+00> : vector<256x128xf32>
    %23 = tpu.matmul %21, %22, %cst_11 {dimension_numbers = #tpu.dot_dimension_numbers<[1], [0], [0], [1], [0, 0, 1, 1], [], []>} : vector<256x27xbf16>, vector<27x128xbf16>, vector<256x128xf32> -> vector<256x128xf32>
    %c0_12 = arith.constant 0 : index
    %c0_13 = arith.constant 0 : index
    %24 = vector.load %arg4[%c0_12, %c0_13] : memref<1x128xf32, #tpu.memory_space<vmem>>, vector<1x128xf32>
    %25 = vector.broadcast %24 : vector<1x128xf32> to vector<256x128xf32>
    %26 = arith.addf %23, %25 : vector<256x128xf32>
    %cst_14 = arith.constant 0.000000e+00 : f32
    %27 = vector.broadcast %cst_14 : f32 to vector<256x128xf32>
    %28 = arith.maximumf %26, %27 : vector<256x128xf32>
    %cst_15 = arith.constant 0.000000e+00 : f32
    %29 = vector.broadcast %cst_15 : f32 to vector<18x18x128xf32>
    %c0_16 = arith.constant 0 : index
    %c0_17 = arith.constant 0 : index
    %c0_18 = arith.constant 0 : index
    %30 = vector.load %arg8[%c0_16, %c0_17, %c0_18] : memref<18x18x128xf32, #tpu.memory_space<vmem>>, vector<18x18x128xf32>
    tpu.vector_store %arg8[%c0_16, %c0_17, %c0_18], %29 {strides = array<i32>} : memref<18x18x128xf32, #tpu.memory_space<vmem>>, vector<18x18x128xf32>,
    %31 = vector.shape_cast %28 : vector<256x128xf32> to vector<16x16x128xf32>
    %c1 = arith.constant 1 : index
    %c1_19 = arith.constant 1 : index
    %c0_20 = arith.constant 0 : index
    %32 = vector.load %arg8[%c1, %c1_19, %c0_20] : memref<18x18x128xf32, #tpu.memory_space<vmem>>, vector<16x16x128xf32>
    tpu.vector_store %arg8[%c1, %c1_19, %c0_20], %31 {strides = array<i32>} : memref<18x18x128xf32, #tpu.memory_space<vmem>>, vector<16x16x128xf32>,
    %cst_21 = arith.constant 0.000000e+00 : f32
    %33 = vector.broadcast %cst_21 : f32 to vector<256x8xf32>
    %c0_22 = arith.constant 0 : index
    %c0_23 = arith.constant 0 : index
    %c0_24 = arith.constant 0 : index
    %34 = vector.load %arg8[%c0_22, %c0_23, %c0_24] : memref<18x18x128xf32, #tpu.memory_space<vmem>>, vector<16x16x128xf32>
    %35 = arith.truncf %34 : vector<16x16x128xf32> to vector<16x16x128xbf16>
    %c0_25 = arith.constant 0 : index
    %c1_26 = arith.constant 1 : index
    %c0_27 = arith.constant 0 : index
    %36 = vector.load %arg8[%c0_25, %c1_26, %c0_27] : memref<18x18x128xf32, #tpu.memory_space<vmem>>, vector<16x16x128xf32>
    %37 = arith.truncf %36 : vector<16x16x128xf32> to vector<16x16x128xbf16>
    %c0_28 = arith.constant 0 : index
    %c2 = arith.constant 2 : index
    %c0_29 = arith.constant 0 : index
    %38 = vector.load %arg8[%c0_28, %c2, %c0_29] : memref<18x18x128xf32, #tpu.memory_space<vmem>>, vector<16x16x128xf32>
    %39 = arith.truncf %38 : vector<16x16x128xf32> to vector<16x16x128xbf16>
    %40 = tpu.concatenate %35, %37, %39 in 2 : vector<16x16x128xbf16>, vector<16x16x128xbf16>, vector<16x16x128xbf16> -> vector<16x16x384xbf16>
    %41 = vector.shape_cast %40 : vector<16x16x384xbf16> to vector<256x384xbf16>
    %c0_30 = arith.constant 0 : index
    %c0_31 = arith.constant 0 : index
    %c0_32 = arith.constant 0 : index
    %42 = vector.load %arg5[%c0_30, %c0_31, %c0_32] : memref<3x384x8xbf16, #tpu.memory_space<vmem>>, vector<1x384x8xbf16>
    %43 = vector.shape_cast %42 : vector<1x384x8xbf16> to vector<384x8xbf16>
    %cst_33 = arith.constant dense<0.000000e+00> : vector<256x8xf32>
    %44 = tpu.matmul %41, %43, %cst_33 {dimension_numbers = #tpu.dot_dimension_numbers<[1], [0], [0], [1], [0, 0, 1, 1], [], []>} : vector<256x384xbf16>, vector<384x8xbf16>, vector<256x8xf32> -> vector<256x8xf32>
    %45 = arith.addf %33, %44 : vector<256x8xf32>
    %c1_34 = arith.constant 1 : index
    %c0_35 = arith.constant 0 : index
    %c0_36 = arith.constant 0 : index
    %46 = vector.load %arg8[%c1_34, %c0_35, %c0_36] : memref<18x18x128xf32, #tpu.memory_space<vmem>>, vector<16x16x128xf32>
    %47 = arith.truncf %46 : vector<16x16x128xf32> to vector<16x16x128xbf16>
    %c1_37 = arith.constant 1 : index
    %c1_38 = arith.constant 1 : index
    %c0_39 = arith.constant 0 : index
    %48 = vector.load %arg8[%c1_37, %c1_38, %c0_39] : memref<18x18x128xf32, #tpu.memory_space<vmem>>, vector<16x16x128xf32>
    %49 = arith.truncf %48 : vector<16x16x128xf32> to vector<16x16x128xbf16>
    %c1_40 = arith.constant 1 : index
    %c2_41 = arith.constant 2 : index
    %c0_42 = arith.constant 0 : index
    %50 = vector.load %arg8[%c1_40, %c2_41, %c0_42] : memref<18x18x128xf32, #tpu.memory_space<vmem>>, vector<16x16x128xf32>
    %51 = arith.truncf %50 : vector<16x16x128xf32> to vector<16x16x128xbf16>
    %52 = tpu.concatenate %47, %49, %51 in 2 : vector<16x16x128xbf16>, vector<16x16x128xbf16>, vector<16x16x128xbf16> -> vector<16x16x384xbf16>
    %53 = vector.shape_cast %52 : vector<16x16x384xbf16> to vector<256x384xbf16>
    %c1_43 = arith.constant 1 : index
    %c0_44 = arith.constant 0 : index
    %c0_45 = arith.constant 0 : index
    %54 = vector.load %arg5[%c1_43, %c0_44, %c0_45] : memref<3x384x8xbf16, #tpu.memory_space<vmem>>, vector<1x384x8xbf16>
    %55 = vector.shape_cast %54 : vector<1x384x8xbf16> to vector<384x8xbf16>
    %cst_46 = arith.constant dense<0.000000e+00> : vector<256x8xf32>
    %56 = tpu.matmul %53, %55, %cst_46 {dimension_numbers = #tpu.dot_dimension_numbers<[1], [0], [0], [1], [0, 0, 1, 1], [], []>} : vector<256x384xbf16>, vector<384x8xbf16>, vector<256x8xf32> -> vector<256x8xf32>
    %57 = arith.addf %45, %56 : vector<256x8xf32>
    %c2_47 = arith.constant 2 : index
    %c0_48 = arith.constant 0 : index
    %c0_49 = arith.constant 0 : index
    %58 = vector.load %arg8[%c2_47, %c0_48, %c0_49] : memref<18x18x128xf32, #tpu.memory_space<vmem>>, vector<16x16x128xf32>
    %59 = arith.truncf %58 : vector<16x16x128xf32> to vector<16x16x128xbf16>
    %c2_50 = arith.constant 2 : index
    %c1_51 = arith.constant 1 : index
    %c0_52 = arith.constant 0 : index
    %60 = vector.load %arg8[%c2_50, %c1_51, %c0_52] : memref<18x18x128xf32, #tpu.memory_space<vmem>>, vector<16x16x128xf32>
    %61 = arith.truncf %60 : vector<16x16x128xf32> to vector<16x16x128xbf16>
    %c2_53 = arith.constant 2 : index
    %c2_54 = arith.constant 2 : index
    %c0_55 = arith.constant 0 : index
    %62 = vector.load %arg8[%c2_53, %c2_54, %c0_55] : memref<18x18x128xf32, #tpu.memory_space<vmem>>, vector<16x16x128xf32>
    %63 = arith.truncf %62 : vector<16x16x128xf32> to vector<16x16x128xbf16>
    %64 = tpu.concatenate %59, %61, %63 in 2 : vector<16x16x128xbf16>, vector<16x16x128xbf16>, vector<16x16x128xbf16> -> vector<16x16x384xbf16>
    %65 = vector.shape_cast %64 : vector<16x16x384xbf16> to vector<256x384xbf16>
    %c2_56 = arith.constant 2 : index
    %c0_57 = arith.constant 0 : index
    %c0_58 = arith.constant 0 : index
    %66 = vector.load %arg5[%c2_56, %c0_57, %c0_58] : memref<3x384x8xbf16, #tpu.memory_space<vmem>>, vector<1x384x8xbf16>
    %67 = vector.shape_cast %66 : vector<1x384x8xbf16> to vector<384x8xbf16>
    %cst_59 = arith.constant dense<0.000000e+00> : vector<256x8xf32>
    %68 = tpu.matmul %65, %67, %cst_59 {dimension_numbers = #tpu.dot_dimension_numbers<[1], [0], [0], [1], [0, 0, 1, 1], [], []>} : vector<256x384xbf16>, vector<384x8xbf16>, vector<256x8xf32> -> vector<256x8xf32>
    %69 = arith.addf %57, %68 : vector<256x8xf32>
    %c0_60 = arith.constant 0 : index
    %c0_61 = arith.constant 0 : index
    %70 = vector.load %arg6[%c0_60, %c0_61] : memref<1x8xf32, #tpu.memory_space<vmem>>, vector<1x8xf32>
    %71 = vector.broadcast %70 : vector<1x8xf32> to vector<256x8xf32>
    %72 = arith.addf %69, %71 : vector<256x8xf32>
    %73 = vector.extract_strided_slice %72 {offsets = [0, 0], sizes = [256, 4], strides = [1, 1]} : vector<256x8xf32> to vector<256x4xf32>
    %74 = vector.extract_strided_slice %72 {offsets = [0, 4], sizes = [256, 4], strides = [1, 1]} : vector<256x8xf32> to vector<256x4xf32>
    %cst_62 = arith.constant 1.000000e+00 : f32
    %75 = vector.broadcast %cst_62 : f32 to vector<256x4xf32>
    %76 = arith.addf %75, %73 : vector<256x4xf32>
    %77 = arith.mulf %19, %76 : vector<256x4xf32>
    %78 = arith.addf %77, %74 : vector<256x4xf32>
    %79 = vector.shape_cast %78 : vector<256x4xf32> to vector<1x256x4xf32>
    %c0_63 = arith.constant 0 : index
    %c0_64 = arith.constant 0 : index
    %c0_65 = arith.constant 0 : index
    %80 = vector.load %arg7[%c0_63, %c0_64, %c0_65] : memref<1x256x4xf32, #tpu.memory_space<vmem>>, vector<1x256x4xf32>
    tpu.vector_store %arg7[%c0_63, %c0_64, %c0_65], %79 {strides = array<i32>} : memref<1x256x4xf32, #tpu.memory_space<vmem>>, vector<1x256x4xf32>,
    return
  }
  func.func @transform_0(%arg0: i32) -> (i32, i32, i32) {
    %c0_i32 = arith.constant 0 : i32
    %c0_i32_0 = arith.constant 0 : i32
    %c0_i32_1 = arith.constant 0 : i32
    return %arg0, %c0_i32, %c0_i32_0 : i32, i32, i32
  }
  func.func @transform_1(%arg0: i32) -> (i32, i32, i32) {
    %c0_i32 = arith.constant 0 : i32
    %c0_i32_0 = arith.constant 0 : i32
    %c0_i32_1 = arith.constant 0 : i32
    return %arg0, %c0_i32, %c0_i32_0 : i32, i32, i32
  }
  func.func @transform_2(%arg0: i32) -> (i32, i32) {
    %c0_i32 = arith.constant 0 : i32
    %c0_i32_0 = arith.constant 0 : i32
    %c0_i32_1 = arith.constant 0 : i32
    return %c0_i32, %c0_i32_0 : i32, i32
  }
  func.func @transform_3(%arg0: i32) -> (i32, i32) {
    %c0_i32 = arith.constant 0 : i32
    %c0_i32_0 = arith.constant 0 : i32
    %c0_i32_1 = arith.constant 0 : i32
    return %c0_i32, %c0_i32_0 : i32, i32
  }
  func.func @transform_4(%arg0: i32) -> (i32, i32, i32) {
    %c0_i32 = arith.constant 0 : i32
    %c0_i32_0 = arith.constant 0 : i32
    %c0_i32_1 = arith.constant 0 : i32
    %c0_i32_2 = arith.constant 0 : i32
    return %c0_i32, %c0_i32_0, %c0_i32_1 : i32, i32, i32
  }
  func.func @transform_5(%arg0: i32) -> (i32, i32) {
    %c0_i32 = arith.constant 0 : i32
    %c0_i32_0 = arith.constant 0 : i32
    %c0_i32_1 = arith.constant 0 : i32
    return %c0_i32, %c0_i32_0 : i32, i32
  }
  func.func @transform_6(%arg0: i32) -> (i32, i32, i32) {
    %c0_i32 = arith.constant 0 : i32
    %c0_i32_0 = arith.constant 0 : i32
    %c0_i32_1 = arith.constant 0 : i32
    return %arg0, %c0_i32, %c0_i32_0 : i32, i32, i32
  }
}

</mosaic_0001>

<bundles_post_ra>
// kernel: spade_forward.1
= control target key start
LH: loop header
LB: loop body
LE: loop exit
PB: predicated region body
PF: predicated region fallthrough
CT: control target
= control target key end

     0   :  { %s4822_s21 = smov 0   ;;  %s6732_s0 = inlined_call_operand.vmem [shape: f32[2,256,4], index: 0, kind: input, shape index: {}]   ;;  %s6733_s1 = inlined_call_operand.vmem [shape: bf16[2,256,27], index: 1, kind: input, shape index: {}]   ;;  %s6734_s2 = inlined_call_operand.vmem [shape: bf16[27,128], index: 2, kind: input, shape index: {}]   ;;  %s6735_s3 = inlined_call_operand.vmem [shape: f32[1,128], index: 3, kind: input, shape index: {}]   ;;  %s6736_s4 = inlined_call_operand.vmem [shape: bf16[3,384,8], index: 4, kind: input, shape index: {}]   ;;  %s6737_s5 = inlined_call_operand.vmem [shape: f32[1,8], index: 5, kind: input, shape index: {}]   ;;  %s6738_s6 = inlined_call_operand.vmem [shape: f32[2,256,4], index: 6, kind: output, shape index: {}]  }
   0x1 LB: > { %s4166_s22 = sadd.s32 4294967295, %s4780_s21   ;;  %p4170_p0 = scmp.ge.s32.totalorder %s4780_s21, 1  ;;  %s4780_s21 = sphi %s4822_s21, %s16_s21  }
   0x2   : > { %p222_p1 = scmp.lt.s32.totalorder %s4780_s21, 3 }
   0x4   : > { %p223_p2 = pnand %p4170_p0, %p222_p1 }
   0x6   : > { %226 = sbr.rel (%p223_p2) target bundleno = 1192 (0x4a8), region = 44 }
   0xb   : > { %v4247_v0 = vld [vmem:[%s6734_s2 + $0x8] sm:$0xf]  ;;  %v4671_v1 = vld [vmem:[%s6734_s2 + $0x8] sm:$0x30]  ;;  %vm740_vm0 = vcmask 1044480   ;;  %vm741_vm1 = vcmask 1045504  }
   0xc   : > { %v4248_v2 = vor.u32 %v4671_v1, %v4247_v0  ;;  %p257_p3 = scmp.lt.s32.totalorder %s4166_s22, 1  ;;  %v4782_v3 = vmov 65535   ;;  %v4670_v7 = vld [vmem:[%s6734_s2] sm:$0xff]  ;;  %vm691_vm2 = vcmask 220160   ;;  %v4679_v19 = vld [vmem:[%s6736_s4 + $0x38] sm:$0xff]  ;;  %v4678_v22 = vld [vmem:[%s6736_s4 + $0x30] sm:$0xff] }
   0xd   : > { %v742_v4 = vsel %vm740_vm0, 4294967295, %v4782_v3  ;;  %v4703_v21 = vld [vmem:[%s6736_s4 + $0xf8] sm:$0xff]  ;;  %v4677_v24 = vld [vmem:[%s6736_s4 + $0x28] sm:$0xff]  ;;  %v4702_v25 = vld [vmem:[%s6736_s4 + $0xf0] sm:$0xff]  ;;  %v4783_v32 = vmov 0.0   ;;  %v4784_v54 = vmov 0.0|0.0  }
   0xe   : > { %v743_v5 = vsel %vm741_vm1, %v742_v4, 0  ;;  %s7134_s22 = smov (!%p257_p3, %s4166_s22), 1  ;;  %v4719_v23 = vld [vmem:[%s6736_s4 + $0x178] sm:$0xff]  ;;  %2156 = vmatpush.bf16.msra.mxu1 %v4703_v21  ;;  %4746 = vmatpush.bf16.msra.mxu2 %v4703_v21  ;;  %v4718_v26 = vld [vmem:[%s6736_s4 + $0x170] sm:$0xff]  ;;  %v4676_v27 = vld [vmem:[%s6736_s4 + $0x20] sm:$0xff]  ;;  %871 = vst [vmem:[#allocation2 + $0x18] sm:$0xff] %v4783_v32  ;;  %v1179_v55 = vunpack.c.l.b16 %v4784_v54 }
   0xf   : > { %v745_v6 = vand.u32 %v4248_v2, %v743_v5  ;;  %s4652_s27 = sshll.u32 %s7134_s22, 7  ;;  %v4701_v29 = vld [vmem:[%s6736_s4 + $0xe8] sm:$0xff]  ;;  %v4675_v31 = vld [vmem:[%s6736_s4 + $0x18] sm:$0xff]  ;;  %872 = vst [vmem:[#allocation2 + $0x20] sm:$0xff] %v4783_v32  ;;  %v4700_v34 = vld [vmem:[%s6736_s4 + $0xe0] sm:$0xff]  ;;  %s4651_s26 = sshll.u32 %s7134_s22, 8 }
  0x10   : > { %s4845_s8 = scalar_lea.vmem %s6733_s1, %s4652_s27  ;;  %v4717_v30 = vld [vmem:[%s6736_s4 + $0x168] sm:$0xff]  ;;  %868 = vst [vmem:[#allocation2] sm:$0xff] %v4783_v32  ;;  %v4716_v35 = vld [vmem:[%s6736_s4 + $0x160] sm:$0xff]  ;;  %v4674_v36 = vld [vmem:[%s6736_s4 + $0x10] sm:$0xff]  ;;  %v1211_v56 = vpack.c.b16 %v1179_v55, %v1179_v55  ;;  %s5576_s29 = scalar_lea.vmem %s6732_s0, %s4651_s26  ;;  %vm305_vm3 = vcmask 31744  }
  0x11   : > { %753 = vmatpush.bf16.msra.mxu0 %v745_v6  ;;  %4744 = vmatpush.bf16.msra.mxu3 %v745_v6  ;;  %v4654_v8 = vld [vmem:[%s4845_s8] sm:$0xff]  ;;  %v4663_v9 = vld [vmem:[%s4845_s8 + $0x48] sm:$0xff]  ;;  %v4664_v11 = vld [vmem:[%s4845_s8 + $0x50] sm:$0xff]  ;;  %869 = vst [vmem:[#allocation2 + $0x8] sm:$0xff] %v4783_v32  ;;  %s4786_s9 = smov 124   ;;  %s6385_s12 = scalar_lea.vmem %s6738_s6, %s4651_s26 }
  0x12   : > { %v4655_v10 = vld [vmem:[%s4845_s8 + $0x8] sm:$0xff]  ;;  %v4656_v12 = vld [vmem:[%s4845_s8 + $0x10] sm:$0xff]  ;;  %v4665_v13 = vld [vmem:[%s4845_s8 + $0x58] sm:$0xff]  ;;  %2157 = vmatpush.bf16.msra.mxu1 %v4702_v25  ;;  %4747 = vmatpush.bf16.msra.mxu2 %v4702_v25  ;;  %870 = vst [vmem:[#allocation2 + $0x10] sm:$0x3] %v4783_v32 }
  0x13   : > { %v4657_v14 = vld [vmem:[%s4845_s8 + $0x18] sm:$0xff]  ;;  %v4666_v15 = vld [vmem:[%s4845_s8 + $0x60] sm:$0xff]  ;;  %v4667_v17 = vld [vmem:[%s4845_s8 + $0x68] sm:$0xff]  ;;  %873 = vst [vmem:[#allocation2 + $0x28] sm:$0x3] %v4783_v32 }
  0x14   : > { %v4658_v16 = vld [vmem:[%s4845_s8 + $0x20] sm:$0xff]  ;;  %v4659_v18 = vld [vmem:[%s4845_s8 + $0x28] sm:$0xff]  ;;  %v4668_v20 = vld [vmem:[%s4845_s8 + $0x70] sm:$0xff]  ;;  %874 = vst [vmem:[#allocation2 + $0x30] sm:$0xff] %v4783_v32 }
  0x15   : > { %754 = vmatpush.bf16.msra.mxu0 %v4670_v7  ;;  %4745 = vmatpush.bf16.msra.mxu3 %v4670_v7  ;;  %v4660_v28 = vld [vmem:[%s4845_s8 + $0x30] sm:$0xff]  ;;  %875 = vst [vmem:[#allocation2 + $0x38] sm:$0xff] %v4783_v32  ;;  %v4661_v33 = vld [vmem:[%s4845_s8 + $0x38] sm:$0xff]  ;;  %v4673_v40 = vld [vmem:[%s6736_s4 + $0x8] sm:$0xff] }
  0x16   : > { %2158 = vmatpush.bf16.msra.mxu1 %v4701_v29  ;;  %4748 = vmatpush.bf16.msra.mxu2 %v4701_v29  ;;  %876 = vst [vmem:[#allocation2 + $0x40] sm:$0x3] %v4783_v32  ;;  %v4669_v37 = vld [vmem:[%s4845_s8 + $0x78] sm:$0xff]  ;;  %v4698_v41 = vld [vmem:[%s6736_s4 + $0xd0] sm:$0xff]  ;;  %v4672_v43 = vld [vmem:[%s6736_s4] sm:$0xff] }
  0x17   : > { %877 = vst [vmem:[#allocation2 + $0x48] sm:$0xff] %v4783_v32  ;;  %v4699_v38 = vld [vmem:[%s6736_s4 + $0xd8] sm:$0xff]  ;;  %v4714_v42 = vld [vmem:[%s6736_s4 + $0x150] sm:$0xff]  ;;  %v4965_v44 = vld [vmem:[%s6735_s3] ss:$0 sm:$0xff] }
  0x18   : > { %4249 = vmatmul.msk.bf16.vlgmr.msra.gmra.mxu0 %vm691_vm2, %v4654_v8  ;;  %4258 = vmatmul.msk.bf16.vlgmr.msra.gmra.mxu3 %vm691_vm2, %v4663_v9  ;;  %878 = vst [vmem:[#allocation2 + $0x50] sm:$0xff] %v4783_v32  ;;  %v4715_v39 = vld [vmem:[%s6736_s4 + $0x158] sm:$0xff]  ;;  %v4697_v45 = vld [vmem:[%s6736_s4 + $0xc8] sm:$0xff]  ;;  %v4662_v47 = vld [vmem:[%s4845_s8 + $0x40] sm:$0xff] }
  0x19   : > { %2567 = vmatpush.bf16.msrb.mxu0 %v4679_v19  ;;  %2334 = vmatpush.bf16.msrb.mxu3 %v4719_v23  ;;  %879 = vst [vmem:[#allocation2 + $0x58] sm:$0x3] %v4783_v32  ;;  %v4713_v46 = vld [vmem:[%s6736_s4 + $0x148] sm:$0xff]  ;;  %v4696_v50 = vld [vmem:[%s6736_s4 + $0xc0] sm:$0xff] }
  0x1a   : > { %880 = vst [vmem:[#allocation2 + $0x60] sm:$0xff] %v4783_v32  ;;  %2159 = vmatpush.bf16.msra.mxu1 %v4700_v34  ;;  %4749 = vmatpush.bf16.msra.mxu2 %v4700_v34  ;;  %v4712_v51 = vld [vmem:[%s6736_s4 + $0x140] sm:$0xff] }
  0x1b   : > { %881 = vst [vmem:[#allocation2 + $0x68] sm:$0xff] %v4783_v32 }
  0x1c   : > { %882 = vst [vmem:[#allocation2 + $0x70] sm:$0x3] %v4783_v32 }
  0x1d   : > { %2568 = vmatpush.bf16.msrb.mxu0 %v4678_v22  ;;  %2335 = vmatpush.bf16.msrb.mxu3 %v4718_v26  ;;  %883 = vst [vmem:[#allocation2 + $0x78] sm:$0xff] %v4783_v32 }
  0x1e   : > { %884 = vst [vmem:[#allocation2 + $0x80] sm:$0xff] %v4783_v32  ;;  %2160 = vmatpush.bf16.msra.mxu1 %v4699_v38  ;;  %4750 = vmatpush.bf16.msra.mxu2 %v4699_v38 }
  0x1f   : > { %885 = vst [vmem:[#allocation2 + $0x88] sm:$0x3] %v4783_v32 }
  0x20   : > { %886 = vst [vmem:[#allocation2 + $0x90] sm:$0xff] %v4783_v32 }
  0x21   : > { %2569 = vmatpush.bf16.msrb.mxu0 %v4677_v24  ;;  %2336 = vmatpush.bf16.msrb.mxu3 %v4717_v30  ;;  %887 = vst [vmem:[#allocation2 + $0x98] sm:$0xff] %v4783_v32 }
  0x22   : > { %888 = vst [vmem:[#allocation2 + $0xa0] sm:$0x3] %v4783_v32  ;;  %2161 = vmatpush.bf16.msra.mxu1 %v4698_v41  ;;  %4751 = vmatpush.bf16.msra.mxu2 %v4698_v41 }
  0x23   : > { %889 = vst [vmem:[#allocation2 + $0xa8] sm:$0xff] %v4783_v32 }
  0x24   : > { %890 = vst [vmem:[#allocation2 + $0xb0] sm:$0xff] %v4783_v32 }
  0x25   : > { %2570 = vmatpush.bf16.msrb.mxu0 %v4676_v27  ;;  %2337 = vmatpush.bf16.msrb.mxu3 %v4716_v35  ;;  %891 = vst [vmem:[#allocation2 + $0xb8] sm:$0x3] %v4783_v32 }
  0x26   : > { %892 = vst [vmem:[#allocation2 + $0xc0] sm:$0xff] %v4783_v32  ;;  %2162 = vmatpush.bf16.msra.mxu1 %v4697_v45  ;;  %4752 = vmatpush.bf16.msra.mxu2 %v4697_v45 }
  0x27   : > { %893 = vst [vmem:[#allocation2 + $0xc8] sm:$0xff] %v4783_v32 }
  0x28   : > { %4250 = vmatmul.msk.bf16.gmra.mxu0 %vm691_vm2, %v4655_v10  ;;  %4259 = vmatmul.msk.bf16.gmra.mxu3 %vm691_vm2, %v4664_v11  ;;  %894 = vst [vmem:[#allocation2 + $0xd0] sm:$0x3] %v4783_v32 }
  0x29   : > { %2571 = vmatpush.bf16.msrb.mxu0 %v4675_v31  ;;  %2338 = vmatpush.bf16.msrb.mxu3 %v4715_v39  ;;  %895 = vst [vmem:[#allocation2 + $0xd8] sm:$0xff] %v4783_v32 }
  0x2a   : > { %896 = vst [vmem:[#allocation2 + $0xe0] sm:$0xff] %v4783_v32  ;;  %2163 = vmatpush.bf16.msra.mxu1 %v4696_v50  ;;  %4753 = vmatpush.bf16.msra.mxu2 %v4696_v50 }
  0x2b   : > { %897 = vst [vmem:[#allocation2 + $0xe8] sm:$0x3] %v4783_v32 }
  0x2c   : > { %898 = vst [vmem:[#allocation2 + $0xf0] sm:$0xff] %v4783_v32 }
  0x2d   : > { %2572 = vmatpush.bf16.msrb.mxu0 %v4674_v36  ;;  %2339 = vmatpush.bf16.msrb.mxu3 %v4714_v42  ;;  %899 = vst [vmem:[#allocation2 + $0xf8] sm:$0xff] %v4783_v32 }
  0x2e   : > { %900 = vst [vmem:[#allocation2 + $0x100] sm:$0x3] %v4783_v32 }
  0x2f   : > { %901 = vst [vmem:[#allocation2 + $0x108] sm:$0xff] %v4783_v32 }
  0x30   : > { %902 = vst [vmem:[#allocation2 + $0x110] sm:$0xff] %v4783_v32 }
  0x31   : > { %2573 = vmatpush.bf16.msrb.mxu0 %v4673_v40  ;;  %2340 = vmatpush.bf16.msrb.mxu3 %v4713_v46  ;;  %903 = vst [vmem:[#allocation2 + $0x118] sm:$0x3] %v4783_v32 }
  0x32   : > { %904 = vst [vmem:[#allocation2 + $0x120] sm:$0xff] %v4783_v32 }
  0x33   : > { %905 = vst [vmem:[#allocation2 + $0x128] sm:$0xff] %v4783_v32 }
  0x34   : > { %906 = vst [vmem:[#allocation2 + $0x130] sm:$0x3] %v4783_v32 }
  0x35   : > { %2574 = vmatpush.bf16.msrb.mxu0 %v4672_v43  ;;  %2341 = vmatpush.bf16.msrb.mxu3 %v4712_v51  ;;  %907 = vst [vmem:[#allocation2 + $0x138] sm:$0xff] %v4783_v32 }
  0x36   : > { %908 = vst [vmem:[#allocation2 + $0x140] sm:$0xff] %v4783_v32 }
  0x37   : > { %909 = vst [vmem:[#allocation2 + $0x148] sm:$0x3] %v4783_v32 }
  0x38   : > { %4251 = vmatmul.msk.bf16.gmra.mxu0 %vm691_vm2, %v4656_v12  ;;  %4260 = vmatmul.msk.bf16.gmra.mxu3 %vm691_vm2, %v4665_v13  ;;  %910 = vst [vmem:[#allocation2 + $0x150] sm:$0xff] %v4783_v32 }
  0x39   : > { %911 = vst [vmem:[#allocation2 + $0x158] sm:$0xff] %v4783_v32 }
  0x3a   : > { %912 = vst [vmem:[#allocation2 + $0x160] sm:$0x3] %v4783_v32 }
  0x3b   : > { %913 = vst [vmem:[#allocation2 + $0x168] sm:$0xff] %v4783_v32 }
  0x3c   : > { %914 = vst [vmem:[#allocation2 + $0x170] sm:$0xff] %v4783_v32 }
  0x3d   : > { %915 = vst [vmem:[#allocation2 + $0x178] sm:$0x3] %v4783_v32 }
  0x3e   : > { %916 = vst [vmem:[#allocation2 + $0x180] sm:$0xff] %v4783_v32 }
  0x3f   : > { %917 = vst [vmem:[#allocation2 + $0x188] sm:$0xff] %v4783_v32 }
  0x40   : > { %918 = vst [vmem:[#allocation2 + $0x190] sm:$0x3] %v4783_v32 }
  0x41   : > { %919 = vst [vmem:[#allocation2 + $0x198] sm:$0xff] %v4783_v32 }
  0x42   : > { %920 = vst [vmem:[#allocation2 + $0x1a0] sm:$0xff] %v4783_v32 }
  0x43   : > { %921 = vst [vmem:[#allocation2 + $0x1a8] sm:$0x3] %v4783_v32 }
  0x48   : > { %4252 = vmatmul.msk.bf16.gmra.mxu0 %vm691_vm2, %v4657_v14  ;;  %4261 = vmatmul.msk.bf16.gmra.mxu3 %vm691_vm2, %v4666_v15 }
  0x58   : > { %4253 = vmatmul.msk.bf16.gmra.mxu0 %vm691_vm2, %v4658_v16  ;;  %4262 = vmatmul.msk.bf16.gmra.mxu3 %vm691_vm2, %v4667_v17 }
  0x68   : > { %4254 = vmatmul.msk.bf16.gmra.mxu0 %vm691_vm2, %v4659_v18  ;;  %4263 = vmatmul.msk.bf16.gmra.mxu3 %vm691_vm2, %v4668_v20 }
  0x78   : > { %4255 = vmatmul.msk.bf16.gmra.mxu0 %vm691_vm2, %v4660_v28  ;;  %4264 = vmatmul.msk.bf16.gmra.mxu3 %vm691_vm2, %v4669_v37 }
  0x88   : > { %4256 = vmatmul.msk.bf16.gmra.mxu0 %vm691_vm2, %v4661_v33 }
  0x95   : > { %v756_v48 = vpop.f32.mrf.mxu0 }
  0x96   : > { %v757_v49 = vadd.f32 %v4965_v44, %v756_v48 }
  0x98   : > { %v836_v52 = vmax.f32 %v757_v49, 0.0  ;;  %4257 = vmatmul.msk.bf16.gmra.mxu0 %vm691_vm2, %v4662_v47 }
  0x9a   : > { %923 = vst [vmem:[#allocation2 + $0x19] sm:$0xff] %v836_v52 }
  0x9b   : > { %v801_v0 = vpop.f32.mrf.mxu3 }
  0x9c   : > { %v802_v1 = vadd.f32 %v4965_v44, %v801_v0 }
  0x9d   : > { %v758_v53 = vpop.f32.mrf.mxu0 }
  0x9e   : > { %v759_v58 = vadd.f32 %v4965_v44, %v758_v53  ;;  %v854_v4 = vmax.f32 %v802_v1, 0.0 }
  0xa0   : > { %v5010_v60 = vmax.f32 %v759_v58, 0.0  ;;  %941 = vst [vmem:[#allocation2 + $0xf1] sm:$0xff] %v854_v4 }
  0xa1   : > { %v1483_v6 = vld [vmem:[#allocation2 + $0x18] sm:$0xff] }
  0xa2   : > { %924 = vst [vmem:[#allocation2 + $0x21] sm:$0xff] %v5010_v60  ;;  %v1515_v10 = vpack.c.bf16 %v1483_v6, %v1483_v6 }
  0xa3   : > { %v803_v12 = vpop.f32.mrf.mxu3 }
  0xa4   : > { %v804_v17 = vadd.f32 %v4965_v44, %v803_v12  ;;  %v1707_v23 = vunpack.c.l.b16 %v1515_v10 }
  0xa5   : > { %v761_v57 = vpop.f32.mrf.mxu0 }
  0xa6   : > { %v762_v59 = vadd.f32 %v4965_v44, %v761_v57  ;;  %v855_v22 = vmax.f32 %v804_v17, 0.0 }
  0xa8   : > { %2575 = vmatmul.bf16.vlgmr.msrb.gmra.mxu0 %v1211_v56  ;;  %v838_v61 = vmax.f32 %v762_v59, 0.0  ;;  %942 = vst [vmem:[#allocation2 + $0xf9] sm:$0xff] %v855_v22 }
  0xa9   : > { %v1484_v14 = vld [vmem:[#allocation2 + $0x20] sm:$0xff] }
  0xaa   : > { %v1055_v3 = vpack.c.bf16 %v838_v61, %v838_v61  ;;  %925 = vst [vmem:[#allocation2 + $0x31] sm:$0xff] %v838_v61  ;;  %v1611_v15 = vld [vmem:[#allocation2 + $0x1a] sm:$0xff]  ;;  %v1612_v16 = vld [vmem:[#allocation2 + $0x22] sm:$0xff]  ;;  %v1516_v18 = vpack.c.bf16 %v1484_v14, %v1484_v14 }
  0xab   : > { %v1643_v19 = vpack.c.bf16 %v1611_v15, %v1611_v15  ;;  %v1644_v20 = vpack.c.bf16 %v1612_v16, %v1612_v16  ;;  %v806_v32 = vpop.f32.mrf.mxu3 }
  0xac   : > { %v5018_v7 = vunpack.c.l.b16 %v1055_v3  ;;  %v1708_v24 = vunpack.c.l.b16 %v1516_v18  ;;  %v807_v35 = vadd.f32 %v4965_v44, %v806_v32 }
  0xad   : > { %v763_v62 = vpop.f32.mrf.mxu0  ;;  %v1899_v25 = vunpack.c.l.b16 %v1643_v19  ;;  %v1900_v26 = vunpack.c.l.b16 %v1644_v20 }
  0xae   : > { %v764_v63 = vadd.f32 %v4965_v44, %v763_v62  ;;  %v1739_v27 = vpack.c.b16 %v1708_v24, %v1707_v23  ;;  %v856_v40 = vmax.f32 %v807_v35, 0.0 }
  0xaf   : > { %v1931_v28 = vpack.c.b16 %v1900_v26, %v1899_v25 }
  0xb0   : > { %v839_v2 = vmax.f32 %v764_v63, 0.0  ;;  %2164 = vmatmul.bf16.vlgmr.msra.gmra.mxu1 %v1739_v27  ;;  %943 = vst [vmem:[#allocation2 + $0x109] sm:$0xff] %v856_v40 }
  0xb1   : > { %2342 = vmatmul.bf16.vlgmr.msrb.gmra.mxu3 %v1931_v28  ;;  %v1485_v38 = vld [vmem:[#allocation2 + $0x30] sm:$0xff] }
  0xb2   : > { %926 = vst [vmem:[#allocation2 + $0x39] sm:$0xff] %v839_v2  ;;  %v1056_v5 = vpack.c.bf16 %v839_v2, %v839_v2  ;;  %v1517_v45 = vpack.c.bf16 %v1485_v38, %v1485_v38 }
  0xb3   : > { %v808_v53 = vpop.f32.mrf.mxu3 }
  0xb4   : > { %v5020_v8 = vunpack.c.l.b16 %v1056_v5  ;;  %v809_v55 = vadd.f32 %v4965_v44, %v808_v53  ;;  %v1709_v56 = vunpack.c.l.b16 %v1517_v45 }
  0xb5   : > { %v766_v9 = vpop.f32.mrf.mxu0 }
  0xb6   : > { %v767_v11 = vadd.f32 %v4965_v44, %v766_v9  ;;  %v1309_v13 = vpack.c.b16 %v5020_v8, %v5018_v7  ;;  %v857_v58 = vmax.f32 %v809_v55, 0.0 }
  0xb8   : > { %v840_v21 = vmax.f32 %v767_v11, 0.0  ;;  %2580 = vmatmul.bf16.gmra.mxu0 %v1739_v27  ;;  %944 = vst [vmem:[#allocation2 + $0x111] sm:$0xff] %v857_v58 }
  0xb9   : > { %v1486_v31 = vld [vmem:[#allocation2 + $0x38] sm:$0xff] }
  0xba   : > { %927 = vst [vmem:[#allocation2 + $0x49] sm:$0xff] %v840_v21  ;;  %v1613_v33 = vld [vmem:[#allocation2 + $0x32] sm:$0xff]  ;;  %v1614_v34 = vld [vmem:[#allocation2 + $0x3a] sm:$0xff]  ;;  %v1057_v37 = vpack.c.bf16 %v840_v21, %v840_v21  ;;  %v1518_v39 = vpack.c.bf16 %v1486_v31, %v1486_v31 }
  0xbb   : > { %v1645_v41 = vpack.c.bf16 %v1613_v33, %v1613_v33  ;;  %v1646_v42 = vpack.c.bf16 %v1614_v34, %v1614_v34  ;;  %v811_v1 = vpop.f32.mrf.mxu3 }
  0xbc   : > { %v5028_v46 = vunpack.c.l.b16 %v1057_v37  ;;  %v1710_v48 = vunpack.c.l.b16 %v1518_v39  ;;  %v812_v4 = vadd.f32 %v4965_v44, %v811_v1 }
  0xbd   : > { %v768_v29 = vpop.f32.mrf.mxu0  ;;  %v1901_v50 = vunpack.c.l.b16 %v1645_v41  ;;  %v1902_v51 = vunpack.c.l.b16 %v1646_v42 }
  0xbe   : > { %v769_v30 = vadd.f32 %v4965_v44, %v768_v29  ;;  %v1740_v59 = vpack.c.b16 %v1710_v48, %v1709_v56  ;;  %v858_v11 = vmax.f32 %v812_v4, 0.0 }
  0xbf   : > { %v1932_v61 = vpack.c.b16 %v1902_v51, %v1901_v50 }
  0xc0   : > { %v841_v36 = vmax.f32 %v769_v30, 0.0  ;;  %2169 = vmatmul.bf16.gmra.mxu1 %v1740_v59  ;;  %945 = vst [vmem:[#allocation2 + $0x121] sm:$0xff] %v858_v11 }
  0xc1   : > { %2347 = vmatmul.bf16.gmra.mxu3 %v1932_v61  ;;  %v1487_v9 = vld [vmem:[#allocation2 + $0x48] sm:$0xff] }
  0xc2   : > { %928 = vst [vmem:[#allocation2 + $0x51] sm:$0xff] %v841_v36  ;;  %v1058_v43 = vpack.c.bf16 %v841_v36, %v841_v36  ;;  %v1519_v16 = vpack.c.bf16 %v1487_v9, %v1487_v9 }
  0xc3   : > { %v813_v24 = vpop.f32.mrf.mxu3 }
  0xc4   : > { %v5030_v47 = vunpack.c.l.b16 %v1058_v43  ;;  %v814_v26 = vadd.f32 %v4965_v44, %v813_v24  ;;  %v1711_v27 = vunpack.c.l.b16 %v1519_v16 }
  0xc5   : > { %v771_v49 = vpop.f32.mrf.mxu0 }
  0xc6   : > { %v772_v52 = vadd.f32 %v4965_v44, %v771_v49  ;;  %v1310_v54 = vpack.c.b16 %v5030_v47, %v5028_v46  ;;  %v859_v29 = vmax.f32 %v814_v26, 0.0 }
  0xc8   : > { %v842_v57 = vmax.f32 %v772_v52, 0.0  ;;  %2585 = vmatmul.bf16.gmra.mxu0 %v1740_v59  ;;  %946 = vst [vmem:[#allocation2 + $0x129] sm:$0xff] %v859_v29 }
  0xc9   : > { %v1488_v0 = vld [vmem:[#allocation2 + $0x50] sm:$0xff] }
  0xca   : > { %929 = vst [vmem:[#allocation2 + $0x61] sm:$0xff] %v842_v57  ;;  %v1615_v2 = vld [vmem:[#allocation2 + $0x4a] sm:$0xff]  ;;  %v1616_v3 = vld [vmem:[#allocation2 + $0x52] sm:$0xff]  ;;  %v1059_v6 = vpack.c.bf16 %v842_v57, %v842_v57  ;;  %v1520_v10 = vpack.c.bf16 %v1488_v0, %v1488_v0 }
  0xcb   : > { %v1647_v12 = vpack.c.bf16 %v1615_v2, %v1615_v2  ;;  %v1648_v14 = vpack.c.bf16 %v1616_v3, %v1616_v3  ;;  %v816_v35 = vpop.f32.mrf.mxu3 }
  0xcc   : > { %v5038_v17 = vunpack.c.l.b16 %v1059_v6  ;;  %v1712_v19 = vunpack.c.l.b16 %v1520_v10  ;;  %v817_v38 = vadd.f32 %v4965_v44, %v816_v35 }
  0xcd   : > { %v773_v62 = vpop.f32.mrf.mxu0  ;;  %v1903_v21 = vunpack.c.l.b16 %v1647_v12  ;;  %v1904_v22 = vunpack.c.l.b16 %v1648_v14 }
  0xce   : > { %v774_v63 = vadd.f32 %v4965_v44, %v773_v62  ;;  %v1741_v30 = vpack.c.b16 %v1712_v19, %v1711_v27  ;;  %v860_v43 = vmax.f32 %v817_v38, 0.0 }
  0xcf   : > { %v1933_v31 = vpack.c.b16 %v1904_v22, %v1903_v21 }
  0xd0   : > { %v843_v5 = vmax.f32 %v774_v63, 0.0  ;;  %2174 = vmatmul.bf16.gmra.mxu1 %v1741_v30  ;;  %947 = vst [vmem:[#allocation2 + $0x139] sm:$0xff] %v860_v43 }
  0xd1   : > { %2352 = vmatmul.bf16.gmra.mxu3 %v1933_v31  ;;  %v1489_v41 = vld [vmem:[#allocation2 + $0x60] sm:$0xff] }
  0xd2   : > { %930 = vst [vmem:[#allocation2 + $0x69] sm:$0xff] %v843_v5  ;;  %v1060_v15 = vpack.c.bf16 %v843_v5, %v843_v5  ;;  %v1521_v50 = vpack.c.bf16 %v1489_v41, %v1489_v41 }
  0xd3   : > { %v818_v59 = vpop.f32.mrf.mxu3 }
  0xd4   : > { %v5040_v18 = vunpack.c.l.b16 %v1060_v15  ;;  %v819_v62 = vadd.f32 %v4965_v44, %v818_v59  ;;  %v1713_v63 = vunpack.c.l.b16 %v1521_v50 }
  0xd5   : > { %v776_v20 = vpop.f32.mrf.mxu0 }
  0xd6   : > { %v777_v23 = vadd.f32 %v4965_v44, %v776_v20  ;;  %v1311_v25 = vpack.c.b16 %v5040_v18, %v5038_v17  ;;  %v861_v1 = vmax.f32 %v819_v62, 0.0 }
  0xd8   : > { %v844_v28 = vmax.f32 %v777_v23, 0.0  ;;  %2590 = vmatmul.bf16.gmra.mxu0 %v1741_v30  ;;  %948 = vst [vmem:[#allocation2 + $0x141] sm:$0xff] %v861_v1 }
  0xd9   : > { %v1490_v34 = vld [vmem:[#allocation2 + $0x68] sm:$0xff] }
  0xda   : > { %931 = vst [vmem:[#allocation2 + $0x79] sm:$0xff] %v844_v28  ;;  %v1617_v36 = vld [vmem:[#allocation2 + $0x62] sm:$0xff]  ;;  %v1618_v37 = vld [vmem:[#allocation2 + $0x6a] sm:$0xff]  ;;  %v1061_v40 = vpack.c.bf16 %v844_v28, %v844_v28  ;;  %v1522_v42 = vpack.c.bf16 %v1490_v34, %v1490_v34 }
  0xdb   : > { %v1649_v45 = vpack.c.bf16 %v1617_v36, %v1617_v36  ;;  %v1650_v48 = vpack.c.bf16 %v1618_v37, %v1618_v37  ;;  %v821_v9 = vpop.f32.mrf.mxu3 }
  0xdc   : > { %v5048_v51 = vunpack.c.l.b16 %v1061_v40  ;;  %v1714_v53 = vunpack.c.l.b16 %v1522_v42  ;;  %v822_v12 = vadd.f32 %v4965_v44, %v821_v9  ;;  %v4687_v42 = vld [vmem:[%s6736_s4 + $0x78] sm:$0xff] }
  0xdd   : > { %v778_v32 = vpop.f32.mrf.mxu0  ;;  %v1905_v56 = vunpack.c.l.b16 %v1649_v45  ;;  %v1906_v57 = vunpack.c.l.b16 %v1650_v48  ;;  %2656 = vmatpush.bf16.msrb.mxu1 %v4687_v42 }
  0xde   : > { %v779_v33 = vadd.f32 %v4965_v44, %v778_v32  ;;  %v1742_v2 = vpack.c.b16 %v1714_v53, %v1713_v63  ;;  %v862_v20 = vmax.f32 %v822_v12, 0.0 }
  0xdf   : > { %v1934_v3 = vpack.c.b16 %v1906_v57, %v1905_v56 }
  0xe0   : > { %v845_v39 = vmax.f32 %v779_v33, 0.0  ;;  %2179 = vmatmul.bf16.gmra.mxu1 %v1742_v2  ;;  %949 = vst [vmem:[#allocation2 + $0x151] sm:$0xff] %v862_v20 }
  0xe1   : > { %2357 = vmatmul.bf16.gmra.mxu3 %v1934_v3  ;;  %v1491_v16 = vld [vmem:[#allocation2 + $0x78] sm:$0xff] }
  0xe2   : > { %932 = vst [vmem:[#allocation2 + $0x81] sm:$0xff] %v845_v39  ;;  %v1062_v49 = vpack.c.bf16 %v845_v39, %v845_v39  ;;  %v1523_v24 = vpack.c.bf16 %v1491_v16, %v1491_v16 }
  0xe3   : > { %v823_v33 = vpop.f32.mrf.mxu3 }
  0xe4   : > { %v5050_v52 = vunpack.c.l.b16 %v1062_v49  ;;  %v824_v35 = vadd.f32 %v4965_v44, %v823_v33  ;;  %v1715_v36 = vunpack.c.l.b16 %v1523_v24 }
  0xe5   : > { %v781_v55 = vpop.f32.mrf.mxu0 }
  0xe6   : > { %v782_v58 = vadd.f32 %v4965_v44, %v781_v55  ;;  %v1312_v61 = vpack.c.b16 %v5050_v52, %v5048_v51  ;;  %v863_v38 = vmax.f32 %v824_v35, 0.0  ;;  %v4686_v55 = vld [vmem:[%s6736_s4 + $0x70] sm:$0xff] }
  0xe7   : > { %2657 = vmatpush.bf16.msrb.mxu1 %v4686_v55 }
  0xe8   : > { %v846_v0 = vmax.f32 %v782_v58, 0.0  ;;  %2595 = vmatmul.bf16.gmra.mxu0 %v1742_v2  ;;  %950 = vst [vmem:[#allocation2 + $0x159] sm:$0xff] %v863_v38  ;;  %v4681_v38 = vld [vmem:[%s6736_s4 + $0x48] sm:$0xff] }
  0xe9   : > { %v1492_v6 = vld [vmem:[#allocation2 + $0x80] sm:$0xff] }
  0xea   : > { %933 = vst [vmem:[#allocation2 + $0x91] sm:$0xff] %v846_v0  ;;  %v1619_v10 = vld [vmem:[#allocation2 + $0x7a] sm:$0xff]  ;;  %v1620_v11 = vld [vmem:[#allocation2 + $0x82] sm:$0xff]  ;;  %v1063_v15 = vpack.c.bf16 %v846_v0, %v846_v0  ;;  %v1524_v19 = vpack.c.bf16 %v1492_v6, %v1492_v6 }
  0xeb   : > { %v1651_v21 = vpack.c.bf16 %v1619_v10, %v1619_v10  ;;  %v1652_v22 = vpack.c.bf16 %v1620_v11, %v1620_v11  ;;  %v826_v48 = vpop.f32.mrf.mxu3  ;;  %v4685_v0 = vld [vmem:[%s6736_s4 + $0x68] sm:$0xff]  ;;  %v4684_v11 = vld [vmem:[%s6736_s4 + $0x60] sm:$0xff] }
  0xec   : > { %v5058_v26 = vunpack.c.l.b16 %v1063_v15  ;;  %v1716_v28 = vunpack.c.l.b16 %v1524_v19  ;;  %v827_v53 = vadd.f32 %v4965_v44, %v826_v48  ;;  %2658 = vmatpush.bf16.msrb.mxu1 %v4685_v0 }
  0xed   : > { %v783_v4 = vpop.f32.mrf.mxu0  ;;  %v1907_v30 = vunpack.c.l.b16 %v1651_v21  ;;  %v1908_v31 = vunpack.c.l.b16 %v1652_v22  ;;  %v4683_v21 = vld [vmem:[%s6736_s4 + $0x58] sm:$0xff] }
  0xee   : > { %v784_v5 = vadd.f32 %v4965_v44, %v783_v4  ;;  %v1743_v39 = vpack.c.b16 %v1716_v28, %v1715_v36  ;;  %v864_v58 = vmax.f32 %v827_v53, 0.0 }
  0xef   : > { %v1935_v40 = vpack.c.b16 %v1908_v31, %v1907_v30 }
  0xf0   : > { %v847_v14 = vmax.f32 %v784_v5, 0.0  ;;  %2184 = vmatmul.bf16.gmra.mxu1 %v1743_v39  ;;  %951 = vst [vmem:[#allocation2 + $0x169] sm:$0xff] %v864_v58 }
  0xf1   : > { %2362 = vmatmul.bf16.gmra.mxu3 %v1935_v40  ;;  %v1493_v57 = vld [vmem:[#allocation2 + $0x90] sm:$0xff]  ;;  %2659 = vmatpush.bf16.msrb.mxu1 %v4684_v11 }
  0xf2   : > { %934 = vst [vmem:[#allocation2 + $0x99] sm:$0xff] %v847_v14  ;;  %v1064_v23 = vpack.c.bf16 %v847_v14, %v847_v14  ;;  %v1525_v1 = vpack.c.bf16 %v1493_v57, %v1493_v57 }
  0xf3   : > { %v828_v9 = vpop.f32.mrf.mxu3 }
  0xf4   : > { %v5060_v27 = vunpack.c.l.b16 %v1064_v23  ;;  %v829_v10 = vadd.f32 %v4965_v44, %v828_v9  ;;  %v1717_v12 = vunpack.c.l.b16 %v1525_v1 }
  0xf5   : > { %v786_v29 = vpop.f32.mrf.mxu0  ;;  %2660 = vmatpush.bf16.msrb.mxu1 %v4683_v21 }
  0xf6   : > { %v787_v32 = vadd.f32 %v4965_v44, %v786_v29  ;;  %v1313_v34 = vpack.c.b16 %v5060_v27, %v5058_v26  ;;  %v865_v15 = vmax.f32 %v829_v10, 0.0  ;;  %v4682_v29 = vld [vmem:[%s6736_s4 + $0x50] sm:$0xff]  ;;  %v4743_v26 = vld [vmem:[%s6736_s4 + $0x238] sm:$0xff] }
  0xf7   : > { %v1511_v17 = vld [vmem:[#allocation2 + $0x168] sm:$0xff] }
  0xf8   : > { %v848_v37 = vmax.f32 %v787_v32, 0.0  ;;  %2600 = vmatmul.bf16.gmra.mxu0 %v1743_v39  ;;  %952 = vst [vmem:[#allocation2 + $0x171] sm:$0xff] %v865_v15 }
  0xf9   : > { %v1494_v45 = vld [vmem:[#allocation2 + $0x98] sm:$0xff]  ;;  %2661 = vmatpush.bf16.msrb.mxu1 %v4682_v29  ;;  %v4710_v29 = vld [vmem:[%s6736_s4 + $0x130] sm:$0xff] }
  0xfa   : > { %935 = vst [vmem:[#allocation2 + $0xa9] sm:$0xff] %v848_v37  ;;  %v1621_v49 = vld [vmem:[#allocation2 + $0x92] sm:$0xff]  ;;  %v1622_v50 = vld [vmem:[#allocation2 + $0x9a] sm:$0xff]  ;;  %v1526_v59 = vpack.c.bf16 %v1494_v45, %v1494_v45 }
  0xfb   : > { %v1653_v62 = vpack.c.bf16 %v1621_v49, %v1621_v49  ;;  %v1654_v63 = vpack.c.bf16 %v1622_v50, %v1622_v50  ;;  %v831_v32 = vpop.f32.mrf.mxu3 }
  0xfc   : > { %v1718_v3 = vunpack.c.l.b16 %v1526_v59  ;;  %v832_v37 = vadd.f32 %v4965_v44, %v831_v32  ;;  %v4680_v59 = vld [vmem:[%s6736_s4 + $0x40] sm:$0xff] }
  0xfd   : > { %v788_v41 = vpop.f32.mrf.mxu0  ;;  %v1909_v4 = vunpack.c.l.b16 %v1653_v62  ;;  %v1910_v5 = vunpack.c.l.b16 %v1654_v63  ;;  %2662 = vmatpush.bf16.msrb.mxu1 %v4681_v38  ;;  %v4711_v62 = vld [vmem:[%s6736_s4 + $0x138] sm:$0xff] }
  0xfe   : > { %v789_v43 = vadd.f32 %v4965_v44, %v788_v41  ;;  %v1744_v16 = vpack.c.b16 %v1718_v3, %v1717_v12  ;;  %v866_v40 = vmax.f32 %v832_v37, 0.0  ;;  %2245 = vmatpush.bf16.msrb.mxu2 %v4711_v62 }
  0xff   : > { %v1936_v19 = vpack.c.b16 %v1910_v5, %v1909_v4  ;;  %v1512_v18 = vld [vmem:[#allocation2 + $0x170] sm:$0xff] }
 0x100   : > { %v5074_v56 = vmax.f32 %v789_v43, 0.0  ;;  %2189 = vmatmul.bf16.gmra.mxu1 %v1744_v16  ;;  %953 = vst [vmem:[#allocation2 + $0x181] sm:$0xff] %v866_v40 }
 0x101   : > { %2367 = vmatmul.bf16.gmra.mxu3 %v1936_v19  ;;  %v1495_v31 = vld [vmem:[#allocation2 + $0xa8] sm:$0xff]  ;;  %2663 = vmatpush.bf16.msrb.mxu1 %v4680_v59 }
 0x102   : > { %936 = vst [vmem:[#allocation2 + $0xb1] sm:$0xff] %v5074_v56  ;;  %v1527_v39 = vpack.c.bf16 %v1495_v31, %v1495_v31  ;;  %2246 = vmatpush.bf16.msrb.mxu2 %v4710_v29 }
 0x103   : > { %v833_v53 = vpop.f32.mrf.mxu3 }
 0x104   : > { %v1719_v49 = vunpack.c.l.b16 %v1527_v39  ;;  %v834_v58 = vadd.f32 %v4965_v44, %v833_v53 }
 0x105   : > { %v791_v2 = vpop.f32.mrf.mxu0  ;;  %3686 = vmatpush.bf16.msra.mxu1 %v4743_v26 }
 0x106   : > { %v792_v6 = vadd.f32 %v4965_v44, %v791_v2  ;;  %v867_v63 = vmax.f32 %v834_v58, 0.0 }
 0x107   : > { %v1513_v51 = vld [vmem:[#allocation2 + $0x180] sm:$0xff] }
 0x108   : > { %v850_v14 = vmax.f32 %v792_v6, 0.0  ;;  %2605 = vmatmul.bf16.gmra.mxu0 %v1744_v16  ;;  %954 = vst [vmem:[#allocation2 + $0x189] sm:$0xff] %v867_v63 }
 0x109   : > { %v1496_v23 = vld [vmem:[#allocation2 + $0xb0] sm:$0xff] }
 0x10a   : > { %937 = vst [vmem:[#allocation2 + $0xc1] sm:$0xff] %v850_v14  ;;  %v1623_v24 = vld [vmem:[#allocation2 + $0xaa] sm:$0xff]  ;;  %v1624_v28 = vld [vmem:[#allocation2 + $0xb2] sm:$0xff]  ;;  %v1528_v33 = vpack.c.bf16 %v1496_v23, %v1496_v23 }
 0x10b   : > { %v1655_v35 = vpack.c.bf16 %v1623_v24, %v1623_v24  ;;  %v1656_v36 = vpack.c.bf16 %v1624_v28, %v1624_v28 }
 0x10c   : > { %v1720_v42 = vunpack.c.l.b16 %v1528_v33  ;;  %v1019_v33 = vld [vmem:[#allocation2 + $0x1] sm:$0xff] }
 0x10d   : > { %v793_v20 = vpop.f32.mrf.mxu0  ;;  %v1911_v43 = vunpack.c.l.b16 %v1655_v35  ;;  %v1912_v45 = vunpack.c.l.b16 %v1656_v36  ;;  %v1020_v35 = vld [vmem:[#allocation2 + $0x9] sm:$0xff]  ;;  %v1051_v38 = vpack.c.bf16 %v1019_v33, %v1019_v33 }
 0x10e   : > { %v794_v22 = vadd.f32 %v4965_v44, %v793_v20  ;;  %v1745_v55 = vpack.c.b16 %v1720_v42, %v1719_v49  ;;  %v1052_v39 = vpack.c.bf16 %v1020_v35, %v1020_v35  ;;  %v4708_v35 = vld [vmem:[%s6736_s4 + $0x120] sm:$0xff] }
 0x10f   : > { %v1937_v57 = vpack.c.b16 %v1912_v45, %v1911_v43  ;;  %v1501_v43 = vld [vmem:[#allocation2 + $0xf0] sm:$0xff]  ;;  %v1502_v45 = vld [vmem:[#allocation2 + $0xf8] sm:$0xff]  ;;  %v1514_v52 = vld [vmem:[#allocation2 + $0x188] sm:$0xff] }
 0x110   : > { %v851_v30 = vmax.f32 %v794_v22, 0.0  ;;  %2194 = vmatmul.bf16.gmra.mxu1 %v1745_v55  ;;  %v1276_v49 = vunpack.c.l.b16 %v1052_v39 }
 0x111   : > { %2372 = vmatmul.bf16.gmra.mxu3 %v1937_v57  ;;  %v1497_v6 = vld [vmem:[#allocation2 + $0xc0] sm:$0xff]  ;;  %v1534_v57 = vpack.c.bf16 %v1502_v45, %v1502_v45 }
 0x112   : > { %938 = vst [vmem:[#allocation2 + $0xc9] sm:$0xff] %v851_v30  ;;  %v1529_v12 = vpack.c.bf16 %v1497_v6, %v1497_v6  ;;  %v1630_v6 = vld [vmem:[#allocation2 + $0xfa] sm:$0xff] }
 0x113   : > { %v1726_v63 = vunpack.c.l.b16 %v1534_v57  ;;  %v1505_v45 = vld [vmem:[#allocation2 + $0x120] sm:$0xff] }
 0x114   : > { %v1721_v20 = vunpack.c.l.b16 %v1529_v12  ;;  %v1504_v12 = vld [vmem:[#allocation2 + $0x110] sm:$0xff] }
 0x115   : > { %v796_v41 = vpop.f32.mrf.mxu0 }
 0x116   : > { %v797_v48 = vadd.f32 %v4965_v44, %v796_v41 }
 0x118   : > { %v852_v50 = vmax.f32 %v797_v48, 0.0  ;;  %2610 = vmatmul.bf16.gmra.mxu0 %v1745_v55  ;;  %v1275_v48 = vunpack.c.l.b16 %v1051_v38  ;;  %v1533_v55 = vpack.c.bf16 %v1501_v43, %v1501_v43 }
 0x119   : > { %v1498_v2 = vld [vmem:[#allocation2 + $0xc8] sm:$0xff] }
 0x11a   : > { %939 = vst [vmem:[#allocation2 + $0xd9] sm:$0xff] %v852_v50  ;;  %v1625_v3 = vld [vmem:[#allocation2 + $0xc2] sm:$0xff]  ;;  %v1626_v4 = vld [vmem:[#allocation2 + $0xca] sm:$0xff]  ;;  %v1530_v9 = vpack.c.bf16 %v1498_v2, %v1498_v2  ;;  %v1307_v59 = vpack.c.b16 %v1276_v49, %v1275_v48  ;;  %v1725_v62 = vunpack.c.l.b16 %v1533_v55  ;;  %v1537_v55 = vpack.c.bf16 %v1505_v45, %v1505_v45 }
 0x11b   : > { %v1657_v10 = vpack.c.bf16 %v1625_v3, %v1625_v3  ;;  %v1658_v11 = vpack.c.bf16 %v1626_v4, %v1626_v4  ;;  %v1506_v48 = vld [vmem:[#allocation2 + $0x128] sm:$0xff] }
 0x11c   : > { %v1722_v15 = vunpack.c.l.b16 %v1530_v9  ;;  %v1748_v3 = vpack.c.b16 %v1726_v63, %v1725_v62  ;;  %v1021_v9 = vld [vmem:[#allocation2 + $0x19] sm:$0xff]  ;;  %v1538_v57 = vpack.c.bf16 %v1506_v48, %v1506_v48  ;;  %v1729_v63 = vunpack.c.l.b16 %v1537_v55  ;;  %v1509_v55 = vld [vmem:[#allocation2 + $0x150] sm:$0xff] }
 0x11d   : > { %v798_v0 = vpop.f32.mrf.mxu0  ;;  %v1913_v16 = vunpack.c.l.b16 %v1657_v10  ;;  %v1914_v19 = vunpack.c.l.b16 %v1658_v11  ;;  %v1503_v11 = vld [vmem:[#allocation2 + $0x108] sm:$0xff]  ;;  %v1635_v48 = vld [vmem:[#allocation2 + $0x13a] sm:$0xff]  ;;  %v1541_v47 = vpack.c.bf16 %v1509_v55, %v1509_v55 }
 0x11e   : > { %v799_v1 = vadd.f32 %v4965_v44, %v798_v0  ;;  %v1746_v23 = vpack.c.b16 %v1722_v15, %v1721_v20  ;;  %v1054_v20 = vpack.c.bf16 %v5010_v60, %v5010_v60 }
 0x11f   : > { %v1938_v24 = vpack.c.b16 %v1914_v19, %v1913_v16  ;;  %v1662_v16 = vpack.c.bf16 %v1630_v6, %v1630_v6  ;;  %v1053_v19 = vpack.c.bf16 %v1021_v9, %v1021_v9 }
 0x120   : > { %v853_v5 = vmax.f32 %v799_v1, 0.0  ;;  %2199 = vmatmul.bf16.gmra.mxu1 %v1746_v23  ;;  %v4709_v1 = vld [vmem:[%s6736_s4 + $0x128] sm:$0xff]  ;;  %v1278_v29 = vunpack.c.l.b16 %v1054_v20  ;;  %v1507_v20 = vld [vmem:[#allocation2 + $0x138] sm:$0xff] }
 0x121   : > { %v1499_v14 = vld [vmem:[#allocation2 + $0xd8] sm:$0xff]  ;;  %2377 = vmatmul.bf16.gmra.mxu3 %v1938_v24  ;;  %2247 = vmatpush.bf16.msrb.mxu2 %v4709_v1  ;;  %v1918_v24 = vunpack.c.l.b16 %v1662_v16  ;;  %v1730_v1 = vunpack.c.l.b16 %v1538_v57  ;;  %v1634_v16 = vld [vmem:[#allocation2 + $0x12a] sm:$0xff] }
 0x122   : > { %940 = vst [vmem:[#allocation2 + $0xe1] sm:$0xff] %v853_v5  ;;  %v1531_v44 = vpack.c.bf16 %v1499_v14, %v1499_v14  ;;  %v1629_v5 = vld [vmem:[#allocation2 + $0xf2] sm:$0xff] }
 0x123   : > { %v1661_v15 = vpack.c.bf16 %v1629_v5, %v1629_v5  ;;  %v4707_v5 = vld [vmem:[%s6736_s4 + $0x118] sm:$0xff] }
 0x124   : > { %v1723_v30 = vunpack.c.l.b16 %v1531_v44  ;;  %v1535_v44 = vpack.c.bf16 %v1503_v11, %v1503_v11  ;;  %v1750_v11 = vpack.c.b16 %v1730_v1, %v1729_v63  ;;  %v1510_v57 = vld [vmem:[#allocation2 + $0x158] sm:$0xff]  ;;  %v1667_v63 = vpack.c.bf16 %v1635_v48, %v1635_v48 }
 0x125   : > { %v5105_v21 = vpop.f32.mrf.mxu0  ;;  %2248 = vmatpush.bf16.msrb.mxu2 %v4708_v35 }
 0x126   : > { %v1923_v1 = vunpack.c.l.b16 %v1667_v63  ;;  %v1544_v63 = vpack.c.bf16 %v1512_v18, %v1512_v18  ;;  %v4722_v18 = vld [vmem:[%s6736_s4 + $0x190] sm:$0xff] }
 0x128   : > { %2615 = vmatmul.bf16.gmra.mxu0 %v1746_v23  ;;  %v1917_v23 = vunpack.c.l.b16 %v1661_v15  ;;  %v1633_v15 = vld [vmem:[#allocation2 + $0x122] sm:$0xff] }
 0x129   : > { %v1500_v22 = vld [vmem:[#allocation2 + $0xe0] sm:$0xff]  ;;  %2249 = vmatpush.bf16.msrb.mxu2 %v4707_v5 }
 0x12a   : > { %v1532_v28 = vpack.c.bf16 %v1500_v22, %v1500_v22  ;;  %v1627_v36 = vld [vmem:[#allocation2 + $0xda] sm:$0xff]  ;;  %v1628_v37 = vld [vmem:[#allocation2 + $0xe2] sm:$0xff]  ;;  %v1536_v22 = vpack.c.bf16 %v1504_v12, %v1504_v12 }
 0x12b   : > { %v1659_v41 = vpack.c.bf16 %v1627_v36, %v1627_v36  ;;  %v1660_v42 = vpack.c.bf16 %v1628_v37, %v1628_v37  ;;  %v1940_v36 = vpack.c.b16 %v1918_v24, %v1917_v23  ;;  %v1665_v23 = vpack.c.bf16 %v1633_v15, %v1633_v15 }
 0x12c   : > { %v1724_v31 = vunpack.c.l.b16 %v1532_v28  ;;  %v5127_v28 = vunpack.c.l.b16 %v1053_v19  ;;  %v1666_v24 = vpack.c.bf16 %v1634_v16, %v1634_v16  ;;  %v1733_v15 = vunpack.c.l.b16 %v1541_v47 }
 0x12d   : > { %v5110_v40 = vpop.f32.mrf.mxu0  ;;  %v1915_v50 = vunpack.c.l.b16 %v1659_v41  ;;  %v1916_v53 = vunpack.c.l.b16 %v1660_v42  ;;  %v5112_v0 = vpop.f32.mrf.mxu1  ;;  %v1631_v41 = vld [vmem:[#allocation2 + $0x10a] sm:$0xff]  ;;  %v1632_v42 = vld [vmem:[#allocation2 + $0x112] sm:$0xff] }
 0x12e   : > { %v1747_v32 = vpack.c.b16 %v1724_v31, %v1723_v30  ;;  %v1727_v31 = vunpack.c.l.b16 %v1535_v44  ;;  %v1308_v60 = vpack.c.b16 %v1278_v29, %v5127_v28  ;;  %v1508_v44 = vld [vmem:[#allocation2 + $0x140] sm:$0xff]  ;;  %v1539_v29 = vpack.c.bf16 %v1507_v20, %v1507_v20 }
 0x12f   : > { %v1939_v58 = vpack.c.b16 %v1916_v53, %v1915_v50  ;;  %v1663_v50 = vpack.c.bf16 %v1631_v41, %v1631_v41  ;;  %v1664_v53 = vpack.c.bf16 %v1632_v42, %v1632_v42  ;;  %v1922_v7 = vunpack.c.l.b16 %v1666_v24 }
 0x130   : > { %2204 = vmatmul.bf16.vlgmr.msra.gmra.mxu2 %v1747_v32  ;;  %2664 = vmatmul.bf16.vlgmr.msrb.gmra.mxu1 %v1307_v59 }
 0x131   : > { %2382 = vmatmul.bf16.gmra.mxu3 %v1939_v58  ;;  %v1919_v58 = vunpack.c.l.b16 %v1663_v50  ;;  %v1920_v59 = vunpack.c.l.b16 %v1664_v53  ;;  %v1636_v50 = vld [vmem:[#allocation2 + $0x142] sm:$0xff] }
 0x132   : > { %v1668_v46 = vpack.c.bf16 %v1636_v50, %v1636_v50 }
 0x133   : > { %v1941_v6 = vpack.c.b16 %v1920_v59, %v1919_v58  ;;  %v4735_v58 = vld [vmem:[%s6736_s4 + $0x1f8] sm:$0xff] }
 0x134   : > { %v5119_v4 = vpop.f32.mrf.mxu3  ;;  %3597 = vmatpush.bf16.msra.mxu0 %v4735_v58  ;;  %v1924_v5 = vunpack.c.l.b16 %v1668_v46  ;;  %v1543_v58 = vpack.c.bf16 %v1511_v17, %v1511_v17  ;;  %v1640_v17 = vld [vmem:[#allocation2 + $0x172] sm:$0xff] }
 0x135   : > { %v5117_v2 = vpop.f32.mrf.mxu0  ;;  %v5121_v10 = vpop.f32.mrf.mxu1 }
 0x136   : > { %6771 = vst [vmem:[#allocation3_spill] sm:$0xff] %v5117_v2 }
 0x138   : > { %2620 = vmatmul.bf16.gmra.mxu0 %v1747_v32  ;;  %v1728_v32 = vunpack.c.l.b16 %v1536_v22 }
 0x13a   : > { %v1749_v38 = vpack.c.b16 %v1728_v32, %v1727_v31  ;;  %v1540_v31 = vpack.c.bf16 %v1508_v44, %v1508_v44  ;;  %v1921_v32 = vunpack.c.l.b16 %v1665_v23  ;;  %v4705_v44 = vld [vmem:[%s6736_s4 + $0x108] sm:$0xff]  ;;  %v1943_v23 = vpack.c.b16 %v1924_v5, %v1923_v1  ;;  %v4724_v1 = vld [vmem:[%s6736_s4 + $0x1a0] sm:$0xff]  ;;  %v4730_v5 = vld [vmem:[%s6736_s4 + $0x1d0] sm:$0xff] }
 0x13c   : > { %v5129_v30 = vpop.f32.mrf.mxu3  ;;  %v1732_v35 = vunpack.c.l.b16 %v1540_v31  ;;  %v4733_v31 = vld [vmem:[%s6736_s4 + $0x1e8] sm:$0xff] }
 0x13d   : > { %v5123_v14 = vpop.f32.mrf.mxu0  ;;  %v5131_v33 = vpop.f32.mrf.mxu1 }
 0x13e   : > { %6772 = vst [vmem:[#allocation4_spill] sm:$0xff] %v5123_v14 }
 0x140   : > { %2209 = vmatmul.bf16.gmra.mxu2 %v1748_v3  ;;  %2669 = vmatmul.bf16.gmra.mxu1 %v1308_v60  ;;  %v4706_v60 = vld [vmem:[%s6736_s4 + $0x110] sm:$0xff] }
 0x141   : > { %2387 = vmatmul.bf16.gmra.mxu3 %v1940_v36  ;;  %2250 = vmatpush.bf16.msrb.mxu2 %v4706_v60  ;;  %v4726_v60 = vld [vmem:[%s6736_s4 + $0x1b0] sm:$0xff] }
 0x144   : > { %v5139_v39 = vpop.f32.mrf.mxu3 }
 0x145   : > { %v5137_v37 = vpop.f32.mrf.mxu0  ;;  %v5141_v43 = vpop.f32.mrf.mxu1  ;;  %2251 = vmatpush.bf16.msrb.mxu2 %v4705_v44  ;;  %v4704_v44 = vld [vmem:[%s6736_s4 + $0x100] sm:$0xff] }
 0x146   : > { %6773 = vst [vmem:[#allocation5_spill] sm:$0xff] %v5137_v37 }
 0x147   : > { %6774 = vst [vmem:[#allocation6_spill] sm:$0xff] %v5141_v43 }
 0x148   : > { %2625 = vmatmul.bf16.gmra.mxu0 %v1748_v3 }
 0x149   : > { %2252 = vmatpush.bf16.msrb.mxu2 %v4704_v44 }
 0x14c   : > { %v5145_v62 = vpop.f32.mrf.mxu3 }
 0x14d   : > { %v5143_v49 = vpop.f32.mrf.mxu0  ;;  %6776 = vst [vmem:[#allocation8_spill] sm:$0xff] %v5145_v62  ;;  %v5147_v3 = vpop.f32.mrf.mxu1  ;;  %v1086_v62 = vld [vmem:[#allocation2 + $0x22] sm:$0xff] }
 0x14e   : > { %6775 = vst [vmem:[#allocation7_spill] sm:$0xff] %v5143_v49  ;;  %v1118_v43 = vpack.c.bf16 %v1086_v62, %v1086_v62 }
 0x14f   : > { %6777 = vst [vmem:[#allocation9_spill] sm:$0xff] %v5147_v3  ;;  %v5705_v3 = vld [vmem:[%s5576_s29 + $0xa0] sm:$0xff] }
 0x150   : > { %2214 = vmatmul.bf16.gmra.mxu2 %v1749_v38  ;;  %2674 = vmatmul.bf16.gmra.mxu1 %v1309_v13  ;;  %v1731_v13 = vunpack.c.l.b16 %v1539_v29  ;;  %v4727_v29 = vld [vmem:[%s6736_s4 + $0x1b8] sm:$0xff]  ;;  %v1374_v62 = vunpack.c.l.b16 %v1118_v43 }
 0x151   : > { %2392 = vmatmul.bf16.gmra.mxu3 %v1941_v6  ;;  %v5776_v43 = vld [vmem:[%s5576_s29 + $0xf8] sm:$0xff] }
 0x152   : > { %v1751_v42 = vpack.c.b16 %v1732_v35, %v1731_v13  ;;  %3508 = vmatpush.bf16.msra.mxu3 %v4727_v29  ;;  %v1638_v35 = vld [vmem:[#allocation2 + $0x15a] sm:$0xff]  ;;  %6914 = vst [vmem:[#allocation146_spill] sm:$0xff] %v5776_v43 }
 0x153   : > { %v1670_v55 = vpack.c.bf16 %v1638_v35, %v1638_v35 }
 0x154   : > { %v5157_v12 = vpop.f32.mrf.mxu3 }
 0x155   : > { %v5152_v9 = vpop.f32.mrf.mxu0  ;;  %6779 = vst [vmem:[#allocation11_spill] sm:$0xff] %v5157_v12  ;;  %v5159_v19 = vpop.f32.mrf.mxu1  ;;  %v1926_v47 = vunpack.c.l.b16 %v1670_v55 }
 0x156   : > { %6778 = vst [vmem:[#allocation10_spill] sm:$0xff] %v5152_v9  ;;  %3509 = vmatpush.bf16.msra.mxu3 %v4726_v60  ;;  %v1639_v60 = vld [vmem:[#allocation2 + $0x16a] sm:$0xff] }
 0x157   : > { %6780 = vst [vmem:[#allocation12_spill] sm:$0xff] %v5159_v19  ;;  %v1671_v55 = vpack.c.bf16 %v1639_v60, %v1639_v60  ;;  %v4695_v60 = vld [vmem:[%s6736_s4 + $0xb8] sm:$0xff] }
 0x158   : > { %2630 = vmatmul.bf16.gmra.mxu0 %v1749_v38  ;;  %v1942_v38 = vpack.c.b16 %v1922_v7, %v1921_v32  ;;  %v1637_v7 = vld [vmem:[#allocation2 + $0x152] sm:$0xff]  ;;  %2745 = vmatpush.bf16.msra.mxu2 %v4695_v60 }
 0x159   : > { %v1669_v50 = vpack.c.bf16 %v1637_v7, %v1637_v7  ;;  %v4729_v7 = vld [vmem:[%s6736_s4 + $0x1c8] sm:$0xff] }
 0x15b   : > { %v1925_v46 = vunpack.c.l.b16 %v1669_v50 }
 0x15c   : > { %v5163_v8 = vpop.f32.mrf.mxu3 }
 0x15d   : > { %v5161_v22 = vpop.f32.mrf.mxu0  ;;  %6782 = vst [vmem:[#allocation14_spill] sm:$0xff] %v5163_v8  ;;  %v5165_v36 = vpop.f32.mrf.mxu1  ;;  %v5649_v8 = vld [vmem:[%s5576_s29 + $0x58] sm:$0xff] }
 0x15e   : > { %6781 = vst [vmem:[#allocation13_spill] sm:$0xff] %v5161_v22 }
 0x15f   : > { %6783 = vst [vmem:[#allocation15_spill] sm:$0xff] %v5165_v36 }
 0x160   : > { %2219 = vmatmul.bf16.gmra.mxu2 %v1750_v11  ;;  %2679 = vmatmul.bf16.gmra.mxu1 %v1310_v54  ;;  %v1542_v54 = vpack.c.bf16 %v1510_v57, %v1510_v57  ;;  %v4731_v57 = vld [vmem:[%s6736_s4 + $0x1d8] sm:$0xff] }
 0x161   : > { %2397 = vmatmul.bf16.gmra.mxu3 %v1942_v38  ;;  %v4732_v38 = vld [vmem:[%s6736_s4 + $0x1e0] sm:$0xff] }
 0x162   : > { %v1734_v16 = vunpack.c.l.b16 %v1542_v54 }
 0x164   : > { %v5175_v45 = vpop.f32.mrf.mxu3  ;;  %v1752_v32 = vpack.c.b16 %v1734_v16, %v1733_v15  ;;  %v1736_v15 = vunpack.c.l.b16 %v1544_v63  ;;  %v1546_v63 = vpack.c.bf16 %v1514_v52, %v1514_v52  ;;  %v2900_v52 = vld [vmem:[#allocation2 + $0x39] sm:$0xff] }
 0x165   : > { %v5170_v41 = vpop.f32.mrf.mxu0  ;;  %6785 = vst [vmem:[#allocation17_spill] sm:$0xff] %v5175_v45  ;;  %v5177_v53 = vpop.f32.mrf.mxu1 }
 0x166   : > { %6784 = vst [vmem:[#allocation16_spill] sm:$0xff] %v5170_v41 }
 0x167   : > { %6786 = vst [vmem:[#allocation18_spill] sm:$0xff] %v5177_v53 }
 0x168   : > { %2635 = vmatmul.bf16.gmra.mxu0 %v1750_v11  ;;  %v4734_v11 = vld [vmem:[%s6736_s4 + $0x1f0] sm:$0xff] }
 0x169   : > { %3598 = vmatpush.bf16.msra.mxu0 %v4734_v11  ;;  %v1735_v11 = vunpack.c.l.b16 %v1543_v58  ;;  %v1545_v58 = vpack.c.bf16 %v1513_v51, %v1513_v51  ;;  %v1033_v51 = vld [vmem:[#allocation2 + $0xa9] sm:$0xff] }
 0x16b   : > { %v1753_v35 = vpack.c.b16 %v1736_v15, %v1735_v11  ;;  %v1737_v11 = vunpack.c.l.b16 %v1545_v58  ;;  %v1738_v15 = vunpack.c.l.b16 %v1546_v63  ;;  %v1066_v58 = vpack.c.bf16 %v5074_v56, %v5074_v56  ;;  %v2899_v63 = vld [vmem:[#allocation2 + $0x31] sm:$0xff] }
 0x16c   : > { %v5184_v6 = vpop.f32.mrf.mxu3 }
 0x16d   : > { %v5182_v59 = vpop.f32.mrf.mxu0  ;;  %6788 = vst [vmem:[#allocation20_spill] sm:$0xff] %v5184_v6  ;;  %v5189_v20 = vpop.f32.mrf.mxu1  ;;  %3599 = vmatpush.bf16.msra.mxu0 %v4733_v31  ;;  %v4723_v31 = vld [vmem:[%s6736_s4 + $0x198] sm:$0xff] }
 0x16e   : > { %6787 = vst [vmem:[#allocation19_spill] sm:$0xff] %v5182_v59 }
 0x16f   : > { %6789 = vst [vmem:[#allocation21_spill] sm:$0xff] %v5189_v20 }
 0x170   : > { %2224 = vmatmul.bf16.gmra.mxu2 %v1751_v42  ;;  %2684 = vmatmul.bf16.gmra.mxu1 %v1311_v25  ;;  %v4725_v25 = vld [vmem:[%s6736_s4 + $0x1a8] sm:$0xff] }
 0x171   : > { %2402 = vmatmul.bf16.gmra.mxu3 %v1943_v23  ;;  %3600 = vmatpush.bf16.msra.mxu0 %v4732_v38  ;;  %v1944_v23 = vpack.c.b16 %v1926_v47, %v1925_v46  ;;  %v1927_v46 = vunpack.c.l.b16 %v1671_v55  ;;  %v1548_v55 = vld [vmem:[#allocation2 + $0x21] sm:$0xff] }
 0x172   : > { %3510 = vmatpush.bf16.msra.mxu3 %v4725_v25  ;;  %v4728_v25 = vld [vmem:[%s6736_s4 + $0x1c0] sm:$0xff] }
 0x174   : > { %v5205_v13 = vpop.f32.mrf.mxu3 }
 0x175   : > { %v5194_v24 = vpop.f32.mrf.mxu0  ;;  %6791 = vst [vmem:[#allocation23_spill] sm:$0xff] %v5205_v13  ;;  %v5213_v48 = vpop.f32.mrf.mxu1  ;;  %3601 = vmatpush.bf16.msra.mxu0 %v4731_v57  ;;  %v1672_v57 = vpack.c.bf16 %v1640_v17, %v1640_v17 }
 0x176   : > { %6790 = vst [vmem:[#allocation22_spill] sm:$0xff] %v5194_v24  ;;  %3511 = vmatpush.bf16.msra.mxu3 %v4724_v1 }
 0x177   : > { %6792 = vst [vmem:[#allocation24_spill] sm:$0xff] %v5213_v48  ;;  %v1928_v47 = vunpack.c.l.b16 %v1672_v57 }
 0x178   : > { %2640 = vmatmul.bf16.gmra.mxu0 %v1751_v42 }
 0x179   : > { %3602 = vmatpush.bf16.msra.mxu0 %v4730_v5  ;;  %v4720_v5 = vld [vmem:[%s6736_s4 + $0x180] sm:$0xff] }
 0x17a   : > { %3512 = vmatpush.bf16.msra.mxu3 %v4723_v31 }
 0x17c   : > { %v5223_v54 = vpop.f32.mrf.mxu3 }
 0x17d   : > { %v5218_v42 = vpop.f32.mrf.mxu0  ;;  %6794 = vst [vmem:[#allocation26_spill] sm:$0xff] %v5223_v54  ;;  %v5231_v16 = vpop.f32.mrf.mxu1  ;;  %3603 = vmatpush.bf16.msra.mxu0 %v4729_v7  ;;  %v1754_v7 = vpack.c.b16 %v1738_v15, %v1737_v11 }
 0x17e   : > { %6793 = vst [vmem:[#allocation25_spill] sm:$0xff] %v5218_v42  ;;  %3513 = vmatpush.bf16.msra.mxu3 %v4722_v18  ;;  %v1641_v18 = vld [vmem:[#allocation2 + $0x182] sm:$0xff] }
 0x17f   : > { %6795 = vst [vmem:[#allocation27_spill] sm:$0xff] %v5231_v16 }
 0x180   : > { %2229 = vmatmul.bf16.gmra.mxu2 %v1752_v32  ;;  %2689 = vmatmul.bf16.gmra.mxu1 %v1312_v61  ;;  %v4721_v61 = vld [vmem:[%s6736_s4 + $0x188] sm:$0xff] }
 0x181   : > { %2407 = vmatmul.bf16.gmra.mxu3 %v1944_v23  ;;  %3604 = vmatpush.bf16.msra.mxu0 %v4728_v25  ;;  %v1945_v23 = vpack.c.b16 %v1928_v47, %v1927_v46  ;;  %v1642_v25 = vld [vmem:[#allocation2 + $0x18a] sm:$0xff]  ;;  %v2932_v46 = vpack.c.bf16 %v2900_v52, %v2900_v52  ;;  %v1580_v47 = vpack.c.bf16 %v1548_v55, %v1548_v55 }
 0x182   : > { %3514 = vmatpush.bf16.msra.mxu3 %v4721_v61  ;;  %v1674_v57 = vpack.c.bf16 %v1642_v25, %v1642_v25 }
 0x184   : > { %v5247_v38 = vpop.f32.mrf.mxu3  ;;  %v1930_v15 = vunpack.c.l.b16 %v1674_v57  ;;  %v2836_v57 = vld [vmem:[#allocation2 + $0x38] sm:$0xff] }
 0x185   : > { %v5236_v29 = vpop.f32.mrf.mxu0  ;;  %6797 = vst [vmem:[#allocation29_spill] sm:$0xff] %v5247_v38  ;;  %v5255_v50 = vpop.f32.mrf.mxu1 }
 0x186   : > { %6796 = vst [vmem:[#allocation28_spill] sm:$0xff] %v5236_v29  ;;  %3515 = vmatpush.bf16.msra.mxu3 %v4720_v5  ;;  %v2931_v5 = vpack.c.bf16 %v2899_v63, %v2899_v63  ;;  %v1035_v63 = vld [vmem:[#allocation2 + $0xc1] sm:$0xff] }
 0x187   : > { %6798 = vst [vmem:[#allocation30_spill] sm:$0xff] %v5255_v50 }
 0x188   : > { %2645 = vmatmul.bf16.gmra.mxu0 %v1752_v32  ;;  %v3155_v25 = vunpack.c.l.b16 %v2931_v5 }
 0x18c   : > { %v5262_v1 = vpop.f32.mrf.mxu3 }
 0x18d   : > { %v5260_v32 = vpop.f32.mrf.mxu0  ;;  %6800 = vst [vmem:[#allocation32_spill] sm:$0xff] %v5262_v1  ;;  %v5267_v44 = vpop.f32.mrf.mxu1 }
 0x18e   : > { %6799 = vst [vmem:[#allocation31_spill] sm:$0xff] %v5260_v32 }
 0x18f   : > { %6801 = vst [vmem:[#allocation33_spill] sm:$0xff] %v5267_v44 }
 0x190   : > { %2234 = vmatmul.bf16.gmra.mxu2 %v1753_v35  ;;  %2694 = vmatmul.bf16.gmra.mxu1 %v1313_v34  ;;  %v1673_v34 = vpack.c.bf16 %v1641_v18, %v1641_v18 }
 0x191   : > { %2412 = vmatmul.bf16.gmra.mxu3 %v1945_v23 }
 0x192   : > { %v1929_v11 = vunpack.c.l.b16 %v1673_v34  ;;  %v1036_v34 = vld [vmem:[#allocation2 + $0xc9] sm:$0xff] }
 0x194   : > { %v5277_v17 = vpop.f32.mrf.mxu3 }
 0x195   : > { %v5269_v31 = vpop.f32.mrf.mxu0  ;;  %6803 = vst [vmem:[#allocation35_spill] sm:$0xff] %v5277_v17  ;;  %v5279_v61 = vpop.f32.mrf.mxu1 }
 0x196   : > { %6802 = vst [vmem:[#allocation34_spill] sm:$0xff] %v5269_v31  ;;  %v3156_v31 = vunpack.c.l.b16 %v2932_v46  ;;  %v2835_v46 = vld [vmem:[#allocation2 + $0x30] sm:$0xff] }
 0x197   : > { %6804 = vst [vmem:[#allocation36_spill] sm:$0xff] %v5279_v61 }
 0x198   : > { %2650 = vmatmul.bf16.gmra.mxu0 %v1753_v35  ;;  %v1065_v35 = vpack.c.bf16 %v1033_v51, %v1033_v51  ;;  %v1946_v51 = vpack.c.b16 %v1930_v15, %v1929_v11  ;;  %v3187_v52 = vpack.c.b16 %v3156_v31, %v3155_v25  ;;  %v1068_v31 = vpack.c.bf16 %v1036_v34, %v1036_v34  ;;  %v2901_v15 = vld [vmem:[#allocation2 + $0x49] sm:$0xff] }
 0x199   : > { %v2868_v11 = vpack.c.bf16 %v2836_v57, %v2836_v57  ;;  %v2933_v25 = vpack.c.bf16 %v2901_v15, %v2901_v15 }
 0x19a   : > { %v5288_v23 = vunpack.c.l.b16 %v1065_v35  ;;  %v2902_v35 = vld [vmem:[#allocation2 + $0x51] sm:$0xff] }
 0x19c   : > { %v5290_v60 = vpop.f32.mrf.mxu3 }
 0x19d   : > { %v5284_v27 = vpop.f32.mrf.mxu0  ;;  %6806 = vst [vmem:[#allocation38_spill] sm:$0xff] %v5290_v60  ;;  %v5292_v18 = vpop.f32.mrf.mxu1  ;;  %v3157_v60 = vunpack.c.l.b16 %v2933_v25  ;;  %v2903_v25 = vld [vmem:[#allocation2 + $0x61] sm:$0xff] }
 0x19e   : > { %6805 = vst [vmem:[#allocation37_spill] sm:$0xff] %v5284_v27  ;;  %v1804_v27 = vunpack.c.l.b16 %v1580_v47 }
 0x19f   : > { %6807 = vst [vmem:[#allocation39_spill] sm:$0xff] %v5292_v18 }
 0x1a0   : > { %2239 = vmatmul.bf16.gmra.mxu2 %v1754_v7  ;;  %v1290_v7 = vunpack.c.l.b16 %v1066_v58  ;;  %v1835_v55 = vpack.c.b16 %v1804_v27, %v5127_v28  ;;  %v1067_v28 = vpack.c.bf16 %v1035_v63, %v1035_v63  ;;  %v2867_v27 = vpack.c.bf16 %v2835_v46, %v2835_v46  ;;  %v4694_v63 = vld [vmem:[%s6736_s4 + $0xb0] sm:$0xff] }
 0x1a1   : > { %2417 = vmatmul.bf16.gmra.mxu3 %v1946_v51  ;;  %v1292_v51 = vunpack.c.l.b16 %v1068_v31  ;;  %v1038_v31 = vld [vmem:[#allocation2 + $0xe1] sm:$0xff]  ;;  %2746 = vmatpush.bf16.msra.mxu2 %v4694_v63  ;;  %v2935_v63 = vpack.c.bf16 %v2903_v25, %v2903_v25 }
 0x1a2   : > { %v1314_v56 = vpack.c.b16 %v1290_v7, %v5288_v23  ;;  %v2934_v7 = vpack.c.bf16 %v2902_v35, %v2902_v35  ;;  %v2906_v25 = vld [vmem:[#allocation2 + $0x81] sm:$0xff] }
 0x1a3   : > { %v3159_v17 = vunpack.c.l.b16 %v2935_v63 }
 0x1a4   : > { %2699 = vmatmul.bf16.gmra.mxu1 %v1314_v56  ;;  %v5298_v26 = vpop.f32.mrf.mxu3  ;;  %v3060_v56 = vunpack.c.l.b16 %v2868_v11  ;;  %v2838_v11 = vld [vmem:[#allocation2 + $0x50] sm:$0xff] }
 0x1a5   : > { %v5295_v32 = vpop.f32.mrf.mxu0  ;;  %6809 = vst [vmem:[#allocation41_spill] sm:$0xff] %v5298_v26  ;;  %v5300_v58 = vpop.f32.mrf.mxu1  ;;  %v1291_v26 = vunpack.c.l.b16 %v1067_v28 }
 0x1a6   : > { %6808 = vst [vmem:[#allocation40_spill] sm:$0xff] %v5295_v32  ;;  %v3158_v32 = vunpack.c.l.b16 %v2934_v7  ;;  %v2837_v7 = vld [vmem:[#allocation2 + $0x48] sm:$0xff] }
 0x1a7   : > { %6810 = vst [vmem:[#allocation42_spill] sm:$0xff] %v5300_v58  ;;  %v3059_v58 = vunpack.c.l.b16 %v2867_v27  ;;  %v1070_v27 = vpack.c.bf16 %v1038_v31, %v1038_v31 }
 0x1a8   : > { %3605 = vmatmul.bf16.vlgmr.msra.gmra.mxu0 %v3187_v52  ;;  %v3188_v35 = vpack.c.b16 %v3158_v32, %v3157_v60  ;;  %v4742_v60 = vld [vmem:[%s6736_s4 + $0x230] sm:$0xff] }
 0x1a9   : > { %v3091_v34 = vpack.c.b16 %v3060_v56, %v3059_v58  ;;  %v1037_v58 = vld [vmem:[#allocation2 + $0xd9] sm:$0xff]  ;;  %3687 = vmatpush.bf16.msra.mxu1 %v4742_v60  ;;  %v1039_v60 = vld [vmem:[#allocation2 + $0xf1] sm:$0xff] }
 0x1aa   : > { %v1069_v56 = vpack.c.bf16 %v1037_v58, %v1037_v58 }
 0x1ad   : > { %v5304_v5 = vpop.f32.mrf.mxu0  ;;  %v5308_v18 = vpop.f32.mrf.mxu1 }
 0x1ae   : > { %6812 = vst [vmem:[#allocation44_spill] sm:$0xff] %v5304_v5  ;;  %v5312_v5 = vpack.c.b16 %v1292_v51, %v1291_v26  ;;  %v2904_v26 = vld [vmem:[#allocation2 + $0x69] sm:$0xff] }
 0x1af   : > { %v2936_v51 = vpack.c.bf16 %v2904_v26, %v2904_v26 }
 0x1b0   : > { %2253 = vmatmul.bf16.vlgmr.msrb.gmra.mxu2 %v1835_v55  ;;  %v5306_v55 = vpop.f32.mrf.mxu3 }
 0x1b1   : > { %6813 = vst [vmem:[#allocation45_spill] sm:$0xff] %v5306_v55  ;;  %3516 = vmatmul.bf16.vlgmr.msra.gmra.mxu3 %v3091_v34  ;;  %v2869_v34 = vpack.c.bf16 %v2837_v7, %v2837_v7  ;;  %v3160_v55 = vunpack.c.l.b16 %v2936_v51 }
 0x1b3   : > { %v5302_v47 = vpop.f32.mrf.mxu2  ;;  %v3061_v29 = vunpack.c.l.b16 %v2869_v34  ;;  %v3189_v58 = vpack.c.b16 %v3160_v55, %v3159_v17  ;;  %v2938_v34 = vpack.c.bf16 %v2906_v25, %v2906_v25  ;;  %v4693_v25 = vld [vmem:[%s6736_s4 + $0xa8] sm:$0xff] }
 0x1b4   : > { %6811 = vst [vmem:[#allocation43_spill] sm:$0xff] %v5302_v47  ;;  %2704 = vmatmul.bf16.gmra.mxu1 %v5312_v5  ;;  %2747 = vmatpush.bf16.msra.mxu2 %v4693_v25 }
 0x1b5   : > { %v5314_v57 = vpop.f32.mrf.mxu0  ;;  %v5322_v15 = vpop.f32.mrf.mxu1 }
 0x1b6   : > { %6815 = vst [vmem:[#allocation47_spill] sm:$0xff] %v5314_v57  ;;  %v1294_v57 = vunpack.c.l.b16 %v1070_v27  ;;  %v1040_v27 = vld [vmem:[#allocation2 + $0xf9] sm:$0xff] }
 0x1b7   : > { %v1072_v17 = vpack.c.bf16 %v1040_v27, %v1040_v27 }
 0x1b8   : > { %3610 = vmatmul.bf16.gmra.mxu0 %v3188_v35  ;;  %v5320_v46 = vpop.f32.mrf.mxu3 }
 0x1b9   : > { %6816 = vst [vmem:[#allocation48_spill] sm:$0xff] %v5320_v46 }
 0x1bb   : > { %v5310_v47 = vpop.f32.mrf.mxu2 }
 0x1bc   : > { %6814 = vst [vmem:[#allocation46_spill] sm:$0xff] %v5310_v47 }
 0x1bd   : > { %v5329_v28 = vpop.f32.mrf.mxu0  ;;  %v5333_v61 = vpop.f32.mrf.mxu1 }
 0x1be   : > { %6818 = vst [vmem:[#allocation50_spill] sm:$0xff] %v5329_v28 }
 0x1bf   : > { %6820 = vst [vmem:[#allocation52_spill] sm:$0xff] %v5333_v61 }
 0x1c0   : > { %2258 = vmatmul.bf16.gmra.mxu2 %v3187_v52  ;;  %v2870_v52 = vpack.c.bf16 %v2838_v11, %v2838_v11  ;;  %v5331_v46 = vpop.f32.mrf.mxu3 }
 0x1c1   : > { %6819 = vst [vmem:[#allocation51_spill] sm:$0xff] %v5331_v46 }
 0x1c2   : > { %v3062_v47 = vunpack.c.l.b16 %v2870_v52  ;;  %v2840_v52 = vld [vmem:[#allocation2 + $0x68] sm:$0xff] }
 0x1c3   : > { %v5324_v32 = vpop.f32.mrf.mxu2  ;;  %v2872_v55 = vpack.c.bf16 %v2840_v52, %v2840_v52 }
 0x1c4   : > { %6817 = vst [vmem:[#allocation49_spill] sm:$0xff] %v5324_v32  ;;  %v1293_v32 = vunpack.c.l.b16 %v1069_v56  ;;  %v3092_v11 = vpack.c.b16 %v3062_v47, %v3061_v29  ;;  %v2839_v56 = vld [vmem:[#allocation2 + $0x60] sm:$0xff]  ;;  %v1071_v47 = vpack.c.bf16 %v1039_v60, %v1039_v60 }
 0x1c5   : > { %v5339_v26 = vpop.f32.mrf.mxu0  ;;  %v5344_v51 = vpop.f32.mrf.mxu1  ;;  %v2871_v63 = vpack.c.bf16 %v2839_v56, %v2839_v56  ;;  %v3064_v28 = vunpack.c.l.b16 %v2872_v55  ;;  %v2842_v55 = vld [vmem:[#allocation2 + $0x80] sm:$0xff] }
 0x1c6   : > { %v5337_v31 = vpack.c.b16 %v1294_v57, %v1293_v32  ;;  %6822 = vst [vmem:[#allocation54_spill] sm:$0xff] %v5339_v26  ;;  %3521 = vmatmul.bf16.gmra.mxu3 %v3092_v11  ;;  %v2905_v32 = vld [vmem:[#allocation2 + $0x79] sm:$0xff]  ;;  %v1295_v11 = vunpack.c.l.b16 %v1071_v47  ;;  %v1296_v26 = vunpack.c.l.b16 %v1072_v17  ;;  %v1041_v47 = vld [vmem:[#allocation2 + $0x109] sm:$0xff]  ;;  %v1042_v17 = vld [vmem:[#allocation2 + $0x111] sm:$0xff] }
 0x1c7   : > { %6824 = vst [vmem:[#allocation56_spill] sm:$0xff] %v5344_v51  ;;  %v3063_v46 = vunpack.c.l.b16 %v2871_v63  ;;  %v2874_v63 = vpack.c.bf16 %v2842_v55, %v2842_v55 }
 0x1c8   : > { %2709 = vmatmul.bf16.gmra.mxu1 %v5337_v31  ;;  %3615 = vmatmul.bf16.gmra.mxu0 %v3189_v58  ;;  %v5342_v7 = vpop.f32.mrf.mxu3 }
 0x1c9   : > { %6823 = vst [vmem:[#allocation55_spill] sm:$0xff] %v5342_v7  ;;  %v3162_v7 = vunpack.c.l.b16 %v2938_v34  ;;  %v3093_v60 = vpack.c.b16 %v3064_v28, %v3063_v46  ;;  %v2841_v28 = vld [vmem:[#allocation2 + $0x78] sm:$0xff]  ;;  %v1073_v34 = vpack.c.bf16 %v1041_v47, %v1041_v47 }
 0x1cb   : > { %v5335_v44 = vpop.f32.mrf.mxu2 }
 0x1cc   : > { %6821 = vst [vmem:[#allocation53_spill] sm:$0xff] %v5335_v44 }
 0x1cd   : > { %v5348_v29 = vpop.f32.mrf.mxu0  ;;  %v5352_v42 = vpop.f32.mrf.mxu1 }
 0x1ce   : > { %6826 = vst [vmem:[#allocation58_spill] sm:$0xff] %v5348_v29  ;;  %v5356_v29 = vpack.c.b16 %v1296_v26, %v1295_v11  ;;  %v2908_v26 = vld [vmem:[#allocation2 + $0x99] sm:$0xff] }
 0x1cf   : > { %6828 = vst [vmem:[#allocation60_spill] sm:$0xff] %v5352_v42  ;;  %v2940_v11 = vpack.c.bf16 %v2908_v26, %v2908_v26 }
 0x1d0   : > { %2263 = vmatmul.bf16.gmra.mxu2 %v3188_v35  ;;  %v2937_v35 = vpack.c.bf16 %v2905_v32, %v2905_v32  ;;  %v5350_v44 = vpop.f32.mrf.mxu3 }
 0x1d1   : > { %6827 = vst [vmem:[#allocation59_spill] sm:$0xff] %v5350_v44 }
 0x1d2   : > { %v3161_v1 = vunpack.c.l.b16 %v2937_v35  ;;  %v2907_v35 = vld [vmem:[#allocation2 + $0x91] sm:$0xff] }
 0x1d3   : > { %v5346_v57 = vpop.f32.mrf.mxu2  ;;  %v2939_v25 = vpack.c.bf16 %v2907_v35, %v2907_v35 }
 0x1d4   : > { %6825 = vst [vmem:[#allocation57_spill] sm:$0xff] %v5346_v57  ;;  %v3190_v52 = vpack.c.b16 %v3162_v7, %v3161_v1  ;;  %v4741_v7 = vld [vmem:[%s6736_s4 + $0x228] sm:$0xff] }
 0x1d5   : > { %v5358_v27 = vpop.f32.mrf.mxu0  ;;  %v5366_v46 = vpop.f32.mrf.mxu1  ;;  %3688 = vmatpush.bf16.msra.mxu1 %v4741_v7  ;;  %v3163_v38 = vunpack.c.l.b16 %v2939_v25  ;;  %v1043_v7 = vld [vmem:[#allocation2 + $0x121] sm:$0xff] }
 0x1d6   : > { %6830 = vst [vmem:[#allocation62_spill] sm:$0xff] %v5358_v27  ;;  %3526 = vmatmul.bf16.gmra.mxu3 %v3093_v60  ;;  %v2873_v60 = vpack.c.bf16 %v2841_v28, %v2841_v28  ;;  %v1297_v27 = vunpack.c.l.b16 %v1073_v34  ;;  %v1044_v34 = vld [vmem:[#allocation2 + $0x129] sm:$0xff] }
 0x1d7   : > { %6832 = vst [vmem:[#allocation64_spill] sm:$0xff] %v5366_v46 }
 0x1d8   : > { %2714 = vmatmul.bf16.gmra.mxu1 %v5356_v29  ;;  %3620 = vmatmul.bf16.gmra.mxu0 %v3190_v52  ;;  %v5364_v56 = vpop.f32.mrf.mxu3  ;;  %v3065_v24 = vunpack.c.l.b16 %v2873_v60 }
 0x1d9   : > { %6831 = vst [vmem:[#allocation63_spill] sm:$0xff] %v5364_v56  ;;  %v3066_v56 = vunpack.c.l.b16 %v2874_v63  ;;  %v2910_v63 = vld [vmem:[#allocation2 + $0xb1] sm:$0xff] }
 0x1db   : > { %v5354_v57 = vpop.f32.mrf.mxu2 }
 0x1dc   : > { %6829 = vst [vmem:[#allocation61_spill] sm:$0xff] %v5354_v57 }
 0x1dd   : > { %v5373_v32 = vpop.f32.mrf.mxu0  ;;  %v5377_v50 = vpop.f32.mrf.mxu1 }
 0x1de   : > { %6834 = vst [vmem:[#allocation66_spill] sm:$0xff] %v5373_v32 }
 0x1df   : > { %6836 = vst [vmem:[#allocation68_spill] sm:$0xff] %v5377_v50 }
 0x1e0   : > { %2268 = vmatmul.bf16.gmra.mxu2 %v3189_v58  ;;  %v1074_v58 = vpack.c.bf16 %v1042_v17, %v1042_v17  ;;  %v5375_v44 = vpop.f32.mrf.mxu3  ;;  %v3094_v17 = vpack.c.b16 %v3066_v56, %v3065_v24 }
 0x1e1   : > { %6835 = vst [vmem:[#allocation67_spill] sm:$0xff] %v5375_v44 }
 0x1e2   : > { %v1298_v57 = vunpack.c.l.b16 %v1074_v58  ;;  %v2844_v58 = vld [vmem:[#allocation2 + $0x98] sm:$0xff] }
 0x1e3   : > { %v5368_v1 = vpop.f32.mrf.mxu2  ;;  %v2876_v56 = vpack.c.bf16 %v2844_v58, %v2844_v58 }
 0x1e4   : > { %6833 = vst [vmem:[#allocation65_spill] sm:$0xff] %v5368_v1  ;;  %v3164_v1 = vunpack.c.l.b16 %v2940_v11  ;;  %v5381_v47 = vpack.c.b16 %v1298_v57, %v1297_v27  ;;  %v2843_v11 = vld [vmem:[#allocation2 + $0x90] sm:$0xff]  ;;  %v1075_v27 = vpack.c.bf16 %v1043_v7, %v1043_v7 }
 0x1e5   : > { %v5383_v55 = vpop.f32.mrf.mxu0  ;;  %v5388_v35 = vpop.f32.mrf.mxu1  ;;  %v2875_v60 = vpack.c.bf16 %v2843_v11, %v2843_v11  ;;  %v1046_v11 = vld [vmem:[#allocation2 + $0x141] sm:$0xff] }
 0x1e6   : > { %6838 = vst [vmem:[#allocation70_spill] sm:$0xff] %v5383_v55  ;;  %v3191_v26 = vpack.c.b16 %v3164_v1, %v3163_v38  ;;  %3531 = vmatmul.bf16.gmra.mxu3 %v3094_v17  ;;  %v1076_v38 = vpack.c.bf16 %v1044_v34, %v1044_v34  ;;  %v2942_v1 = vpack.c.bf16 %v2910_v63, %v2910_v63  ;;  %v1299_v25 = vunpack.c.l.b16 %v1075_v27  ;;  %v4692_v34 = vld [vmem:[%s6736_s4 + $0xa0] sm:$0xff]  ;;  %v2846_v27 = vld [vmem:[#allocation2 + $0xb0] sm:$0xff] }
 0x1e7   : > { %6840 = vst [vmem:[#allocation72_spill] sm:$0xff] %v5388_v35  ;;  %v3068_v17 = vunpack.c.l.b16 %v2876_v56  ;;  %v1045_v63 = vld [vmem:[#allocation2 + $0x139] sm:$0xff]  ;;  %2748 = vmatpush.bf16.msra.mxu2 %v4692_v34  ;;  %v2878_v56 = vpack.c.bf16 %v2846_v27, %v2846_v27 }
 0x1e8   : > { %2719 = vmatmul.bf16.gmra.mxu1 %v5381_v47  ;;  %3625 = vmatmul.bf16.gmra.mxu0 %v3191_v26  ;;  %v5386_v28 = vpop.f32.mrf.mxu3  ;;  %v3166_v32 = vunpack.c.l.b16 %v2942_v1 }
 0x1e9   : > { %6839 = vst [vmem:[#allocation71_spill] sm:$0xff] %v5386_v28 }
 0x1ea   : > { %v3192_v7 = vpack.c.b16 %v3166_v32, %v5288_v23  ;;  %v4740_v23 = vld [vmem:[%s6736_s4 + $0x220] sm:$0xff]  ;;  %v1077_v32 = vpack.c.bf16 %v1045_v63, %v1045_v63  ;;  %v4739_v63 = vld [vmem:[%s6736_s4 + $0x218] sm:$0xff] }
 0x1eb   : > { %v5379_v59 = vpop.f32.mrf.mxu2  ;;  %3689 = vmatpush.bf16.msra.mxu1 %v4740_v23  ;;  %v1047_v23 = vld [vmem:[#allocation2 + $0x151] sm:$0xff] }
 0x1ec   : > { %6837 = vst [vmem:[#allocation69_spill] sm:$0xff] %v5379_v59  ;;  %v3067_v59 = vunpack.c.l.b16 %v2875_v60 }
 0x1ed   : > { %v5392_v24 = vpop.f32.mrf.mxu0  ;;  %v5398_v44 = vpop.f32.mrf.mxu1 }
 0x1ee   : > { %6842 = vst [vmem:[#allocation74_spill] sm:$0xff] %v5392_v24 }
 0x1ef   : > { %6845 = vst [vmem:[#allocation77_spill] sm:$0xff] %v5398_v44  ;;  %3690 = vmatpush.bf16.msra.mxu1 %v4739_v63 }
 0x1f0   : > { %2273 = vmatmul.bf16.gmra.mxu2 %v3190_v52  ;;  %v1300_v52 = vunpack.c.l.b16 %v1076_v38  ;;  %v5394_v55 = vpop.f32.mrf.mxu3 }
 0x1f1   : > { %6843 = vst [vmem:[#allocation75_spill] sm:$0xff] %v5394_v55 }
 0x1f2   : > { %v5400_v16 = vpack.c.b16 %v1300_v52, %v1299_v25  ;;  %v1301_v25 = vunpack.c.l.b16 %v1077_v32  ;;  %v1048_v32 = vld [vmem:[#allocation2 + $0x159] sm:$0xff] }
 0x1f3   : > { %v5390_v57 = vpop.f32.mrf.mxu2 }
 0x1f4   : > { %6841 = vst [vmem:[#allocation73_spill] sm:$0xff] %v5390_v57  ;;  %v3095_v57 = vpack.c.b16 %v3068_v17, %v3067_v59  ;;  %v2845_v59 = vld [vmem:[#allocation2 + $0xa8] sm:$0xff]  ;;  %v3070_v17 = vunpack.c.l.b16 %v2878_v56 }
 0x1f5   : > { %v5402_v24 = vpop.f32.mrf.mxu0  ;;  %v2877_v60 = vpack.c.bf16 %v2845_v59, %v2845_v59 }
 0x1f6   : > { %6846 = vst [vmem:[#allocation78_spill] sm:$0xff] %v5402_v24  ;;  %3536 = vmatmul.bf16.gmra.mxu3 %v3095_v57  ;;  %v1078_v57 = vpack.c.bf16 %v1046_v11, %v1046_v11 }
 0x1f7   : > { %v3069_v24 = vunpack.c.l.b16 %v2877_v60  ;;  %v1079_v60 = vpack.c.bf16 %v1047_v23, %v1047_v23 }
 0x1f8   : > { %2724 = vmatmul.bf16.gmra.mxu1 %v5400_v16  ;;  %3630 = vmatmul.bf16.gmra.mxu0 %v3192_v7  ;;  %v5409_v58 = vpop.f32.mrf.mxu3  ;;  %v1302_v52 = vunpack.c.l.b16 %v1078_v57  ;;  %v2847_v57 = vld [vmem:[#allocation2 + $0xc0] sm:$0xff] }
 0x1f9   : > { %6847 = vst [vmem:[#allocation79_spill] sm:$0xff] %v5409_v58  ;;  %v3096_v58 = vpack.c.b16 %v3070_v17, %v3069_v24  ;;  %v2848_v24 = vld [vmem:[#allocation2 + $0xc8] sm:$0xff]  ;;  %v2879_v17 = vpack.c.bf16 %v2847_v57, %v2847_v57  ;;  %v1303_v63 = vunpack.c.l.b16 %v1079_v60 }
 0x1fb   : > { %v5396_v28 = vpop.f32.mrf.mxu2 }
 0x1fc   : > { %6844 = vst [vmem:[#allocation76_spill] sm:$0xff] %v5396_v28  ;;  %v5424_v28 = vpack.c.b16 %v1302_v52, %v1301_v25  ;;  %v1080_v25 = vpack.c.bf16 %v1048_v32, %v1048_v32  ;;  %v2880_v52 = vpack.c.bf16 %v2848_v24, %v2848_v24  ;;  %v4736_v32 = vld [vmem:[%s6736_s4 + $0x200] sm:$0xff]  ;;  %v4691_v24 = vld [vmem:[%s6736_s4 + $0x98] sm:$0xff] }
 0x1fd   : > { %v5416_v1 = vpop.f32.mrf.mxu0  ;;  %2749 = vmatpush.bf16.msra.mxu2 %v4691_v24 }
 0x1fe   : > { %6849 = vst [vmem:[#allocation81_spill] sm:$0xff] %v5416_v1  ;;  %v3072_v1 = vunpack.c.l.b16 %v2880_v52  ;;  %v1050_v52 = vld [vmem:[#allocation2 + $0x171] sm:$0xff] }
 0x200   : > { %2278 = vmatmul.bf16.gmra.mxu2 %v3191_v26  ;;  %v5418_v26 = vpop.f32.mrf.mxu1  ;;  %v5420_v34 = vpop.f32.mrf.mxu3 }
 0x201   : > { %6850 = vst [vmem:[#allocation82_spill] sm:$0xff] %v5418_v26 }
 0x202   : > { %6851 = vst [vmem:[#allocation83_spill] sm:$0xff] %v5420_v34  ;;  %v3071_v34 = vunpack.c.l.b16 %v2879_v17 }
 0x203   : > { %v5411_v38 = vpop.f32.mrf.mxu2 }
 0x204   : > { %6848 = vst [vmem:[#allocation80_spill] sm:$0xff] %v5411_v38 }
 0x205   : > { %v5430_v11 = vpop.f32.mrf.mxu0 }
 0x206   : > { %3541 = vmatmul.bf16.gmra.mxu3 %v3096_v58  ;;  %6853 = vst [vmem:[#allocation85_spill] sm:$0xff] %v5430_v11  ;;  %v4738_v58 = vld [vmem:[%s6736_s4 + $0x210] sm:$0xff]  ;;  %v1304_v11 = vunpack.c.l.b16 %v1080_v25 }
 0x207   : > { %3691 = vmatpush.bf16.msra.mxu1 %v4738_v58  ;;  %v3097_v58 = vpack.c.b16 %v3072_v1, %v3071_v34  ;;  %v1049_v25 = vld [vmem:[#allocation2 + $0x169] sm:$0xff] }
 0x208   : > { %2729 = vmatmul.bf16.gmra.mxu1 %v5424_v28  ;;  %3635 = vmatmul.bf16.gmra.mxu0 %v5312_v5  ;;  %v5433_v27 = vpop.f32.mrf.mxu1  ;;  %v5435_v59 = vpop.f32.mrf.mxu3  ;;  %v5459_v57 = vpack.c.b16 %v1304_v11, %v1303_v63  ;;  %v1081_v34 = vpack.c.bf16 %v1049_v25, %v1049_v25  ;;  %v1082_v63 = vpack.c.bf16 %v1050_v52, %v1050_v52  ;;  %v2851_v52 = vld [vmem:[#allocation2 + $0xf0] sm:$0xff] }
 0x209   : > { %6854 = vst [vmem:[#allocation86_spill] sm:$0xff] %v5433_v27 }
 0x20a   : > { %6855 = vst [vmem:[#allocation87_spill] sm:$0xff] %v5435_v59 }
 0x20b   : > { %v5422_v38 = vpop.f32.mrf.mxu2 }
 0x20c   : > { %6852 = vst [vmem:[#allocation84_spill] sm:$0xff] %v5422_v38 }
 0x20d   : > { %v5447_v59 = vpop.f32.mrf.mxu0 }
 0x20e   : > { %6858 = vst [vmem:[#allocation90_spill] sm:$0xff] %v5447_v59  ;;  %v2849_v59 = vld [vmem:[#allocation2 + $0xd8] sm:$0xff] }
 0x20f   : > { %v2881_v24 = vpack.c.bf16 %v2849_v59, %v2849_v59  ;;  %v2963_v59 = vld [vmem:[#allocation2 + $0x32] sm:$0xff] }
 0x210   : > { %2283 = vmatmul.bf16.gmra.mxu2 %v3192_v7  ;;  %v4737_v7 = vld [vmem:[%s6736_s4 + $0x208] sm:$0xff]  ;;  %v5445_v38 = vpop.f32.mrf.mxu3 }
 0x211   : > { %6857 = vst [vmem:[#allocation89_spill] sm:$0xff] %v5445_v38  ;;  %3692 = vmatpush.bf16.msra.mxu1 %v4737_v7  ;;  %v2850_v7 = vld [vmem:[#allocation2 + $0xe0] sm:$0xff] }
 0x213   : > { %v5437_v56 = vpop.f32.mrf.mxu2 }
 0x214   : > { %6856 = vst [vmem:[#allocation88_spill] sm:$0xff] %v5437_v56  ;;  %v5449_v56 = vpop.f32.mrf.mxu1 }
 0x215   : > { %6859 = vst [vmem:[#allocation91_spill] sm:$0xff] %v5449_v56  ;;  %3693 = vmatpush.bf16.msra.mxu1 %v4736_v32  ;;  %v5466_v17 = vpop.f32.mrf.mxu0  ;;  %v2882_v32 = vpack.c.bf16 %v2850_v7, %v2850_v7  ;;  %v2852_v7 = vld [vmem:[#allocation2 + $0xf8] sm:$0xff] }
 0x216   : > { %3546 = vmatmul.bf16.gmra.mxu3 %v3097_v58  ;;  %6862 = vst [vmem:[#allocation94_spill] sm:$0xff] %v5466_v17  ;;  %v1305_v58 = vunpack.c.l.b16 %v1081_v34  ;;  %v2964_v34 = vld [vmem:[#allocation2 + $0x3a] sm:$0xff] }
 0x217   : > { %v3074_v38 = vunpack.c.l.b16 %v2882_v32  ;;  %v2996_v32 = vpack.c.bf16 %v2964_v34, %v2964_v34 }
 0x218   : > { %2734 = vmatmul.bf16.gmra.mxu1 %v5459_v57  ;;  %3640 = vmatmul.bf16.gmra.mxu0 %v5337_v31  ;;  %v5464_v60 = vpop.f32.mrf.mxu3 }
 0x219   : > { %6861 = vst [vmem:[#allocation93_spill] sm:$0xff] %v5464_v60  ;;  %v3073_v60 = vunpack.c.l.b16 %v2881_v24 }
 0x21b   : > { %v5451_v23 = vpop.f32.mrf.mxu2  ;;  %v3098_v17 = vpack.c.b16 %v3074_v38, %v3073_v60  ;;  %v2883_v38 = vpack.c.bf16 %v2851_v52, %v2851_v52  ;;  %v2884_v60 = vpack.c.bf16 %v2852_v7, %v2852_v7 }
 0x21c   : > { %6860 = vst [vmem:[#allocation92_spill] sm:$0xff] %v5451_v23  ;;  %v5470_v1 = vpop.f32.mrf.mxu1  ;;  %v1306_v23 = vunpack.c.l.b16 %v1082_v63  ;;  %v2995_v63 = vpack.c.bf16 %v2963_v59, %v2963_v59  ;;  %v2965_v59 = vld [vmem:[#allocation2 + $0x4a] sm:$0xff] }
 0x21d   : > { %6864 = vst [vmem:[#allocation96_spill] sm:$0xff] %v5470_v1  ;;  %v5478_v27 = vpop.f32.mrf.mxu0 }
 0x21e   : > { %v5476_v56 = vpack.c.b16 %v1306_v23, %v1305_v58  ;;  %6867 = vst [vmem:[#allocation99_spill] sm:$0xff] %v5478_v27  ;;  %v3076_v27 = vunpack.c.l.b16 %v2884_v60  ;;  %v2854_v60 = vld [vmem:[#allocation2 + $0x110] sm:$0xff] }
 0x220   : > { %2288 = vmatmul.bf16.gmra.mxu2 %v5312_v5  ;;  %v5472_v5 = vpop.f32.mrf.mxu3 }
 0x221   : > { %6865 = vst [vmem:[#allocation97_spill] sm:$0xff] %v5472_v5  ;;  %v3252_v5 = vunpack.c.l.b16 %v2996_v32 }
 0x223   : > { %v5468_v11 = vpop.f32.mrf.mxu2 }
 0x224   : > { %6863 = vst [vmem:[#allocation95_spill] sm:$0xff] %v5468_v11  ;;  %v5480_v11 = vpop.f32.mrf.mxu1 }
 0x225   : > { %6868 = vst [vmem:[#allocation100_spill] sm:$0xff] %v5480_v11  ;;  %v3606_v24 = vpop.f32.mrf.mxu0 }
 0x226   : > { %3551 = vmatmul.bf16.gmra.mxu3 %v3098_v17  ;;  %v3075_v17 = vunpack.c.l.b16 %v2883_v38  ;;  %v2853_v38 = vld [vmem:[#allocation2 + $0x108] sm:$0xff] }
 0x228   : > { %2739 = vmatmul.bf16.gmra.mxu1 %v5476_v56  ;;  %3645 = vmatmul.bf16.gmra.mxu0 %v5356_v29  ;;  %v5485_v25 = vpop.f32.mrf.mxu3  ;;  %v3099_v1 = vpack.c.b16 %v3076_v27, %v3075_v17  ;;  %v2885_v27 = vpack.c.bf16 %v2853_v38, %v2853_v38 }
 0x229   : > { %6869 = vst [vmem:[#allocation101_spill] sm:$0xff] %v5485_v25  ;;  %v4690_v25 = vld [vmem:[%s6736_s4 + $0x90] sm:$0xff] }
 0x22a   : > { %2750 = vmatpush.bf16.msra.mxu2 %v4690_v25  ;;  %v3077_v17 = vunpack.c.l.b16 %v2885_v27 }
 0x22b   : > { %v5474_v55 = vpop.f32.mrf.mxu2 }
 0x22c   : > { %6866 = vst [vmem:[#allocation98_spill] sm:$0xff] %v5474_v55  ;;  %v5489_v58 = vpop.f32.mrf.mxu1  ;;  %v3251_v55 = vunpack.c.l.b16 %v2995_v63  ;;  %v2966_v63 = vld [vmem:[#allocation2 + $0x52] sm:$0xff] }
 0x22d   : > { %6870 = vst [vmem:[#allocation102_spill] sm:$0xff] %v5489_v58  ;;  %v3608_v7 = vpop.f32.mrf.mxu0  ;;  %v2998_v25 = vpack.c.bf16 %v2966_v63, %v2966_v63 }
 0x22e   : > { %v5498_v52 = vpack.c.b16 %v3252_v5, %v3251_v55  ;;  %v2997_v5 = vpack.c.bf16 %v2965_v59, %v2965_v59  ;;  %v2967_v59 = vld [vmem:[#allocation2 + $0x62] sm:$0xff] }
 0x230   : > { %2293 = vmatmul.bf16.gmra.mxu2 %v5337_v31  ;;  %v5491_v31 = vpop.f32.mrf.mxu3  ;;  %v3253_v26 = vunpack.c.l.b16 %v2997_v5 }
 0x231   : > { %6871 = vst [vmem:[#allocation103_spill] sm:$0xff] %v5491_v31 }
 0x233   : > { %v5487_v23 = vpop.f32.mrf.mxu2 }
 0x234   : > { %v5503_v32 = vpop.f32.mrf.mxu1 }
 0x235   : > { %6872 = vst [vmem:[#allocation104_spill] sm:$0xff] %v5503_v32  ;;  %v3611_v41 = vpop.f32.mrf.mxu0 }
 0x236   : > { %3556 = vmatmul.bf16.gmra.mxu3 %v3099_v1  ;;  %v2886_v1 = vpack.c.bf16 %v2854_v60, %v2854_v60  ;;  %v2855_v60 = vld [vmem:[#allocation2 + $0x120] sm:$0xff] }
 0x238   : > { %3694 = vmatmul.bf16.vlgmr.msra.gmra.mxu1 %v5498_v52  ;;  %3650 = vmatmul.bf16.gmra.mxu0 %v5381_v47  ;;  %v3517_v34 = vpop.f32.mrf.mxu3  ;;  %v3078_v58 = vunpack.c.l.b16 %v2886_v1  ;;  %v2887_v1 = vpack.c.bf16 %v2855_v60, %v2855_v60 }
 0x239   : > { %v5505_v31 = vadd.f32 %v3606_v24, %v3517_v34 }
 0x23a   : > { %v3100_v24 = vpack.c.b16 %v3078_v58, %v3077_v17 }
 0x23b   : > { %v5493_v11 = vpop.f32.mrf.mxu2 }
 0x23c   : > { %v5513_v35 = vpop.f32.mrf.mxu1 }
 0x23d   : > { %6875 = vst [vmem:[#allocation107_spill] sm:$0xff] %v5513_v35 }
 0x240   : > { %2298 = vmatmul.bf16.gmra.mxu2 %v5356_v29  ;;  %v3254_v29 = vunpack.c.l.b16 %v2998_v25  ;;  %v3519_v44 = vpop.f32.mrf.mxu3  ;;  %v3613_v25 = vpop.f32.mrf.mxu0 }
 0x241   : > { %v5509_v54 = vadd.f32 %v3608_v7, %v3519_v44  ;;  %v2856_v44 = vld [vmem:[#allocation2 + $0x128] sm:$0xff] }
 0x242   : > { %v5515_v34 = vpack.c.b16 %v3254_v29, %v3253_v26  ;;  %v2968_v7 = vld [vmem:[#allocation2 + $0x6a] sm:$0xff]  ;;  %v2888_v58 = vpack.c.bf16 %v2856_v44, %v2856_v44  ;;  %v2999_v26 = vpack.c.bf16 %v2967_v59, %v2967_v59  ;;  %v3079_v29 = vunpack.c.l.b16 %v2887_v1  ;;  %v2857_v1 = vld [vmem:[#allocation2 + $0x138] sm:$0xff] }
 0x243   : > { %v5507_v55 = vpop.f32.mrf.mxu2  ;;  %6873 = vst [vmem:[#allocation105_spill] sm:$0xff] %v5509_v54  ;;  %v3000_v5 = vpack.c.bf16 %v2968_v7, %v2968_v7 }
 0x244   : > { %v5524_v17 = vpop.f32.mrf.mxu1  ;;  %v3255_v35 = vunpack.c.l.b16 %v2999_v26  ;;  %v2970_v26 = vld [vmem:[#allocation2 + $0x82] sm:$0xff] }
 0x245   : > { %6878 = vst [vmem:[#allocation110_spill] sm:$0xff] %v5524_v17 }
 0x246   : > { %3561 = vmatmul.bf16.gmra.mxu3 %v3100_v24  ;;  %v3080_v24 = vunpack.c.l.b16 %v2888_v58  ;;  %v2858_v58 = vld [vmem:[#allocation2 + $0x140] sm:$0xff] }
 0x248   : > { %3699 = vmatmul.bf16.gmra.mxu1 %v5515_v34  ;;  %3655 = vmatmul.bf16.gmra.mxu0 %v5400_v16  ;;  %v3616_v59 = vpop.f32.mrf.mxu0 }
 0x249   : > { %v3522_v38 = vpop.f32.mrf.mxu3 }
 0x24a   : > { %v5520_v63 = vadd.f32 %v3611_v41, %v3522_v38  ;;  %v4689_v41 = vld [vmem:[%s6736_s4 + $0x88] sm:$0xff]  ;;  %v3101_v38 = vpack.c.b16 %v3080_v24, %v3079_v29  ;;  %v2890_v29 = vpack.c.bf16 %v2858_v58, %v2858_v58  ;;  %v2860_v58 = vld [vmem:[#allocation2 + $0x158] sm:$0xff] }
 0x24b   : > { %v5511_v48 = vpop.f32.mrf.mxu2  ;;  %2751 = vmatpush.bf16.msra.mxu2 %v4689_v41 }
 0x24c   : > { %6874 = vst [vmem:[#allocation106_spill] sm:$0xff] %v5511_v48  ;;  %v5537_v44 = vpop.f32.mrf.mxu1 }
 0x24d   : > { %6876 = vst [vmem:[#allocation108_spill] sm:$0xff] %v5520_v63 }
 0x24e   : > { %6881 = vst [vmem:[#allocation113_spill] sm:$0xff] %v5537_v44 }
 0x250   : > { %2303 = vmatmul.bf16.gmra.mxu2 %v5381_v47  ;;  %v3256_v47 = vunpack.c.l.b16 %v3000_v5  ;;  %v3618_v44 = vpop.f32.mrf.mxu0 }
 0x251   : > { %v3524_v32 = vpop.f32.mrf.mxu3 }
 0x252   : > { %v5526_v13 = vadd.f32 %v3613_v25, %v3524_v32  ;;  %v5533_v60 = vpack.c.b16 %v3256_v47, %v3255_v35  ;;  %v2969_v32 = vld [vmem:[#allocation2 + $0x7a] sm:$0xff]  ;;  %v2889_v25 = vpack.c.bf16 %v2857_v1, %v2857_v1  ;;  %v3002_v47 = vpack.c.bf16 %v2970_v26, %v2970_v26  ;;  %v2859_v1 = vld [vmem:[#allocation2 + $0x150] sm:$0xff] }
 0x253   : > { %v5522_v27 = vpop.f32.mrf.mxu2  ;;  %v3001_v24 = vpack.c.bf16 %v2969_v32, %v2969_v32  ;;  %v2971_v32 = vld [vmem:[#allocation2 + $0x92] sm:$0xff]  ;;  %v2972_v26 = vld [vmem:[#allocation2 + $0x9a] sm:$0xff] }
 0x254   : > { %6877 = vst [vmem:[#allocation109_spill] sm:$0xff] %v5522_v27  ;;  %v3081_v41 = vunpack.c.l.b16 %v2889_v25  ;;  %v3258_v20 = vunpack.c.l.b16 %v3002_v47 }
 0x255   : > { %6879 = vst [vmem:[#allocation111_spill] sm:$0xff] %v5526_v13  ;;  %v3257_v17 = vunpack.c.l.b16 %v3001_v24 }
 0x256   : > { %3566 = vmatmul.bf16.gmra.mxu3 %v3101_v38  ;;  %v3082_v38 = vunpack.c.l.b16 %v2890_v29  ;;  %v2892_v29 = vpack.c.bf16 %v2860_v58, %v2860_v58  ;;  %v2974_v58 = vld [vmem:[#allocation2 + $0xb2] sm:$0xff] }
 0x258   : > { %3704 = vmatmul.bf16.gmra.mxu1 %v5533_v60  ;;  %3660 = vmatmul.bf16.gmra.mxu0 %v5424_v28  ;;  %v3084_v47 = vunpack.c.l.b16 %v2892_v29  ;;  %v2928_v29 = vld [vmem:[#allocation2 + $0x189] sm:$0xff] }
 0x259   : > { %v3527_v7 = vpop.f32.mrf.mxu3  ;;  %v2960_v53 = vpack.c.bf16 %v2928_v29, %v2928_v29 }
 0x25a   : > { %v5540_v5 = vadd.f32 %v3616_v59, %v3527_v7  ;;  %v3102_v59 = vpack.c.b16 %v3082_v38, %v3081_v41  ;;  %v5550_v7 = vpack.c.b16 %v3258_v20, %v3257_v17  ;;  %v3003_v20 = vpack.c.bf16 %v2971_v32, %v2971_v32  ;;  %v2973_v32 = vld [vmem:[#allocation2 + $0xaa] sm:$0xff] }
 0x25b   : > { %v5528_v22 = vpop.f32.mrf.mxu2  ;;  %v3004_v17 = vpack.c.bf16 %v2972_v26, %v2972_v26  ;;  %v2861_v26 = vld [vmem:[#allocation2 + $0x168] sm:$0xff] }
 0x25c   : > { %6880 = vst [vmem:[#allocation112_spill] sm:$0xff] %v5528_v22  ;;  %v3259_v41 = vunpack.c.l.b16 %v3003_v20  ;;  %v5580_v20 = vld [vmem:[%s5576_s29] sm:$0xff] }
 0x25d   : > { %6882 = vst [vmem:[#allocation114_spill] sm:$0xff] %v5540_v5  ;;  %v3260_v38 = vunpack.c.l.b16 %v3004_v17  ;;  %v5583_v17 = vld [vmem:[%s5576_s29 + $0x8] sm:$0xff]  ;;  %v5644_v5 = vld [vmem:[%s5576_s29 + $0x50] sm:$0xff] }
 0x260   : > { %2308 = vmatmul.bf16.gmra.mxu2 %v5400_v16  ;;  %v5544_v16 = vpop.f32.mrf.mxu1 }
 0x261   : > { %v3529_v50 = vpop.f32.mrf.mxu3  ;;  %6884 = vst [vmem:[#allocation116_spill] sm:$0xff] %v5544_v16 }
 0x262   : > { %v5546_v6 = vadd.f32 %v3618_v44, %v3529_v50  ;;  %v2891_v44 = vpack.c.bf16 %v2859_v1, %v2859_v1 }
 0x263   : > { %v5542_v35 = vpop.f32.mrf.mxu2 }
 0x264   : > { %6883 = vst [vmem:[#allocation115_spill] sm:$0xff] %v5542_v35  ;;  %v3083_v24 = vunpack.c.l.b16 %v2891_v44  ;;  %v2862_v44 = vld [vmem:[#allocation2 + $0x170] sm:$0xff] }
 0x265   : > { %6885 = vst [vmem:[#allocation117_spill] sm:$0xff] %v5546_v6 }
 0x266   : > { %3571 = vmatmul.bf16.gmra.mxu3 %v3102_v59  ;;  %v3103_v16 = vpack.c.b16 %v3084_v47, %v3083_v24  ;;  %v3005_v24 = vpack.c.bf16 %v2973_v32, %v2973_v32 }
 0x268   : > { %3709 = vmatmul.bf16.gmra.mxu1 %v5550_v7  ;;  %3665 = vmatmul.bf16.gmra.mxu0 %v5459_v57  ;;  %v5557_v50 = vpop.f32.mrf.mxu1  ;;  %v3261_v46 = vunpack.c.l.b16 %v3005_v24 }
 0x269   : > { %6888 = vst [vmem:[#allocation120_spill] sm:$0xff] %v5557_v50  ;;  %v5592_v50 = vld [vmem:[%s5576_s29 + $0x10] sm:$0xff] }
 0x26a   : > { %v309_v32 = vsel %vm305_vm3, %v5592_v50, 0.0 }
 0x26b   : > { %v5548_v9 = vpop.f32.mrf.mxu2 }
 0x26c   : > { %6886 = vst [vmem:[#allocation118_spill] sm:$0xff] %v5548_v9  ;;  %v5564_v9 = vpack.c.b16 %v3260_v38, %v3259_v41  ;;  %v306_v41 = vsel %vm305_vm3, %v5580_v20, 0.0  ;;  %v2893_v38 = vpack.c.bf16 %v2861_v26, %v2861_v26 }
 0x270   : > { %2313 = vmatmul.bf16.gmra.mxu2 %v5424_v28  ;;  %v4688_v28 = vld [vmem:[%s6736_s4 + $0x80] sm:$0xff]  ;;  %v5567_v1 = vpop.f32.mrf.mxu1 }
 0x271   : > { %2752 = vmatpush.bf16.msra.mxu2 %v4688_v28  ;;  %6890 = vst [vmem:[#allocation122_spill] sm:$0xff] %v5567_v1  ;;  %v2894_v28 = vpack.c.bf16 %v2862_v44, %v2862_v44  ;;  %v3006_v1 = vpack.c.bf16 %v2974_v58, %v2974_v58  ;;  %v3085_v58 = vunpack.c.l.b16 %v2893_v38 }
 0x273   : > { %v5555_v25 = vpop.f32.mrf.mxu2  ;;  %v3086_v44 = vunpack.c.l.b16 %v2894_v28  ;;  %v3262_v49 = vunpack.c.l.b16 %v3006_v1 }
 0x274   : > { %6887 = vst [vmem:[#allocation119_spill] sm:$0xff] %v5555_v25 }
 0x275   : > { %v3104_v28 = vpack.c.b16 %v3086_v44, %v3085_v58  ;;  %v5615_v1 = vpack.c.b16 %v3262_v49, %v3261_v46  ;;  %v2975_v49 = vld [vmem:[#allocation2 + $0xc2] sm:$0xff] }
 0x276   : > { %3576 = vmatmul.bf16.gmra.mxu3 %v3103_v16  ;;  %v2927_v16 = vld [vmem:[#allocation2 + $0x181] sm:$0xff] }
 0x277   : > { %v2959_v25 = vpack.c.bf16 %v2927_v16, %v2927_v16  ;;  %v5630_v46 = vld [vmem:[%s5576_s29 + $0x40] sm:$0xff] }
 0x278   : > { %3714 = vmatmul.bf16.gmra.mxu1 %v5564_v9  ;;  %3670 = vmatmul.bf16.gmra.mxu0 %v5476_v56  ;;  %v5601_v26 = vpop.f32.mrf.mxu1 }
 0x279   : > { %6892 = vst [vmem:[#allocation124_spill] sm:$0xff] %v5601_v26  ;;  %v3183_v29 = vunpack.c.l.b16 %v2959_v25  ;;  %v5618_v26 = vld [vmem:[%s5576_s29 + $0x30] sm:$0xff] }
 0x27b   : > { %v5559_v59 = vpop.f32.mrf.mxu2 }
 0x27c   : > { %6889 = vst [vmem:[#allocation121_spill] sm:$0xff] %v5559_v59 }
 0x280   : > { %2318 = vmatmul.bf16.gmra.mxu2 %v5459_v57  ;;  %v307_v57 = vsel %vm305_vm3, %v5583_v17, 0.0 }
 0x281   : > { %v308_v59 = vadd.f32 %v307_v57, %v306_v41  ;;  %v5604_v41 = vld [vmem:[%s5576_s29 + $0x20] sm:$0xff]  ;;  %v3184_v57 = vunpack.c.l.b16 %v2960_v53  ;;  %v317_v53 = vsel %vm305_vm3, %v5618_v26, 0.0 }
 0x282   : > { %v313_v35 = vsel %vm305_vm3, %v5604_v41, 0.0 }
 0x283   : > { %v5585_v47 = vpop.f32.mrf.mxu2  ;;  %v310_v6 = vadd.f32 %v309_v32, %v308_v59  ;;  %v5609_v59 = vld [vmem:[%s5576_s29 + $0x28] sm:$0xff] }
 0x284   : > { %6891 = vst [vmem:[#allocation123_spill] sm:$0xff] %v5585_v47  ;;  %v5597_v47 = vld [vmem:[%s5576_s29 + $0x18] sm:$0xff]  ;;  %v315_v38 = vsel %vm305_vm3, %v5609_v59, 0.0 }
 0x285   : > { %v311_v45 = vsel %vm305_vm3, %v5597_v47, 0.0 }
 0x286   : > { %v312_v16 = vadd.f32 %v311_v45, %v310_v6  ;;  %v3201_v6 = vpack.c.b16 %v3184_v57, %v3183_v29  ;;  %3581 = vmatmul.bf16.gmra.mxu3 %v3104_v28  ;;  %v2864_v29 = vld [vmem:[#allocation2 + $0x188] sm:$0xff] }
 0x287   : > { %v2976_v57 = vld [vmem:[#allocation2 + $0xca] sm:$0xff] }
 0x288   : > { %v314_v24 = vadd.f32 %v313_v35, %v312_v16  ;;  %3719 = vmatmul.bf16.gmra.mxu1 %v5615_v1  ;;  %v5624_v35 = vld [vmem:[%s5576_s29 + $0x38] sm:$0xff]  ;;  %3675 = vmatmul.bf16.gmra.mxu0 %v3201_v6  ;;  %v2863_v16 = vld [vmem:[#allocation2 + $0x180] sm:$0xff]  ;;  %v5637_v28 = vld [vmem:[%s5576_s29 + $0x48] sm:$0xff]  ;;  %v3008_v36 = vpack.c.bf16 %v2976_v57, %v2976_v57 }
 0x289   : > { %v319_v58 = vsel %vm305_vm3, %v5624_v35, 0.0 }
 0x28a   : > { %v316_v45 = vadd.f32 %v315_v38, %v314_v24  ;;  %v321_v24 = vsel %vm305_vm3, %v5630_v46, 0.0  ;;  %v5634_v38 = vpop.f32.mrf.mxu1 }
 0x28b   : > { %v5611_v32 = vpop.f32.mrf.mxu2  ;;  %6894 = vst [vmem:[#allocation126_spill] sm:$0xff] %v5634_v38  ;;  %v325_v38 = vsel %vm305_vm3, %v5644_v5, 0.0 }
 0x28c   : > { %6893 = vst [vmem:[#allocation125_spill] sm:$0xff] %v5611_v32  ;;  %v318_v25 = vadd.f32 %v317_v53, %v316_v45  ;;  %v3007_v53 = vpack.c.bf16 %v2975_v49, %v2975_v49  ;;  %v323_v32 = vsel %vm305_vm3, %v5637_v28, 0.0 }
 0x28e   : > { %v320_v44 = vadd.f32 %v319_v58, %v318_v25  ;;  %v2895_v25 = vpack.c.bf16 %v2863_v16, %v2863_v16  ;;  %v2896_v58 = vpack.c.bf16 %v2864_v29, %v2864_v29  ;;  %v3263_v49 = vunpack.c.l.b16 %v3007_v53  ;;  %v5654_v29 = vld [vmem:[%s5576_s29 + $0x60] sm:$0xff] }
 0x28f   : > { %v3264_v16 = vunpack.c.l.b16 %v3008_v36 }
 0x290   : > { %2323 = vmatmul.bf16.gmra.mxu2 %v5476_v56  ;;  %v322_v45 = vadd.f32 %v321_v24, %v320_v44  ;;  %v327_v24 = vsel %vm305_vm3, %v5649_v8, 0.0  ;;  %v3088_v37 = vunpack.c.l.b16 %v2896_v58  ;;  %v5670_v58 = vld [vmem:[%s5576_s29 + $0x70] sm:$0xff] }
 0x291   : > { %v5667_v36 = vpack.c.b16 %v3264_v16, %v3263_v49  ;;  %v2978_v16 = vld [vmem:[#allocation2 + $0xe2] sm:$0xff] }
 0x292   : > { %v324_v42 = vadd.f32 %v323_v32, %v322_v45  ;;  %v329_v32 = vsel %vm305_vm3, %v5654_v29, 0.0  ;;  %v5659_v45 = vld [vmem:[%s5576_s29 + $0x68] sm:$0xff]  ;;  %v5665_v53 = vpop.f32.mrf.mxu1  ;;  %v3010_v13 = vpack.c.bf16 %v2978_v16, %v2978_v16 }
 0x293   : > { %v5639_v56 = vpop.f32.mrf.mxu2  ;;  %6897 = vst [vmem:[#allocation129_spill] sm:$0xff] %v5665_v53  ;;  %v5686_v53 = vld [vmem:[%s5576_s29 + $0x88] sm:$0xff] }
 0x294   : > { %6895 = vst [vmem:[#allocation127_spill] sm:$0xff] %v5639_v56  ;;  %v326_v44 = vadd.f32 %v325_v38, %v324_v42  ;;  %v3087_v56 = vunpack.c.l.b16 %v2895_v25  ;;  %v331_v38 = vsel %vm305_vm3, %v5659_v45, 0.0  ;;  %v3266_v16 = vunpack.c.l.b16 %v3010_v13 }
 0x296   : > { %v328_v57 = vadd.f32 %v327_v24, %v326_v44  ;;  %v3105_v25 = vpack.c.b16 %v3088_v37, %v3087_v56  ;;  %v333_v24 = vsel %vm305_vm3, %v5670_v58, 0.0  ;;  %v2977_v37 = vld [vmem:[#allocation2 + $0xda] sm:$0xff] }
 0x297   : > { %v5681_v56 = vld [vmem:[%s5576_s29 + $0x80] sm:$0xff] }
 0x298   : > { %v330_v22 = vadd.f32 %v329_v32, %v328_v57  ;;  %3586 = vmatmul.bf16.gmra.mxu3 %v3105_v25  ;;  %3724 = vmatmul.bf16.gmra.mxu1 %v5667_v36  ;;  %v5676_v57 = vld [vmem:[%s5576_s29 + $0x78] sm:$0xff]  ;;  %v337_v25 = vsel %vm305_vm3, %v5681_v56, 0.0 }
 0x29a   : > { %v332_v44 = vadd.f32 %v331_v38, %v330_v22  ;;  %v1083_v22 = vld [vmem:[#allocation2 + $0x2] sm:$0xff]  ;;  %v1084_v38 = vld [vmem:[#allocation2 + $0xa] sm:$0xff]  ;;  %v5697_v27 = vpop.f32.mrf.mxu1 }
 0x29b   : > { %v5661_v42 = vpop.f32.mrf.mxu2  ;;  %v1115_v51 = vpack.c.bf16 %v1083_v22, %v1083_v22  ;;  %6899 = vst [vmem:[#allocation131_spill] sm:$0xff] %v5697_v27  ;;  %v5710_v27 = vld [vmem:[%s5576_s29 + $0xa8] sm:$0xff] }
 0x29c   : > { %6896 = vst [vmem:[#allocation128_spill] sm:$0xff] %v5661_v42  ;;  %v334_v32 = vadd.f32 %v333_v24, %v332_v44  ;;  %v335_v42 = vsel %vm305_vm3, %v5676_v57, 0.0  ;;  %v3009_v44 = vpack.c.bf16 %v2977_v37, %v2977_v37 }
 0x29d   : > { %v1371_v22 = vunpack.c.l.b16 %v1115_v51  ;;  %v5719_v51 = vld [vmem:[%s5576_s29 + $0xb0] sm:$0xff] }
 0x29e   : > { %v336_v49 = vadd.f32 %v335_v42, %v334_v32  ;;  %v1116_v42 = vpack.c.bf16 %v1084_v38, %v1084_v38  ;;  %v5693_v32 = vld [vmem:[%s5576_s29 + $0x90] sm:$0xff] }
 0x29f   : > { %v341_v14 = vsel %vm305_vm3, %v5693_v32, 0.0 }
 0x2a0   : > { %2328 = vmatmul.bf16.gmra.mxu2 %v3201_v6  ;;  %v338_v19 = vadd.f32 %v337_v25, %v336_v49  ;;  %v339_v6 = vsel %vm305_vm3, %v5686_v53, 0.0  ;;  %v5700_v49 = vld [vmem:[%s5576_s29 + $0x98] sm:$0xff]  ;;  %v3265_v25 = vunpack.c.l.b16 %v3009_v44  ;;  %v1372_v38 = vunpack.c.l.b16 %v1116_v42 }
 0x2a1   : > { %v5725_v42 = vld [vmem:[%s5576_s29 + $0xb8] sm:$0xff] }
 0x2a2   : > { %v340_v12 = vadd.f32 %v339_v6, %v338_v19  ;;  %v345_v6 = vsel %vm305_vm3, %v5705_v3, 0.0  ;;  %v1403_v13 = vpack.c.b16 %v1372_v38, %v1371_v22  ;;  %v2979_v22 = vld [vmem:[#allocation2 + $0xf2] sm:$0xff] }
 0x2a3   : > { %v5688_v24 = vpop.f32.mrf.mxu2 }
 0x2a4   : > { %6898 = vst [vmem:[#allocation130_spill] sm:$0xff] %v5688_v24  ;;  %v342_v37 = vadd.f32 %v341_v14, %v340_v12  ;;  %v343_v24 = vsel %vm305_vm3, %v5700_v49, 0.0  ;;  %v347_v14 = vsel %vm305_vm3, %v5710_v27, 0.0  ;;  %v5716_v12 = vpack.c.b16 %v3266_v16, %v3265_v25  ;;  %v5732_v25 = vld [vmem:[%s5576_s29 + $0xc0] sm:$0xff] }
 0x2a5   : > { %6903 = vst [vmem:[#allocation135_spill] sm:$0xff] %v5732_v25  ;;  %v353_v38 = vsel %vm305_vm3, %v5732_v25, 0.0 }
 0x2a6   : > { %v344_v19 = vadd.f32 %v343_v24, %v342_v37  ;;  %6901 = vst [vmem:[#allocation133_spill] sm:$0xff] %v5716_v12  ;;  %v349_v24 = vsel %vm305_vm3, %v5719_v51, 0.0 }
 0x2a8   : > { %v346_v63 = vadd.f32 %v345_v6, %v344_v19  ;;  %3729 = vmatmul.bf16.gmra.mxu1 %v5716_v12  ;;  %v351_v19 = vsel %vm305_vm3, %v5725_v42, 0.0  ;;  %v5729_v6 = vpop.f32.mrf.mxu1 }
 0x2a9   : > { %6902 = vst [vmem:[#allocation134_spill] sm:$0xff] %v5729_v6  ;;  %v3011_v6 = vpack.c.bf16 %v2979_v22, %v2979_v22  ;;  %v5754_v22 = vld [vmem:[%s5576_s29 + $0xe0] sm:$0xff] }
 0x2aa   : > { %v348_v44 = vadd.f32 %v347_v14, %v346_v63  ;;  %v2980_v63 = vld [vmem:[#allocation2 + $0xfa] sm:$0xff]  ;;  %v5737_v14 = vld [vmem:[%s5576_s29 + $0xc8] sm:$0xff]  ;;  %6908 = vst [vmem:[#allocation140_spill] sm:$0xff] %v5754_v22 }
 0x2ab   : > { %v5712_v61 = vpop.f32.mrf.mxu2  ;;  %6904 = vst [vmem:[#allocation136_spill] sm:$0xff] %v5737_v14  ;;  %v3012_v12 = vpack.c.bf16 %v2980_v63, %v2980_v63  ;;  %v3267_v25 = vunpack.c.l.b16 %v3011_v6 }
 0x2ac   : > { %6900 = vst [vmem:[#allocation132_spill] sm:$0xff] %v5712_v61  ;;  %v350_v37 = vadd.f32 %v349_v24, %v348_v44  ;;  %v1085_v24 = vld [vmem:[#allocation2 + $0x1a] sm:$0xff] }
 0x2ad   : > { %v1117_v48 = vpack.c.bf16 %v1085_v24, %v1085_v24 }
 0x2ae   : > { %v352_v16 = vadd.f32 %v351_v19, %v350_v37  ;;  %v5744_v37 = vld [vmem:[%s5576_s29 + $0xd0] sm:$0xff] }
 0x2af   : > { %6906 = vst [vmem:[#allocation138_spill] sm:$0xff] %v5744_v37  ;;  %v357_v2 = vsel %vm305_vm3, %v5744_v37, 0.0  ;;  %v1373_v24 = vunpack.c.l.b16 %v1117_v48  ;;  %v5761_v37 = vld [vmem:[%s5576_s29 + $0xe8] sm:$0xff] }
 0x2b0   : > { %2753 = vmatmul.bf16.vlgmr.msra.gmra.mxu2 %v1403_v13  ;;  %v354_v61 = vadd.f32 %v353_v38, %v352_v16  ;;  %v355_v13 = vsel %vm305_vm3, %v5737_v14, 0.0  ;;  %v5749_v16 = vld [vmem:[%s5576_s29 + $0xd8] sm:$0xff]  ;;  %v3268_v14 = vunpack.c.l.b16 %v3012_v12  ;;  %6910 = vst [vmem:[#allocation142_spill] sm:$0xff] %v5761_v37  ;;  %v363_v6 = vsel %vm305_vm3, %v5761_v37, 0.0 }
 0x2b1   : > { %6907 = vst [vmem:[#allocation139_spill] sm:$0xff] %v5749_v16  ;;  %v1404_v48 = vpack.c.b16 %v1374_v62, %v1373_v24 }
 0x2b2   : > { %v356_v19 = vadd.f32 %v355_v13, %v354_v61  ;;  %v361_v61 = vsel %vm305_vm3, %v5754_v22, 0.0  ;;  %v5758_v13 = vpop.f32.mrf.mxu1  ;;  %v5767_v12 = vpack.c.b16 %v3268_v14, %v3267_v25  ;;  %v2981_v14 = vld [vmem:[#allocation2 + $0x10a] sm:$0xff] }
 0x2b3   : > { %v5739_v44 = vpop.f32.mrf.mxu2  ;;  %6909 = vst [vmem:[#allocation141_spill] sm:$0xff] %v5758_v13 }
 0x2b4   : > { %6905 = vst [vmem:[#allocation137_spill] sm:$0xff] %v5739_v44  ;;  %v358_v38 = vadd.f32 %v357_v2, %v356_v19  ;;  %v359_v44 = vsel %vm305_vm3, %v5749_v16, 0.0  ;;  %v5770_v19 = vld [vmem:[%s5576_s29 + $0xf0] sm:$0xff] }
 0x2b5   : > { %6912 = vst [vmem:[#allocation144_spill] sm:$0xff] %v5767_v12 }
 0x2b6   : > { %v360_v63 = vadd.f32 %v359_v44, %v358_v38  ;;  %6913 = vst [vmem:[#allocation145_spill] sm:$0xff] %v5770_v19  ;;  %v365_v38 = vsel %vm305_vm3, %v5770_v19, 0.0 }
 0x2b8   : > { %v362_v54 = vadd.f32 %v361_v61, %v360_v63  ;;  %3734 = vmatmul.bf16.gmra.mxu1 %v5767_v12  ;;  %v367_v63 = vsel %vm305_vm3, %v5776_v43, 0.0  ;;  %v4785_v61 = vmov 256.0  }
 0x2b9   : > { %4768 = vrcp.f32 %v4785_v61 }
 0x2ba   : > { %v364_v44 = vadd.f32 %v363_v6, %v362_v54  ;;  %v5782_v54 = vpop.f32.mrf.mxu1  ;;  %v3013_v6 = vpack.c.bf16 %v2981_v14, %v2981_v14 }
 0x2bb   : > { %v5763_v2 = vpop.f32.mrf.mxu2  ;;  %6916 = vst [vmem:[#allocation148_spill] sm:$0xff] %v5782_v54  ;;  %v2984_v54 = vld [vmem:[#allocation2 + $0x12a] sm:$0xff] }
 0x2bc   : > { %6911 = vst [vmem:[#allocation143_spill] sm:$0xff] %v5763_v2  ;;  %v366_v13 = vadd.f32 %v365_v38, %v364_v44  ;;  %v2982_v2 = vld [vmem:[#allocation2 + $0x112] sm:$0xff]  ;;  %v3269_v62 = vunpack.c.l.b16 %v3013_v6 }
 0x2bd   : > { %v3014_v19 = vpack.c.bf16 %v2982_v2, %v2982_v2  ;;  %v2983_v2 = vld [vmem:[#allocation2 + $0x122] sm:$0xff] }
 0x2be   : > { %v368_v25 = vadd.f32 %v367_v63, %v366_v13 }
 0x2bf   : > { %v4769_v24 = vpop.eup %4768  ;;  %v3270_v22 = vunpack.c.l.b16 %v3014_v19  ;;  %v3016_v19 = vpack.c.bf16 %v2984_v54, %v2984_v54  ;;  %v2986_v54 = vld [vmem:[#allocation2 + $0x142] sm:$0xff] }
 0x2c0   : > { %2758 = vmatmul.bf16.gmra.mxu2 %v1404_v48  ;;  %v369_v12 = vrot.slane %v368_v25, 4  ;;  %v376_v38 = vmul.f32 256.0, %v4769_v24  ;;  %vm380_vm4 = vweird.f32 %v4769_v24 }
 0x2c1   : > { %v5786_v48 = vpack.c.b16 %v3270_v22, %v3269_v62 }
 0x2c2   : > { %v370_v44 = vadd.f32 %v369_v12, %v368_v25  ;;  %v377_v13 = vsub.f32 1.0, %v376_v38  ;;  %v5788_v63 = vpop.f32.mrf.mxu1  ;;  %v3015_v12 = vpack.c.bf16 %v2983_v2, %v2983_v2  ;;  %v3272_v38 = vunpack.c.l.b16 %v3016_v19 }
 0x2c3   : > { %v5780_v37 = vpop.f32.mrf.mxu2  ;;  %6918 = vst [vmem:[#allocation150_spill] sm:$0xff] %v5786_v48 }
 0x2c4   : > { %6915 = vst [vmem:[#allocation147_spill] sm:$0xff] %v5780_v37  ;;  %v371_v61 = vrot.slane %v370_v44, 2  ;;  %v378_v37 = vmul.f32 %v4769_v24, %v377_v13  ;;  %v3271_v62 = vunpack.c.l.b16 %v3015_v12 }
 0x2c5   : > { %6919 = vst [vmem:[#allocation151_spill] sm:$0xff] %v5788_v63 }
 0x2c6   : > { %v372_v14 = vadd.f32 %v371_v61, %v370_v44 }
 0x2c8   : > { %3739 = vmatmul.bf16.gmra.mxu1 %v5786_v48  ;;  %v373_v25 = vrot.slane %v372_v14, 1 }
 0x2ca   : > { %v5794_v22 = vpop.f32.mrf.mxu1  ;;  %v374_v63 = vadd.f32 %v373_v25, %v372_v14  ;;  %v3018_v14 = vpack.c.bf16 %v2986_v54, %v2986_v54 }
 0x2cb   : > { %v5784_v16 = vpop.f32.mrf.mxu2  ;;  %6920 = vst [vmem:[#allocation152_spill] sm:$0xff] %v5794_v22 }
 0x2cc   : > { %6917 = vst [vmem:[#allocation149_spill] sm:$0xff] %v5784_v16  ;;  %v379_v16 = vadd.f32 %v4769_v24, %v378_v37  ;;  %v2985_v37 = vld [vmem:[#allocation2 + $0x13a] sm:$0xff]  ;;  %v3274_v19 = vunpack.c.l.b16 %v3018_v14 }
 0x2cd   : > { %v3017_v13 = vpack.c.bf16 %v2985_v37, %v2985_v37 }
 0x2ce   : > { %v5796_v43 = vsel %vm380_vm4, %v4769_v24, %v379_v16 }
 0x2cf   : > { %v5803_v44 = vmul.f32 %v5796_v43, %v374_v63  ;;  %v3273_v12 = vunpack.c.l.b16 %v3017_v13 }
 0x2d0   : > { %2763 = vmatmul.bf16.gmra.mxu2 %v5498_v52  ;;  %v5800_v52 = vpack.c.b16 %v3272_v38, %v3271_v62 }
 0x2d1   : > { %v5809_v61 = vsub.f32 %v5580_v20, %v5803_v44  ;;  %v5813_v16 = vsub.f32 %v5583_v17, %v5803_v44  ;;  %v5821_v2 = vsub.f32 %v5592_v50, %v5803_v44  ;;  %v5829_v17 = vsub.f32 %v5597_v47, %v5803_v44 }
 0x2d2   : > { %v5815_v24 = vpop.f32.mrf.mxu1  ;;  %v5843_v13 = vsub.f32 %v5604_v41, %v5803_v44 }
 0x2d3   : > { %v5792_v6 = vpop.f32.mrf.mxu2  ;;  %6922 = vst [vmem:[#allocation154_spill] sm:$0xff] %v5815_v24  ;;  %v416_v20 = vmul.f32 %v5813_v16, %v5813_v16  ;;  %v417_v25 = vmul.f32 %v5821_v2, %v5821_v2  ;;  %v5839_v24 = vpack.c.b16 %v3274_v19, %v3273_v12  ;;  %v418_v47 = vmul.f32 %v5829_v17, %v5829_v17  ;;  %v2988_v19 = vld [vmem:[#allocation2 + $0x15a] sm:$0xff] }
 0x2d4   : > { %v419_v12 = vmul.f32 %v5843_v13, %v5843_v13 }
 0x2d5   : > { %v448_v50 = vsel %vm305_vm3, %v416_v20, 0.0  ;;  %v450_v14 = vsel %vm305_vm3, %v417_v25, 0.0  ;;  %v2987_v20 = vld [vmem:[#allocation2 + $0x152] sm:$0xff]  ;;  %v452_v41 = vsel %vm305_vm3, %v418_v47, 0.0 }
 0x2d8   : > { %3744 = vmatmul.bf16.gmra.mxu1 %v5800_v52 }
 0x2da   : > { %v5837_v54 = vpop.f32.mrf.mxu1 }
 0x2db   : > { %v5798_v48 = vpop.f32.mrf.mxu2 }
 0x2dc   : > { %6921 = vst [vmem:[#allocation153_spill] sm:$0xff] %v5798_v48 }
 0x2e0   : > { %2768 = vmatmul.bf16.gmra.mxu2 %v5515_v34  ;;  %v415_v34 = vmul.f32 %v5809_v61, %v5809_v61 }
 0x2e2   : > { %v447_v62 = vsel %vm305_vm3, %v415_v34, 0.0 }
 0x2e3   : > { %v5817_v63 = vpop.f32.mrf.mxu2  ;;  %v449_v37 = vadd.f32 %v448_v50, %v447_v62  ;;  %v5852_v62 = vsub.f32 %v5609_v59, %v5803_v44  ;;  %v3019_v50 = vpack.c.bf16 %v2987_v20, %v2987_v20  ;;  %v454_v59 = vsel %vm305_vm3, %v419_v12, 0.0 }
 0x2e4   : > { %6923 = vst [vmem:[#allocation155_spill] sm:$0xff] %v5817_v63  ;;  %v5870_v20 = vsub.f32 %v5624_v35, %v5803_v44  ;;  %v5881_v12 = vsub.f32 %v5630_v46, %v5803_v44 }
 0x2e5   : > { %v451_v34 = vadd.f32 %v450_v14, %v449_v37  ;;  %v5861_v37 = vsub.f32 %v5618_v26, %v5803_v44  ;;  %v5866_v14 = vpop.f32.mrf.mxu1  ;;  %v3275_v63 = vunpack.c.l.b16 %v3019_v50 }
 0x2e6   : > { %6927 = vst [vmem:[#allocation159_spill] sm:$0xff] %v5870_v20  ;;  %v423_v46 = vmul.f32 %v5881_v12, %v5881_v12 }
 0x2e7   : > { %v453_v25 = vadd.f32 %v452_v41, %v451_v34  ;;  %6926 = vst [vmem:[#allocation158_spill] sm:$0xff] %v5861_v37  ;;  %v421_v34 = vmul.f32 %v5861_v37, %v5861_v37 }
 0x2e8   : > { %3749 = vmatmul.bf16.gmra.mxu1 %v5839_v24 }
 0x2e9   : > { %v455_v48 = vadd.f32 %v454_v59, %v453_v25  ;;  %v458_v35 = vsel %vm305_vm3, %v421_v34, 0.0  ;;  %v2990_v59 = vld [vmem:[#allocation2 + $0x172] sm:$0xff] }
 0x2eb   : > { %v5835_v38 = vpop.f32.mrf.mxu2 }
 0x2ec   : > { %6924 = vst [vmem:[#allocation156_spill] sm:$0xff] %v5835_v38  ;;  %v3020_v38 = vpack.c.bf16 %v2988_v19, %v2988_v19 }
 0x2ed   : > { %v5887_v25 = vpop.f32.mrf.mxu1 }
 0x2ee   : > { %v3276_v47 = vunpack.c.l.b16 %v3020_v38  ;;  %v422_v38 = vmul.f32 %v5870_v20, %v5870_v20 }
 0x2f0   : > { %2773 = vmatmul.bf16.gmra.mxu2 %v5533_v60  ;;  %v420_v60 = vmul.f32 %v5852_v62, %v5852_v62 }
 0x2f2   : > { %v456_v26 = vsel %vm305_vm3, %v420_v60, 0.0  ;;  %v2989_v60 = vld [vmem:[#allocation2 + $0x16a] sm:$0xff] }
 0x2f3   : > { %v5857_v22 = vpop.f32.mrf.mxu2  ;;  %v457_v19 = vadd.f32 %v456_v26, %v455_v48  ;;  %v5892_v48 = vsub.f32 %v5637_v28, %v5803_v44  ;;  %v462_v28 = vsel %vm305_vm3, %v423_v46, 0.0  ;;  %v5921_v46 = vsub.f32 %v5654_v29, %v5803_v44 }
 0x2f4   : > { %6925 = vst [vmem:[#allocation157_spill] sm:$0xff] %v5857_v22  ;;  %v5877_v22 = vpack.c.b16 %v3276_v47, %v3275_v63  ;;  %v460_v63 = vsel %vm305_vm3, %v422_v38, 0.0  ;;  %v3021_v47 = vpack.c.bf16 %v2989_v60, %v2989_v60  ;;  %v5908_v38 = vsub.f32 %v5649_v8, %v5803_v44 }
 0x2f5   : > { %v459_v50 = vadd.f32 %v458_v35, %v457_v19  ;;  %v3022_v19 = vpack.c.bf16 %v2990_v59, %v2990_v59  ;;  %v5901_v35 = vsub.f32 %v5644_v5, %v5803_v44  ;;  %6931 = vst [vmem:[#allocation163_spill] sm:$0xff] %v5921_v46 }
 0x2f6   : > { %v426_v8 = vmul.f32 %v5908_v38, %v5908_v38 }
 0x2f7   : > { %v461_v26 = vadd.f32 %v460_v63, %v459_v50  ;;  %v3278_v37 = vunpack.c.l.b16 %v3022_v19  ;;  %v425_v50 = vmul.f32 %v5901_v35, %v5901_v35  ;;  %v5913_v63 = vpop.f32.mrf.mxu1  ;;  %v2991_v19 = vld [vmem:[#allocation2 + $0x182] sm:$0xff] }
 0x2f8   : > { %3754 = vmatmul.bf16.gmra.mxu1 %v5877_v22  ;;  %v468_v29 = vsel %vm305_vm3, %v426_v8, 0.0 }
 0x2f9   : > { %v463_v20 = vadd.f32 %v462_v28, %v461_v26 }
 0x2fb   : > { %v5875_v41 = vpop.f32.mrf.mxu2 }
 0x2fc   : > { %6928 = vst [vmem:[#allocation160_spill] sm:$0xff] %v5875_v41  ;;  %v3277_v41 = vunpack.c.l.b16 %v3021_v47  ;;  %v466_v47 = vsel %vm305_vm3, %v425_v50, 0.0 }
 0x300   : > { %2778 = vmatmul.bf16.gmra.mxu2 %v5550_v7  ;;  %v424_v7 = vmul.f32 %v5892_v48, %v5892_v48 }
 0x302   : > { %v464_v60 = vsel %vm305_vm3, %v424_v7, 0.0  ;;  %v3023_v7 = vpack.c.bf16 %v2991_v19, %v2991_v19  ;;  %v5948_v19 = vsub.f32 %v5676_v57, %v5803_v44 }
 0x303   : > { %v5897_v34 = vpop.f32.mrf.mxu2  ;;  %v465_v59 = vadd.f32 %v464_v60, %v463_v20  ;;  %v5930_v20 = vsub.f32 %v5659_v45, %v5803_v44  ;;  %v5937_v60 = vpop.f32.mrf.mxu1 }
 0x304   : > { %6929 = vst [vmem:[#allocation161_spill] sm:$0xff] %v5897_v34  ;;  %v5917_v34 = vpack.c.b16 %v3278_v37, %v3277_v41  ;;  %v427_v37 = vmul.f32 %v5921_v46, %v5921_v46  ;;  %v2992_v41 = vld [vmem:[#allocation2 + $0x18a] sm:$0xff]  ;;  %v3279_v46 = vunpack.c.l.b16 %v3023_v7 }
 0x305   : > { %v467_v26 = vadd.f32 %v466_v47, %v465_v59  ;;  %6932 = vst [vmem:[#allocation164_spill] sm:$0xff] %v5930_v20  ;;  %v3024_v59 = vpack.c.bf16 %v2992_v41, %v2992_v41  ;;  %v428_v45 = vmul.f32 %v5930_v20, %v5930_v20  ;;  %v5957_v20 = vsub.f32 %v5681_v56, %v5803_v44 }
 0x306   : > { %v470_v47 = vsel %vm305_vm3, %v427_v37, 0.0  ;;  %6934 = vst [vmem:[#allocation166_spill] sm:$0xff] %v5948_v19  ;;  %v430_v37 = vmul.f32 %v5948_v19, %v5948_v19  ;;  %v6989_v19 = vld [vmem:[#allocation10_spill] sm:$0xff] }
 0x307   : > { %v469_v50 = vadd.f32 %v468_v29, %v467_v26  ;;  %v3280_v8 = vunpack.c.l.b16 %v3024_v59  ;;  %v472_v29 = vsel %vm305_vm3, %v428_v45, 0.0  ;;  %6935 = vst [vmem:[#allocation167_spill] sm:$0xff] %v5957_v20  ;;  %v5967_v59 = vsub.f32 %v5686_v53, %v5803_v44 }
 0x308   : > { %3759 = vmatmul.bf16.gmra.mxu1 %v5917_v34  ;;  %v476_v56 = vsel %vm305_vm3, %v430_v37, 0.0  ;;  %v2255_v53 = vadd.f32 %v5487_v23, %v5112_v0  ;;  %v5997_v0 = vsub.f32 %v5705_v3, %v5803_v44 }
 0x309   : > { %6936 = vst [vmem:[#allocation168_spill] sm:$0xff] %v5967_v59 }
 0x30a   : > { %6940 = vst [vmem:[#allocation172_spill] sm:$0xff] %v5997_v0  ;;  %v435_v3 = vmul.f32 %v5997_v0, %v5997_v0 }
 0x30b   : > { %v5915_v5 = vpop.f32.mrf.mxu2  ;;  %v5962_v57 = vpop.f32.mrf.mxu1 }
 0x30c   : > { %6930 = vst [vmem:[#allocation162_spill] sm:$0xff] %v5915_v5  ;;  %v471_v5 = vadd.f32 %v470_v47, %v469_v50  ;;  %v5976_v47 = vsub.f32 %v5693_v32, %v5803_v44  ;;  %v2344_v32 = vadd.f32 %v5119_v4, %v2255_v53 }
 0x30e   : > { %6937 = vst [vmem:[#allocation169_spill] sm:$0xff] %v5976_v47  ;;  %v2577_v4 = vadd.f32 %v5105_v21, %v2344_v32  ;;  %v3696_v21 = vadd.f32 %v5837_v54, %v5505_v31  ;;  %v2260_v31 = vadd.f32 %v5507_v55, %v5131_v33 }
 0x310   : > { %2783 = vmatmul.bf16.gmra.mxu2 %v5564_v9  ;;  %v5941_v9 = vsub.f32 %v5670_v58, %v5803_v44  ;;  %v473_v58 = vadd.f32 %v472_v29, %v471_v5  ;;  %v431_v5 = vmul.f32 %v5957_v20, %v5957_v20  ;;  %v433_v29 = vmul.f32 %v5976_v47, %v5976_v47  ;;  %v6984_v20 = vld [vmem:[#allocation17_spill] sm:$0xff] }
 0x311   : > { %v2349_v55 = vadd.f32 %v5139_v39, %v2260_v31  ;;  %v6949_v31 = vld [vmem:[#allocation3_spill] sm:$0xff] }
 0x312   : > { %v429_v26 = vmul.f32 %v5941_v9, %v5941_v9 }
 0x313   : > { %v5935_v28 = vpop.f32.mrf.mxu2  ;;  %v6015_v53 = vpop.f32.mrf.mxu1 }
 0x314   : > { %6933 = vst [vmem:[#allocation165_spill] sm:$0xff] %v5935_v28  ;;  %v3297_v28 = vpack.c.b16 %v3280_v8, %v3279_v46  ;;  %v474_v7 = vsel %vm305_vm3, %v429_v26, 0.0  ;;  %v5985_v26 = vsub.f32 %v5700_v49, %v5803_v44  ;;  %v482_v49 = vsel %vm305_vm3, %v433_v29, 0.0 }
 0x315   : > { %v475_v50 = vadd.f32 %v474_v7, %v473_v58 }
 0x316   : > { %6938 = vst [vmem:[#allocation170_spill] sm:$0xff] %v5985_v26  ;;  %v434_v23 = vmul.f32 %v5985_v26, %v5985_v26  ;;  %v6970_v26 = vld [vmem:[#allocation5_spill] sm:$0xff] }
 0x317   : > { %v477_v45 = vadd.f32 %v476_v56, %v475_v50  ;;  %v5993_v50 = vpop.f32.mrf.mxu0  ;;  %v2257_v56 = vadd.f32 %v5493_v11, %v5121_v10  ;;  %v2666_v10 = vadd.f32 %v5308_v18, %v2577_v4  ;;  %v486_v18 = vsel %vm305_vm3, %v435_v3, 0.0 }
 0x318   : > { %3764 = vmatmul.bf16.gmra.mxu1 %v3297_v28  ;;  %v432_v28 = vmul.f32 %v5967_v59, %v5967_v59 }
 0x31a   : > { %v480_v58 = vsel %vm305_vm3, %v432_v28, 0.0  ;;  %v6010_v28 = vsub.f32 %v5710_v27, %v5803_v44  ;;  %v6024_v27 = vld [vmem:[%s6737_s5] ss:$0 sm:$0xff] }
 0x31b   : > { %v5953_v41 = vpop.f32.mrf.mxu2 }
 0x31c   : > { %6941 = vst [vmem:[#allocation173_spill] sm:$0xff] %v6010_v28 }
 0x31f   : > { %v6035_v54 = vpop.f32.mrf.mxu0 }
 0x320   : > { %2788 = vmatmul.bf16.gmra.mxu2 %v5615_v1  ;;  %v478_v1 = vsel %vm305_vm3, %v431_v5, 0.0  ;;  %v6002_v5 = vpop.f32.mrf.mxu3 }
 0x321   : > { %v479_v8 = vadd.f32 %v478_v1, %v477_v45  ;;  %v484_v1 = vsel %vm305_vm3, %v434_v23, 0.0 }
 0x323   : > { %v5972_v46 = vpop.f32.mrf.mxu2  ;;  %v481_v7 = vadd.f32 %v480_v58, %v479_v8  ;;  %v2346_v8 = vadd.f32 %v5129_v30, %v2257_v56  ;;  %v6028_v58 = vsub.f32 %v5719_v51, %v5803_v44  ;;  %v436_v30 = vmul.f32 %v6010_v28, %v6010_v28  ;;  %v6960_v28 = vld [vmem:[#allocation4_spill] sm:$0xff] }
 0x324   : > { %v6045_v51 = vsub.f32 %v5725_v42, %v5803_v44 }
 0x325   : > { %v483_v45 = vadd.f32 %v482_v49, %v481_v7  ;;  %6942 = vst [vmem:[#allocation174_spill] sm:$0xff] %v6028_v58  ;;  %v2579_v7 = vadd.f32 %v5110_v40, %v2346_v8  ;;  %v437_v4 = vmul.f32 %v6028_v58, %v6028_v58  ;;  %v488_v33 = vsel %vm305_vm3, %v436_v30, 0.0  ;;  %v6948_v30 = vld [vmem:[#allocation106_spill] sm:$0xff]  ;;  %v6959_v58 = vld [vmem:[#allocation109_spill] sm:$0xff] }
 0x326   : > { %6943 = vst [vmem:[#allocation175_spill] sm:$0xff] %v6045_v51  ;;  %v438_v39 = vmul.f32 %v6045_v51, %v6045_v51 }
 0x327   : > { %v2668_v40 = vadd.f32 %v5322_v15, %v2579_v7  ;;  %v6068_v7 = vpop.f32.mrf.mxu0 }
 0x328   : > { %v6038_v23 = vpop.f32.mrf.mxu3 }
 0x32b   : > { %v5991_v37 = vpop.f32.mrf.mxu2 }
 0x32c   : > { %6939 = vst [vmem:[#allocation171_spill] sm:$0xff] %v5991_v37 }
 0x32f   : > { %v6112_v51 = vpop.f32.mrf.mxu0 }
 0x330   : > { %2793 = vmatmul.bf16.gmra.mxu2 %v5667_v36  ;;  %v485_v36 = vadd.f32 %v484_v1, %v483_v45  ;;  %v6944_v45 = vld [vmem:[#allocation105_spill] sm:$0xff]  ;;  %v6056_v1 = vpop.f32.mrf.mxu1 }
 0x331   : > { %v3698_v3 = vadd.f32 %v5866_v14, %v6944_v45  ;;  %v2582_v14 = vadd.f32 %v6949_v31, %v2349_v55  ;;  %v6953_v55 = vld [vmem:[#allocation8_spill] sm:$0xff] }
 0x332   : > { %v487_v49 = vadd.f32 %v486_v18, %v485_v36  ;;  %v490_v36 = vsel %vm305_vm3, %v437_v4, 0.0 }
 0x333   : > { %v2754_v11 = vpop.f32.mrf.mxu2 }
 0x334   : > { %v2755_v29 = vadd.f32 %v2754_v11, %v2666_v10  ;;  %v489_v8 = vadd.f32 %v488_v33, %v487_v49  ;;  %v6950_v49 = vld [vmem:[#allocation133_spill] sm:$0xff] }
 0x336   : > { %v3775_v32 = vadd.f32 %v3696_v21, %v2755_v29  ;;  %v6945_v21 = vld [vmem:[#allocation135_spill] sm:$0xff]  ;;  %v6947_v29 = vld [vmem:[#allocation6_spill] sm:$0xff] }
 0x337   : > { %v6060_v11 = vsub.f32 %v6945_v21, %v5803_v44  ;;  %v2262_v15 = vadd.f32 %v6948_v30, %v6947_v29 }
 0x338   : > { %v6041_v56 = vadd.f32 %v6024_v27, %v3775_v32  ;;  %v491_v32 = vadd.f32 %v490_v36, %v489_v8  ;;  %v6955_v36 = vld [vmem:[#allocation108_spill] sm:$0xff] }
 0x339   : > { %6946 = vst [vmem:[#allocation105_spill] sm:$0xff] %v6060_v11  ;;  %v439_v4 = vmul.f32 %v6060_v11, %v6060_v11  ;;  %v2351_v8 = vadd.f32 %v6953_v55, %v2262_v15  ;;  %v3701_v29 = vadd.f32 %v5887_v25, %v6955_v36  ;;  %v6096_v55 = vpop.f32.mrf.mxu1  ;;  %v6958_v11 = vld [vmem:[#allocation9_spill] sm:$0xff] }
 0x33a   : > { %3939 = vrot.lane.b32.xlu0 %v6041_v56, %s4786_s9 }
 0x33b   : > { %v2756_v42 = vpop.f32.mrf.mxu2  ;;  %v494_v15 = vsel %vm305_vm3, %v439_v4, 0.0  ;;  %v2584_v25 = vadd.f32 %v6960_v28, %v2351_v8  ;;  %v6964_v28 = vld [vmem:[#allocation56_spill] sm:$0xff]  ;;  %v6965_v8 = vld [vmem:[#allocation111_spill] sm:$0xff] }
 0x33c   : > { %v2757_v10 = vadd.f32 %v2756_v42, %v2668_v40  ;;  %v6951_v40 = vld [vmem:[#allocation136_spill] sm:$0xff]  ;;  %v492_v42 = vsel %vm305_vm3, %v438_v39, 0.0 }
 0x33d   : > { %v6076_v45 = vsub.f32 %v6951_v40, %v5803_v44 }
 0x33e   : > { %v3776_v18 = vadd.f32 %v3698_v3, %v2757_v10  ;;  %v6081_v3 = vpop.f32.mrf.mxu3  ;;  %v6954_v10 = vld [vmem:[#allocation52_spill] sm:$0xff] }
 0x33f   : > { %6952 = vst [vmem:[#allocation135_spill] sm:$0xff] %v6076_v45  ;;  %v2671_v21 = vadd.f32 %v6954_v10, %v2582_v14  ;;  %v440_v39 = vmul.f32 %v6076_v45, %v6076_v45  ;;  %v2265_v14 = vadd.f32 %v6959_v58, %v6958_v11  ;;  %v2673_v58 = vadd.f32 %v6964_v28, %v2584_v25 }
 0x340   : > { %2798 = vmatmul.bf16.gmra.mxu2 %v6950_v49  ;;  %v6072_v33 = vadd.f32 %v6024_v27, %v3776_v18  ;;  %v493_v18 = vadd.f32 %v492_v42, %v491_v32  ;;  %v6956_v49 = vld [vmem:[#allocation138_spill] sm:$0xff]  ;;  %v6961_v42 = vld [vmem:[#allocation139_spill] sm:$0xff] }
 0x341   : > { %v6091_v40 = vsub.f32 %v6956_v49, %v5803_v44  ;;  %v496_v4 = vsel %vm305_vm3, %v440_v39, 0.0  ;;  %v6963_v49 = vld [vmem:[#allocation11_spill] sm:$0xff]  ;;  %v6131_v0 = vpop.f32.mrf.mxu1 }
 0x342   : > { %3941 = vrot.lane.b32.xlu0 %v6072_v33, %s4786_s9  ;;  %v495_v36 = vadd.f32 %v494_v15, %v493_v18  ;;  %v2354_v45 = vadd.f32 %v6963_v49, %v2265_v14  ;;  %v6968_v49 = vld [vmem:[#allocation12_spill] sm:$0xff] }
 0x343   : > { %v2759_v30 = vpop.f32.mrf.mxu2  ;;  %6957 = vst [vmem:[#allocation6_spill] sm:$0xff] %v6091_v40 }
 0x344   : > { %v2760_v31 = vadd.f32 %v2759_v30, %v2671_v21  ;;  %v6106_v21 = vsub.f32 %v6961_v42, %v5803_v44  ;;  %v441_v30 = vmul.f32 %v6091_v40, %v6091_v40  ;;  %v6969_v40 = vld [vmem:[#allocation112_spill] sm:$0xff]  ;;  %v2587_v47 = vadd.f32 %v6970_v26, %v2354_v45 }
 0x345   : > { %v2267_v25 = vadd.f32 %v6969_v40, %v6968_v49  ;;  %v6975_v26 = vld [vmem:[#allocation60_spill] sm:$0xff]  ;;  %v6150_v49 = vpop.f32.mrf.mxu0 }
 0x346   : > { %v3777_v10 = vadd.f32 %v3701_v29, %v2760_v31  ;;  %6962 = vst [vmem:[#allocation106_spill] sm:$0xff] %v6106_v21  ;;  %v6117_v11 = vpop.f32.mrf.mxu3  ;;  %v3703_v29 = vadd.f32 %v5913_v63, %v6965_v8  ;;  %v497_v31 = vadd.f32 %v496_v4, %v495_v36  ;;  %v442_v14 = vmul.f32 %v6106_v21, %v6106_v21  ;;  %v6971_v36 = vld [vmem:[#allocation144_spill] sm:$0xff] }
 0x347   : > { %v498_v42 = vsel %vm305_vm3, %v441_v30, 0.0  ;;  %v2676_v45 = vadd.f32 %v6975_v26, %v2587_v47  ;;  %v6979_v47 = vld [vmem:[#allocation15_spill] sm:$0xff] }
 0x348   : > { %v6102_v32 = vadd.f32 %v6024_v27, %v3777_v10  ;;  %v6966_v10 = vld [vmem:[#allocation140_spill] sm:$0xff]  ;;  %v499_v63 = vadd.f32 %v498_v42, %v497_v31  ;;  %v500_v40 = vsel %vm305_vm3, %v442_v14, 0.0  ;;  %v6976_v31 = vld [vmem:[#allocation114_spill] sm:$0xff]  ;;  %v6980_v26 = vld [vmem:[#allocation115_spill] sm:$0xff] }
 0x349   : > { %v6123_v39 = vsub.f32 %v6966_v10, %v5803_v44 }
 0x34a   : > { %3943 = vrot.lane.b32.xlu1 %v6102_v32, %s4786_s9  ;;  %v501_v42 = vadd.f32 %v500_v40, %v499_v63 }
 0x34b   : > { %v2761_v18 = vpop.f32.mrf.mxu2  ;;  %6967 = vst [vmem:[#allocation3_spill] sm:$0xff] %v6123_v39  ;;  %v443_v30 = vmul.f32 %v6123_v39, %v6123_v39  ;;  %v2270_v39 = vadd.f32 %v6980_v26, %v6979_v47 }
 0x34c   : > { %v2762_v15 = vadd.f32 %v2761_v18, %v2673_v58  ;;  %v6972_v58 = vld [vmem:[#allocation142_spill] sm:$0xff] }
 0x34d   : > { %v6139_v8 = vsub.f32 %v6972_v58, %v5803_v44  ;;  %v2359_v47 = vadd.f32 %v6984_v20, %v2270_v39  ;;  %v6187_v20 = vpop.f32.mrf.mxu0 }
 0x34e   : > { %v3778_v28 = vadd.f32 %v3703_v29, %v2762_v15  ;;  %v6974_v29 = vld [vmem:[#allocation14_spill] sm:$0xff]  ;;  %v3706_v15 = vadd.f32 %v5937_v60, %v6976_v31  ;;  %v6981_v31 = vld [vmem:[#allocation7_spill] sm:$0xff] }
 0x34f   : > { %6973 = vst [vmem:[#allocation133_spill] sm:$0xff] %v6139_v8  ;;  %v2356_v18 = vadd.f32 %v6974_v29, %v2267_v25  ;;  %v444_v14 = vmul.f32 %v6139_v8, %v6139_v8  ;;  %v502_v25 = vsel %vm305_vm3, %v443_v30, 0.0  ;;  %v6159_v29 = vpop.f32.mrf.mxu3  ;;  %v6174_v8 = vpop.f32.mrf.mxu1  ;;  %v2592_v37 = vadd.f32 %v6989_v19, %v2359_v47 }
 0x350   : > { %2803 = vmatmul.bf16.gmra.mxu2 %v6971_v36  ;;  %v6135_v4 = vadd.f32 %v6024_v27, %v3778_v28  ;;  %v6977_v36 = vld [vmem:[#allocation145_spill] sm:$0xff]  ;;  %v503_v40 = vadd.f32 %v502_v25, %v501_v42 }
 0x351   : > { %v6154_v58 = vsub.f32 %v6977_v36, %v5803_v44  ;;  %v2589_v63 = vadd.f32 %v6981_v31, %v2356_v18  ;;  %v504_v30 = vsel %vm305_vm3, %v444_v14, 0.0  ;;  %v6985_v18 = vld [vmem:[#allocation64_spill] sm:$0xff]  ;;  %v6986_v25 = vld [vmem:[#allocation117_spill] sm:$0xff]  ;;  %v6987_v31 = vld [vmem:[#allocation18_spill] sm:$0xff] }
 0x352   : > { %3945 = vrot.lane.b32.xlu1 %v6135_v4, %s4786_s9 }
 0x353   : > { %v2764_v10 = vpop.f32.mrf.mxu2  ;;  %6978 = vst [vmem:[#allocation136_spill] sm:$0xff] %v6154_v58  ;;  %v445_v21 = vmul.f32 %v6154_v58, %v6154_v58 }
 0x354   : > { %v2765_v28 = vadd.f32 %v2764_v10, %v2676_v45  ;;  %v6982_v10 = vld [vmem:[#allocation146_spill] sm:$0xff] }
 0x355   : > { %v6169_v36 = vsub.f32 %v6982_v10, %v5803_v44  ;;  %v3708_v44 = vadd.f32 %v5962_v57, %v6986_v25  ;;  %v506_v14 = vsel %vm305_vm3, %v445_v21, 0.0  ;;  %v6988_v10 = vld [vmem:[#allocation118_spill] sm:$0xff]  ;;  %v3622_v21 = vadd.f32 %v5993_v50, %v6002_v5  ;;  %v6992_v25 = vld [vmem:[#allocation68_spill] sm:$0xff] }
 0x356   : > { %v3779_v60 = vadd.f32 %v3706_v15, %v2765_v28  ;;  %v2678_v15 = vadd.f32 %v6985_v18, %v2589_v63  ;;  %v505_v28 = vadd.f32 %v504_v30, %v503_v40  ;;  %v2272_v58 = vadd.f32 %v6988_v10, %v6987_v31  ;;  %v6990_v30 = vld [vmem:[#allocation150_spill] sm:$0xff]  ;;  %v6993_v31 = vld [vmem:[#allocation21_spill] sm:$0xff]  ;;  %v6994_v10 = vld [vmem:[#allocation119_spill] sm:$0xff] }
 0x357   : > { %6983 = vst [vmem:[#allocation8_spill] sm:$0xff] %v6169_v36  ;;  %v6190_v63 = vpop.f32.mrf.mxu3  ;;  %v2681_v19 = vadd.f32 %v6992_v25, %v2592_v37  ;;  %v6203_v47 = vpop.f32.mrf.mxu1 }
 0x358   : > { %v6165_v45 = vadd.f32 %v6024_v27, %v3779_v60  ;;  %v446_v60 = vmul.f32 %v6169_v36, %v6169_v36  ;;  %v507_v40 = vadd.f32 %v506_v14, %v505_v28  ;;  %v7000_v36 = vld [vmem:[#allocation16_spill] sm:$0xff] }
 0x35a   : > { %3947 = vrot.lane.b32.xlu2 %v6165_v45, %s4786_s9  ;;  %v508_v18 = vsel %vm305_vm3, %v446_v60, 0.0  ;;  %v2275_v60 = vadd.f32 %v6994_v10, %v6993_v31  ;;  %v6998_v31 = vld [vmem:[#allocation24_spill] sm:$0xff]  ;;  %v6999_v10 = vld [vmem:[#allocation121_spill] sm:$0xff] }
 0x35b   : > { %v2766_v42 = vpop.f32.mrf.mxu2 }
 0x35c   : > { %v2767_v26 = vadd.f32 %v2766_v42, %v2678_v15  ;;  %v6991_v15 = vld [vmem:[#allocation20_spill] sm:$0xff] }
 0x35d   : > { %v2361_v42 = vadd.f32 %v6991_v15, %v2272_v58  ;;  %v6209_v58 = vpop.f32.mrf.mxu0 }
 0x35e   : > { %v3780_v39 = vadd.f32 %v3708_v44, %v2767_v26  ;;  %v509_v44 = vadd.f32 %v508_v18, %v507_v40  ;;  %v3711_v26 = vadd.f32 %v6015_v53, %v3622_v21  ;;  %v3624_v40 = vadd.f32 %v6035_v54, %v6038_v23  ;;  %v6996_v18 = vld [vmem:[#allocation23_spill] sm:$0xff]  ;;  %v6997_v21 = vld [vmem:[#allocation72_spill] sm:$0xff] }
 0x35f   : > { %v6214_v37 = vpop.f32.mrf.mxu3  ;;  %v2364_v53 = vadd.f32 %v6996_v18, %v2275_v60 }
 0x360   : > { %2808 = vmatmul.bf16.gmra.mxu2 %v6990_v30  ;;  %v6194_v57 = vadd.f32 %v6024_v27, %v3780_v39  ;;  %v6995_v30 = vld [vmem:[#allocation13_spill] sm:$0xff]  ;;  %v510_v5 = vrot.slane %v509_v44, 4 }
 0x361   : > { %v2594_v50 = vadd.f32 %v6995_v30, %v2361_v42  ;;  %v2597_v54 = vadd.f32 %v7000_v36, %v2364_v53 }
 0x362   : > { %3949 = vrot.lane.b32.xlu2 %v6194_v57, %s4786_s9  ;;  %v511_v42 = vadd.f32 %v510_v5, %v509_v44  ;;  %v3627_v44 = vadd.f32 %v6068_v7, %v6081_v3  ;;  %v7005_v3 = vld [vmem:[#allocation19_spill] sm:$0xff] }
 0x363   : > { %v2769_v28 = vpop.f32.mrf.mxu2  ;;  %v2683_v25 = vadd.f32 %v6997_v21, %v2594_v50  ;;  %v7001_v50 = vld [vmem:[#allocation26_spill] sm:$0xff] }
 0x364   : > { %v2770_v14 = vadd.f32 %v2769_v28, %v2681_v19  ;;  %v3713_v28 = vadd.f32 %v6056_v1, %v3624_v40  ;;  %v512_v23 = vrot.slane %v511_v42, 2  ;;  %v7002_v40 = vld [vmem:[#allocation77_spill] sm:$0xff] }
 0x365   : > { %v6235_v5 = vpop.f32.mrf.mxu0  ;;  %v2686_v18 = vadd.f32 %v7002_v40, %v2597_v54  ;;  %v3629_v54 = vadd.f32 %v6112_v51, %v6117_v11  ;;  %v7010_v11 = vld [vmem:[#allocation22_spill] sm:$0xff] }
 0x366   : > { %v3781_v39 = vadd.f32 %v3711_v26, %v2770_v14  ;;  %v6223_v14 = vpop.f32.mrf.mxu1  ;;  %v513_v53 = vadd.f32 %v512_v23, %v511_v42 }
 0x367   : > { %v6240_v21 = vpop.f32.mrf.mxu3 }
 0x368   : > { %v6212_v15 = vadd.f32 %v6024_v27, %v3781_v39  ;;  %v2277_v39 = vadd.f32 %v6999_v10, %v6998_v31 }
 0x36a   : > { %3951 = vrot.lane.b32.xlu0 %v6212_v15, %s4786_s9  ;;  %v2366_v1 = vadd.f32 %v7001_v50, %v2277_v39  ;;  %v514_v39 = vrot.slane %v513_v53, 1  ;;  %v7006_v50 = vld [vmem:[#allocation29_spill] sm:$0xff] }
 0x36b   : > { %v2771_v19 = vpop.f32.mrf.mxu2 }
 0x36c   : > { %v2772_v26 = vadd.f32 %v2771_v19, %v2683_v25  ;;  %v7003_v19 = vld [vmem:[#allocation27_spill] sm:$0xff]  ;;  %v2599_v31 = vadd.f32 %v7005_v3, %v2366_v1  ;;  %v515_v40 = vadd.f32 %v514_v39, %v513_v53  ;;  %v3718_v1 = vadd.f32 %v6131_v0, %v3629_v54  ;;  %v7011_v53 = vld [vmem:[#allocation32_spill] sm:$0xff]  ;;  %v7012_v54 = vld [vmem:[#allocation86_spill] sm:$0xff] }
 0x36d   : > { %v3632_v0 = vadd.f32 %v6150_v49, %v6159_v29  ;;  %v2994_v29 = vld [vmem:[#allocation2 + $0x1a2] sm:$0xff] }
 0x36e   : > { %v3782_v30 = vadd.f32 %v3713_v28, %v2772_v26  ;;  %v7004_v28 = vld [vmem:[#allocation123_spill] sm:$0xff]  ;;  %v6246_v10 = vpop.f32.mrf.mxu1 }
 0x36f   : > { %v2280_v26 = vadd.f32 %v7004_v28, %v7003_v19  ;;  %v6262_v28 = vpop.f32.mrf.mxu3 }
 0x370   : > { %2813 = vmatmul.bf16.gmra.mxu2 %v5800_v52  ;;  %v6230_v60 = vadd.f32 %v6024_v27, %v3782_v30  ;;  %v3716_v52 = vadd.f32 %v6096_v55, %v3627_v44  ;;  %v7007_v55 = vld [vmem:[#allocation82_spill] sm:$0xff] }
 0x371   : > { %v2369_v42 = vadd.f32 %v7006_v50, %v2280_v26  ;;  %v2688_v23 = vadd.f32 %v7007_v55, %v2599_v31 }
 0x372   : > { %3953 = vrot.lane.b32.xlu1 %v6230_v60, %s4786_s9 }
 0x373   : > { %v2774_v36 = vpop.f32.mrf.mxu2  ;;  %v2602_v26 = vadd.f32 %v7010_v11, %v2369_v42  ;;  %v7014_v11 = vld [vmem:[#allocation33_spill] sm:$0xff] }
 0x374   : > { %v2775_v25 = vadd.f32 %v2774_v36, %v2686_v18  ;;  %v6257_v18 = vpop.f32.mrf.mxu0 }
 0x375   : > { %v2691_v50 = vadd.f32 %v7012_v54, %v2602_v26 }
 0x376   : > { %v3783_v7 = vadd.f32 %v3716_v52, %v2775_v25  ;;  %v7008_v52 = vld [vmem:[#allocation30_spill] sm:$0xff]  ;;  %v7009_v25 = vld [vmem:[#allocation125_spill] sm:$0xff]  ;;  %v6271_v39 = vpop.f32.mrf.mxu1 }
 0x377   : > { %v2282_v19 = vadd.f32 %v7009_v25, %v7008_v52  ;;  %v7013_v52 = vld [vmem:[#allocation25_spill] sm:$0xff] }
 0x378   : > { %v6249_v30 = vadd.f32 %v6024_v27, %v3783_v7  ;;  %v516_v7 = vmul.f32 %v515_v40, %v5796_v43  ;;  %v3721_v43 = vadd.f32 %v6174_v8, %v3632_v0  ;;  %v2929_v40 = vld [vmem:[#allocation2 + $0x199] sm:$0xff]  ;;  %v3026_v8 = vpack.c.bf16 %v2994_v29, %v2994_v29  ;;  %v6286_v0 = vpop.f32.mrf.mxu3 }
 0x379   : > { %v2371_v31 = vadd.f32 %v7011_v53, %v2282_v19  ;;  %v2961_v19 = vpack.c.bf16 %v2929_v40, %v2929_v40  ;;  %v7015_v53 = vld [vmem:[#allocation127_spill] sm:$0xff] }
 0x37a   : > { %3955 = vrot.lane.b32.xlu2 %v6249_v30, %s4786_s9  ;;  %v6278_v55 = vadd.f32 1e-05, %v516_v7  ;;  %v2285_v26 = vadd.f32 %v7015_v53, %v7014_v11  ;;  %v7018_v53 = vld [vmem:[#allocation36_spill] sm:$0xff] }
 0x37b   : > { %v2776_v44 = vpop.f32.mrf.mxu2  ;;  %v2604_v25 = vadd.f32 %v7013_v52, %v2371_v31 }
 0x37c   : > { %v2777_v36 = vadd.f32 %v2776_v44, %v2688_v23  ;;  %v4772_v23 = vld [vmem:[#allocation2] sm:$0xff]  ;;  %v6284_v54 = vpop.f32.mrf.mxu0  ;;  %4770 = vrsqrt.f32 %v6278_v55  ;;  %vm524_vm5 = vweird.f32 %v6278_v55 }
 0x37d   : > { %v2897_v44 = vpack.c.bf16 %v4772_v23, %v4772_v23 }
 0x37e   : > { %v3784_v51 = vadd.f32 %v3718_v1, %v2777_v36  ;;  %v2930_v1 = vld [vmem:[#allocation2 + $0x1a1] sm:$0xff] }
 0x37f   : > { %v2993_v36 = vld [vmem:[#allocation2 + $0x19a] sm:$0xff]  ;;  %v2962_v49 = vpack.c.bf16 %v2930_v1, %v2930_v1  ;;  %v3089_v59 = vunpack.c.l.b16 %v2897_v44  ;;  %v3282_v1 = vunpack.c.l.b16 %v3026_v8 }
 0x380   : > { %2818 = vmatmul.bf16.gmra.mxu2 %v5839_v24  ;;  %v6268_v3 = vadd.f32 %v6024_v27, %v3784_v51  ;;  %v3025_v51 = vpack.c.bf16 %v2993_v36, %v2993_v36  ;;  %v7016_v36 = vld [vmem:[#allocation91_spill] sm:$0xff] }
 0x381   : > { %v3106_v40 = vpack.c.b16 %v3089_v59, %v3089_v59  ;;  %v2693_v52 = vadd.f32 %v7016_v36, %v2604_v25 }
 0x382   : > { %3957 = vrot.lane.b32.xlu0 %v6268_v3, %s4786_s9  ;;  %v3281_v23 = vunpack.c.l.b16 %v3025_v51  ;;  %v4771_v25 = vpop.eup %4770 }
 0x383   : > { %v2779_v42 = vpop.f32.mrf.mxu2  ;;  %3591 = vmatmul.bf16.gmra.mxu3 %v3106_v40  ;;  %v6311_v40 = vpop.f32.mrf.mxu3  ;;  %vm525_vm6 = vweird.f32 %v4771_v25 }
 0x384   : > { %v2780_v24 = vadd.f32 %v2779_v42, %v2691_v50  ;;  %v3185_v50 = vunpack.c.l.b16 %v2961_v19  ;;  %v3186_v42 = vunpack.c.l.b16 %v2962_v49  ;;  %v3298_v19 = vpack.c.b16 %v3282_v1, %v3281_v23  ;;  %v6298_v49 = vpop.f32.mrf.mxu1  ;;  %v7021_v1 = vld [vmem:[#allocation38_spill] sm:$0xff]  ;;  %vm526_vm7 = vmor %vm524_vm5, %vm525_vm6 }
 0x385   : > { %v519_v23 = vmul.f32 %v4771_v25, %v6278_v55 }
 0x386   : > { %v3785_v7 = vadd.f32 %v3721_v43, %v2780_v24  ;;  %v3202_v11 = vpack.c.b16 %v3186_v42, %v3185_v50  ;;  %v3634_v43 = vadd.f32 %v6187_v20, %v6190_v63  ;;  %v7017_v24 = vld [vmem:[#allocation35_spill] sm:$0xff]  ;;  %3769 = vmatmul.bf16.gmra.mxu1 %v3298_v19  ;;  %v7020_v63 = vld [vmem:[#allocation28_spill] sm:$0xff]  ;;  %v6304_v50 = vpop.f32.mrf.mxu0 }
 0x387   : > { %v2374_v44 = vadd.f32 %v7017_v24, %v2285_v26  ;;  %v7023_v19 = vld [vmem:[#allocation39_spill] sm:$0xff] }
 0x388   : > { %v6290_v31 = vadd.f32 %v6024_v27, %v3785_v7  ;;  %3680 = vmatmul.bf16.gmra.mxu0 %v3202_v11  ;;  %v3723_v59 = vadd.f32 %v6203_v47, %v3634_v43  ;;  %v7019_v7 = vld [vmem:[#allocation128_spill] sm:$0xff]  ;;  %v3637_v47 = vadd.f32 %v6209_v58, %v6214_v37 }
 0x389   : > { %v2287_v8 = vadd.f32 %v7019_v7, %v7018_v53  ;;  %v2607_v26 = vadd.f32 %v7020_v63, %v2374_v44  ;;  %v520_v44 = vmul.f32 %v4771_v25, %v519_v23  ;;  %v7025_v7 = vld [vmem:[#allocation31_spill] sm:$0xff]  ;;  %v7027_v23 = vld [vmem:[#allocation100_spill] sm:$0xff] }
 0x38a   : > { %3959 = vrot.lane.b32.xlu1 %v6290_v31, %s4786_s9 }
 0x38b   : > { %v2781_v29 = vpop.f32.mrf.mxu2  ;;  %v2376_v36 = vadd.f32 %v7021_v1, %v2287_v8  ;;  %v521_v8 = vmul.f32 0.5, %v520_v44  ;;  %v6336_v1 = vpop.f32.mrf.mxu3  ;;  %v7029_v44 = vld [vmem:[#allocation42_spill] sm:$0xff] }
 0x38c   : > { %v2782_v51 = vadd.f32 %v2781_v29, %v2693_v52  ;;  %v7022_v52 = vld [vmem:[#allocation96_spill] sm:$0xff]  ;;  %v7024_v29 = vld [vmem:[#allocation130_spill] sm:$0xff] }
 0x38d   : > { %v2696_v11 = vadd.f32 %v7022_v52, %v2607_v26  ;;  %v2609_v58 = vadd.f32 %v7025_v7, %v2376_v36  ;;  %v3639_v26 = vadd.f32 %v6235_v5, %v6240_v21  ;;  %v7031_v7 = vld [vmem:[#allocation45_spill] sm:$0xff] }
 0x38e   : > { %v3786_v20 = vadd.f32 %v3723_v59, %v2782_v51  ;;  %v2290_v59 = vadd.f32 %v7024_v29, %v7023_v19  ;;  %v6322_v51 = vpop.f32.mrf.mxu1  ;;  %v7030_v19 = vld [vmem:[#allocation132_spill] sm:$0xff] }
 0x38f   : > { %v3728_v36 = vadd.f32 %v6246_v10, %v3639_v26  ;;  %v2292_v29 = vadd.f32 %v7030_v19, %v7029_v44  ;;  %v3642_v10 = vadd.f32 %v6257_v18, %v6262_v28  ;;  %v7036_v19 = vld [vmem:[#allocation48_spill] sm:$0xff] }
 0x390   : > { %2823 = vmatmul.bf16.gmra.mxu2 %v5877_v22  ;;  %v6308_v42 = vadd.f32 %v6024_v27, %v3786_v20  ;;  %v3726_v22 = vadd.f32 %v6223_v14, %v3637_v47  ;;  %v7026_v20 = vld [vmem:[#allocation41_spill] sm:$0xff]  ;;  %v6331_v14 = vpop.f32.mrf.mxu0  ;;  %v2698_v47 = vadd.f32 %v7027_v23, %v2609_v58 }
 0x391   : > { %v2379_v63 = vadd.f32 %v7026_v20, %v2290_v59  ;;  %v2381_v58 = vadd.f32 %v7031_v7, %v2292_v29 }
 0x392   : > { %3961 = vrot.lane.b32.xlu2 %v6308_v42, %s4786_s9 }
 0x393   : > { %v2784_v43 = vpop.f32.mrf.mxu2 }
 0x394   : > { %v2785_v24 = vadd.f32 %v2784_v43, %v2696_v11  ;;  %v522_v43 = vsub.f32 1.5, %v521_v8  ;;  %v7032_v8 = vld [vmem:[#allocation102_spill] sm:$0xff] }
 0x396   : > { %v3787_v53 = vadd.f32 %v3726_v22, %v2785_v24  ;;  %v7028_v22 = vld [vmem:[#allocation34_spill] sm:$0xff]  ;;  %v6343_v21 = vpop.f32.mrf.mxu1 }
 0x397   : > { %v2612_v24 = vadd.f32 %v7028_v22, %v2379_v63  ;;  %v3843_v22 = vadd.f32 1.0, %v6041_v56 }
 0x398   : > { %v6326_v37 = vadd.f32 %v6024_v27, %v3787_v53  ;;  %v523_v53 = vmul.f32 %v4771_v25, %v522_v43  ;;  %v6355_v63 = vpop.f32.mrf.mxu0 }
 0x399   : > { %v2701_v55 = vadd.f32 %v7032_v8, %v2612_v24  ;;  %v7039_v8 = vld [vmem:[#allocation143_spill] sm:$0xff] }
 0x39a   : > { %3963 = vrot.lane.b32.xlu0 %v6326_v37, %s4786_s9  ;;  %v6358_v23 = vsel %vm526_vm7, %v4771_v25, %v523_v53  ;;  %v3644_v25 = vadd.f32 %v6284_v54, %v6286_v0  ;;  %v7038_v0 = vld [vmem:[#allocation46_spill] sm:$0xff] }
 0x39b   : > { %v2786_v52 = vpop.f32.mrf.mxu2  ;;  %v528_v24 = vmul.f32 %v6358_v23, %v5809_v61 }
 0x39c   : > { %v2787_v11 = vadd.f32 %v2786_v52, %v2698_v47  ;;  %v6360_v47 = vpop.f32.mrf.mxu3  ;;  %v7033_v52 = vld [vmem:[#allocation43_spill] sm:$0xff]  ;;  %v3733_v7 = vadd.f32 %v6298_v49, %v3644_v25  ;;  %v3847_v49 = vadd.f32 1.0, %v6165_v45 }
 0x39d   : > { %v3875_v56 = vmul.f32 %v3843_v22, %v528_v24  ;;  %v3647_v22 = vadd.f32 %v6304_v50, %v6311_v40  ;;  %v7041_v24 = vld [vmem:[#allocation51_spill] sm:$0xff] }
 0x39e   : > { %v3788_v5 = vadd.f32 %v3728_v36, %v2787_v11  ;;  %v7034_v36 = vld [vmem:[#allocation137_spill] sm:$0xff]  ;;  %v7042_v45 = vld [vmem:[#allocation107_spill] sm:$0xff] }
 0x39f   : > { %v2295_v18 = vadd.f32 %v7034_v36, %v7033_v52  ;;  %v7035_v11 = vld [vmem:[#allocation37_spill] sm:$0xff] }
 0x3a0   : > { %2828 = vmatmul.bf16.gmra.mxu2 %v5917_v34  ;;  %v6347_v59 = vadd.f32 %v6024_v27, %v3788_v5  ;;  %v3731_v34 = vadd.f32 %v6271_v39, %v3642_v10  ;;  %v2614_v43 = vadd.f32 %v7035_v11, %v2381_v58  ;;  %v6371_v39 = vpop.f32.mrf.mxu1  ;;  %v7037_v5 = vld [vmem:[#allocation104_spill] sm:$0xff]  ;;  %v532_v11 = vmul.f32 %v6358_v23, %v5843_v13 }
 0x3a1   : > { %v2384_v29 = vadd.f32 %v7036_v19, %v2295_v18  ;;  %v3844_v18 = vadd.f32 1.0, %v6072_v33  ;;  %v3736_v13 = vadd.f32 %v6322_v51, %v3647_v22  ;;  %v533_v51 = vmul.f32 %v6358_v23, %v5852_v62  ;;  %v7047_v62 = vld [vmem:[#allocation110_spill] sm:$0xff] }
 0x3a2   : > { %3965 = vrot.lane.b32.xlu1 %v6347_v59, %s4786_s9  ;;  %v2703_v53 = vadd.f32 %v7037_v5, %v2614_v43  ;;  %v3879_v5 = vmul.f32 %v3847_v49, %v532_v11 }
 0x3a3   : > { %v2789_v20 = vpop.f32.mrf.mxu2 }
 0x3a4   : > { %v2790_v26 = vadd.f32 %v2789_v20, %v2701_v55  ;;  %v2297_v55 = vadd.f32 %v7039_v8, %v7038_v0  ;;  %v6389_v20 = vpop.f32.mrf.mxu0  ;;  %v6392_v36 = vpop.f32.mrf.mxu3  ;;  %v7045_v0 = vld [vmem:[#allocation44_spill] sm:$0xff] }
 0x3a6   : > { %v3789_v28 = vadd.f32 %v3731_v34, %v2790_v26  ;;  %v7040_v26 = vld [vmem:[#allocation40_spill] sm:$0xff]  ;;  %v2386_v25 = vadd.f32 %v7041_v24, %v2297_v55  ;;  %v3845_v55 = vadd.f32 1.0, %v6102_v32  ;;  %v3649_v32 = vadd.f32 %v6331_v14, %v6336_v1  ;;  %v7048_v1 = vld [vmem:[#allocation53_spill] sm:$0xff] }
 0x3a7   : > { %v2617_v52 = vadd.f32 %v7040_v26, %v2384_v29  ;;  %v530_v26 = vmul.f32 %v6358_v23, %v5821_v2 }
 0x3a8   : > { %v6369_v44 = vadd.f32 %v6024_v27, %v3789_v28  ;;  %v529_v28 = vmul.f32 %v6358_v23, %v5813_v16  ;;  %v6411_v19 = vpop.f32.mrf.mxu1  ;;  %v2619_v8 = vadd.f32 %v7045_v0, %v2386_v25  ;;  %v3738_v25 = vadd.f32 %v6343_v21, %v3649_v32 }
 0x3a9   : > { %v2706_v33 = vadd.f32 %v7042_v45, %v2617_v52  ;;  %v3877_v24 = vmul.f32 %v3845_v55, %v530_v26 }
 0x3aa   : > { %3967 = vrot.lane.b32.xlu2 %v6369_v44, %s4786_s9  ;;  %v3876_v29 = vmul.f32 %v3844_v18, %v529_v28  ;;  %v7046_v28 = vld [vmem:[#allocation55_spill] sm:$0xff] }
 0x3ab   : > { %v2791_v10 = vpop.f32.mrf.mxu2 }
 0x3ac   : > { %v2792_v61 = vadd.f32 %v2791_v10, %v2703_v53  ;;  %v3940_v58 = vpop.permute.xlu0 %3939  ;;  %v3656_v52 = vpop.f32.mrf.mxu0 }
 0x3ad   : > { %v4035_v54 = vadd.f32 %v3940_v58, %v3875_v56  ;;  %v3567_v18 = vpop.f32.mrf.mxu3 }
 0x3ae   : > { %v3790_v34 = vadd.f32 %v3733_v7, %v2792_v61  ;;  %v7043_v7 = vld [vmem:[#allocation49_spill] sm:$0xff]  ;;  %v7044_v61 = vld [vmem:[#allocation147_spill] sm:$0xff] }
 0x3af   : > { %4067 = vst.msk [vmem:[%s6385_s12] sm:$0xff] %vm305_vm3, %v4035_v54  ;;  %v2300_v58 = vadd.f32 %v7044_v61, %v7043_v7  ;;  %v531_v7 = vmul.f32 %v6358_v23, %v5829_v17  ;;  %v3652_v61 = vadd.f32 %v6355_v63, %v6360_v47 }
 0x3b0   : > { %v6403_v43 = vadd.f32 %v6024_v27, %v3790_v34  ;;  %v3848_v34 = vadd.f32 1.0, %v6194_v57  ;;  %v2708_v57 = vadd.f32 %v7047_v62, %v2619_v8  ;;  %v7052_v8 = vld [vmem:[#allocation113_spill] sm:$0xff]  ;;  %v7054_v62 = vld [vmem:[#allocation50_spill] sm:$0xff] }
 0x3b1   : > { %v2389_v11 = vadd.f32 %v7046_v28, %v2300_v58  ;;  %v7051_v58 = vld [vmem:[#allocation59_spill] sm:$0xff] }
 0x3b2   : > { %3969 = vrot.lane.b32.xlu0 %v6403_v43, %s4786_s9  ;;  %v3880_v2 = vmul.f32 %v3848_v34, %v533_v51  ;;  %v3741_v51 = vadd.f32 %v6371_v39, %v3652_v61 }
 0x3b3   : > { %v2794_v16 = vpop.f32.mrf.mxu2 }
 0x3b4   : > { %v2795_v53 = vadd.f32 %v2794_v16, %v2706_v33  ;;  %v3942_v10 = vpop.permute.xlu0 %3941  ;;  %v3948_v56 = vpop.permute.xlu2 %3947 }
 0x3b5   : > { %v4036_v50 = vadd.f32 %v3942_v10, %v3876_v29  ;;  %v4039_v40 = vadd.f32 %v3948_v56, %v3879_v5  ;;  %v3745_v29 = vpop.f32.mrf.mxu1  ;;  %v7050_v56 = vld [vmem:[#allocation47_spill] sm:$0xff]  ;;  %v3658_v0 = vpop.f32.mrf.mxu0 }
 0x3b6   : > { %v3791_v54 = vadd.f32 %v3736_v13, %v2795_v53  ;;  %v7049_v13 = vld [vmem:[#allocation149_spill] sm:$0xff]  ;;  %v3569_v55 = vpop.f32.mrf.mxu3 }
 0x3b7   : > { %4068 = vst.msk [vmem:[%s6385_s12 + $0x8] sm:$0xff] %vm305_vm3, %v4036_v50  ;;  %v2302_v53 = vadd.f32 %v7049_v13, %v7048_v1  ;;  %v2622_v50 = vadd.f32 %v7050_v56, %v2389_v11  ;;  %v7053_v11 = vld [vmem:[#allocation57_spill] sm:$0xff] }
 0x3b8   : > { %4071 = vst.msk [vmem:[%s6385_s12 + $0x20] sm:$0xff] %vm305_vm3, %v4039_v40  ;;  %v6428_v49 = vadd.f32 %v6024_v27, %v3791_v54  ;;  %v3846_v40 = vadd.f32 1.0, %v6135_v4  ;;  %v2305_v63 = vadd.f32 %v5792_v6, %v7053_v11  ;;  %v7057_v13 = vld [vmem:[#allocation61_spill] sm:$0xff]  ;;  %v7063_v11 = vld [vmem:[#allocation155_spill] sm:$0xff] }
 0x3b9   : > { %v2391_v54 = vadd.f32 %v7051_v58, %v2302_v53  ;;  %v2711_v4 = vadd.f32 %v7052_v8, %v2622_v50  ;;  %v7058_v53 = vld [vmem:[#allocation153_spill] sm:$0xff]  ;;  %v7059_v50 = vld [vmem:[#allocation54_spill] sm:$0xff]  ;;  %v3657_v58 = vadd.f32 %v3656_v52, %v3567_v18  ;;  %v7061_v8 = vld [vmem:[#allocation120_spill] sm:$0xff] }
 0x3ba   : > { %3971 = vrot.lane.b32.xlu1 %v6428_v49, %s4786_s9  ;;  %v3878_v17 = vmul.f32 %v3846_v40, %v531_v7 }
 0x3bb   : > { %v2796_v22 = vpop.f32.mrf.mxu2 }
 0x3bc   : > { %v2797_v45 = vadd.f32 %v2796_v22, %v2708_v57  ;;  %v3950_v33 = vpop.permute.xlu2 %3949  ;;  %v3944_v16 = vpop.permute.xlu1 %3943  ;;  %v2624_v57 = vadd.f32 %v7054_v62, %v2391_v54  ;;  %v7064_v62 = vld [vmem:[#allocation58_spill] sm:$0xff] }
 0x3bd   : > { %v4040_v5 = vadd.f32 %v3950_v33, %v3880_v2  ;;  %v4037_v14 = vadd.f32 %v3944_v16, %v3877_v24  ;;  %v3747_v22 = vpop.f32.mrf.mxu1  ;;  %v3654_v24 = vadd.f32 %v6389_v20, %v6392_v36  ;;  %v3661_v16 = vpop.f32.mrf.mxu0  ;;  %v3851_v20 = vadd.f32 1.0, %v6249_v30 }
 0x3be   : > { %v3792_v10 = vadd.f32 %v3738_v25, %v2797_v45  ;;  %v7055_v25 = vld [vmem:[#allocation63_spill] sm:$0xff]  ;;  %v7056_v45 = vld [vmem:[#allocation116_spill] sm:$0xff]  ;;  %v3572_v1 = vpop.f32.mrf.mxu3  ;;  %v536_v36 = vmul.f32 %v6358_v23, %v5881_v12 }
 0x3bf   : > { %4072 = vst.msk [vmem:[%s6385_s12 + $0x28] sm:$0xff] %vm305_vm3, %v4040_v5  ;;  %v2394_v39 = vadd.f32 %v7055_v25, %v2305_v63  ;;  %v2713_v33 = vadd.f32 %v7056_v45, %v2624_v57  ;;  %v3743_v5 = vadd.f32 %v6411_v19, %v3654_v24  ;;  %v7060_v19 = vld [vmem:[#allocation67_spill] sm:$0xff]  ;;  %v7065_v57 = vld [vmem:[#allocation158_spill] sm:$0xff]  ;;  %v3849_v25 = vadd.f32 1.0, %v6212_v15  ;;  %v7068_v15 = vld [vmem:[#allocation69_spill] sm:$0xff] }
 0x3c0   : > { %4069 = vst.msk [vmem:[%s6385_s12 + $0x10] sm:$0xff] %vm305_vm3, %v4037_v14  ;;  %v6448_v21 = vadd.f32 %v6024_v27, %v3792_v10  ;;  %v2307_v10 = vadd.f32 %v7058_v53, %v7057_v13  ;;  %v534_v24 = vmul.f32 %v6358_v23, %v7065_v57  ;;  %v7066_v45 = vld [vmem:[#allocation71_spill] sm:$0xff]  ;;  %v7074_v57 = vld [vmem:[#allocation73_spill] sm:$0xff] }
 0x3c1   : > { %v2627_v40 = vadd.f32 %v7059_v50, %v2394_v39  ;;  %v3659_v39 = vadd.f32 %v3658_v0, %v3569_v55  ;;  %v3850_v55 = vadd.f32 1.0, %v6230_v60 }
 0x3c2   : > { %3973 = vrot.lane.b32.xlu2 %v6448_v21, %s4786_s9  ;;  %v2396_v54 = vadd.f32 %v7060_v19, %v2307_v10  ;;  %v3881_v53 = vmul.f32 %v3849_v25, %v534_v24  ;;  %v7070_v19 = vld [vmem:[#allocation62_spill] sm:$0xff]  ;;  %v7075_v24 = vld [vmem:[#allocation157_spill] sm:$0xff] }
 0x3c3   : > { %v2799_v34 = vpop.f32.mrf.mxu2  ;;  %v3748_v10 = vadd.f32 %v3747_v22, %v3659_v39  ;;  %v2315_v25 = vadd.f32 %v7075_v24, %v7074_v57  ;;  %v7084_v24 = vld [vmem:[#allocation80_spill] sm:$0xff] }
 0x3c4   : > { %v2800_v26 = vadd.f32 %v2799_v34, %v2711_v4  ;;  %v3946_v32 = vpop.permute.xlu1 %3945  ;;  %v2716_v4 = vadd.f32 %v7061_v8, %v2627_v40  ;;  %v2629_v52 = vadd.f32 %v7064_v62, %v2396_v54  ;;  %v7071_v54 = vld [vmem:[#allocation159_spill] sm:$0xff] }
 0x3c5   : > { %v4038_v28 = vadd.f32 %v3946_v32, %v3878_v17  ;;  %v3750_v61 = vpop.f32.mrf.mxu1  ;;  %v3883_v17 = vmul.f32 %v3851_v20, %v536_v36  ;;  %v3663_v12 = vpop.f32.mrf.mxu0  ;;  %v7069_v20 = vld [vmem:[#allocation156_spill] sm:$0xff]  ;;  %v535_v8 = vmul.f32 %v6358_v23, %v7071_v54 }
 0x3c6   : > { %v3793_v47 = vadd.f32 %v3741_v51, %v2800_v26  ;;  %v3746_v51 = vadd.f32 %v3745_v29, %v3657_v58  ;;  %v3574_v18 = vpop.f32.mrf.mxu3  ;;  %v2312_v36 = vadd.f32 %v7069_v20, %v7068_v15 }
 0x3c7   : > { %4070 = vst.msk [vmem:[%s6385_s12 + $0x18] sm:$0xff] %vm305_vm3, %v4038_v28  ;;  %v7062_v28 = vld [vmem:[#allocation65_spill] sm:$0xff] }
 0x3c8   : > { %v6463_v2 = vadd.f32 %v6024_v27, %v3793_v47  ;;  %v2310_v63 = vadd.f32 %v7063_v11, %v7062_v28  ;;  %v3882_v11 = vmul.f32 %v3850_v55, %v535_v8  ;;  %v3852_v8 = vadd.f32 1.0, %v6268_v3 }
 0x3ca   : > { %3975 = vrot.lane.b32.xlu0 %v6463_v2, %s4786_s9 }
 0x3cb   : > { %v2801_v6 = vpop.f32.mrf.mxu2 }
 0x3cc   : > { %v2802_v14 = vadd.f32 %v2801_v6, %v2713_v33  ;;  %v2399_v33 = vadd.f32 %v7066_v45, %v2310_v63  ;;  %v7067_v6 = vld [vmem:[#allocation122_spill] sm:$0xff] }
 0x3cd   : > { %v7076_v45 = vld [vmem:[#allocation66_spill] sm:$0xff] }
 0x3ce   : > { %v3794_v56 = vadd.f32 %v3743_v5, %v2802_v14  ;;  %v2718_v5 = vadd.f32 %v7067_v6, %v2629_v52  ;;  %v3752_v14 = vpop.f32.mrf.mxu1  ;;  %v2632_v0 = vadd.f32 %v7070_v19, %v2399_v33  ;;  %v3577_v22 = vpop.f32.mrf.mxu3  ;;  %v539_v33 = vmul.f32 %v6358_v23, %v5908_v38  ;;  %v7080_v19 = vld [vmem:[#allocation160_spill] sm:$0xff] }
 0x3d0   : > { %v6479_v7 = vadd.f32 %v6024_v27, %v3794_v56 }
 0x3d2   : > { %3977 = vrot.lane.b32.xlu1 %v6479_v7, %s4786_s9 }
 0x3d3   : > { %v2804_v34 = vpop.f32.mrf.mxu2 }
 0x3d4   : > { %v2805_v30 = vadd.f32 %v2804_v34, %v2716_v4  ;;  %v3956_v26 = vpop.permute.xlu2 %3955  ;;  %v3666_v4 = vpop.f32.mrf.mxu0 }
 0x3d5   : > { %v4043_v32 = vadd.f32 %v3956_v26, %v3883_v17  ;;  %v3662_v17 = vadd.f32 %v3661_v16, %v3572_v1  ;;  %v7073_v26 = vld [vmem:[#allocation124_spill] sm:$0xff]  ;;  %v3854_v1 = vadd.f32 1.0, %v6308_v42 }
 0x3d6   : > { %v3795_v47 = vadd.f32 %v3746_v51, %v2805_v30  ;;  %v7072_v51 = vld [vmem:[#allocation75_spill] sm:$0xff]  ;;  %v3755_v62 = vpop.f32.mrf.mxu1 }
 0x3d7   : > { %4075 = vst.msk [vmem:[%s6385_s12 + $0x40] sm:$0xff] %vm305_vm3, %v4043_v32  ;;  %v2401_v30 = vadd.f32 %v7072_v51, %v2312_v36  ;;  %v2721_v32 = vadd.f32 %v7073_v26, %v2632_v0  ;;  %v3751_v60 = vadd.f32 %v3750_v61, %v3662_v17  ;;  %v3664_v61 = vadd.f32 %v3663_v12, %v3574_v18  ;;  %v7081_v18 = vld [vmem:[#allocation70_spill] sm:$0xff] }
 0x3d8   : > { %v6494_v29 = vadd.f32 %v6024_v27, %v3795_v47  ;;  %v3886_v15 = vmul.f32 %v3854_v1, %v539_v33  ;;  %v537_v17 = vmul.f32 %v6358_v23, %v5892_v48  ;;  %v538_v1 = vmul.f32 %v6358_v23, %v5901_v35 }
 0x3d9   : > { %v2634_v16 = vadd.f32 %v7076_v45, %v2401_v30  ;;  %v3753_v42 = vadd.f32 %v3752_v14, %v3664_v61  ;;  %v3667_v14 = vadd.f32 %v3666_v4, %v3577_v22  ;;  %v7082_v30 = vld [vmem:[#allocation83_spill] sm:$0xff]  ;;  %v7086_v4 = vld [vmem:[#allocation74_spill] sm:$0xff] }
 0x3da   : > { %3979 = vrot.lane.b32.xlu2 %v6494_v29, %s4786_s9 }
 0x3db   : > { %v2806_v13 = vpop.f32.mrf.mxu2 }
 0x3dc   : > { %v2807_v56 = vadd.f32 %v2806_v13, %v2718_v5  ;;  %v3952_v50 = vpop.permute.xlu0 %3951  ;;  %v3668_v5 = vpop.f32.mrf.mxu0  ;;  %v7077_v13 = vld [vmem:[#allocation79_spill] sm:$0xff] }
 0x3dd   : > { %v4041_v40 = vadd.f32 %v3952_v50, %v3881_v53  ;;  %v2404_v53 = vadd.f32 %v7077_v13, %v2315_v25  ;;  %v3579_v50 = vpop.f32.mrf.mxu3  ;;  %v7085_v25 = vld [vmem:[#allocation161_spill] sm:$0xff]  ;;  %v7087_v13 = vld [vmem:[#allocation87_spill] sm:$0xff] }
 0x3de   : > { %v3796_v58 = vadd.f32 %v3748_v10, %v2807_v56  ;;  %v7078_v10 = vld [vmem:[#allocation126_spill] sm:$0xff]  ;;  %v3757_v54 = vpop.f32.mrf.mxu1  ;;  %v3669_v61 = vadd.f32 %v3668_v5, %v3579_v50 }
 0x3df   : > { %4073 = vst.msk [vmem:[%s6385_s12 + $0x30] sm:$0xff] %vm305_vm3, %v4041_v40  ;;  %v2723_v56 = vadd.f32 %v7078_v10, %v2634_v16  ;;  %v2637_v55 = vadd.f32 %v7081_v18, %v2404_v53  ;;  %v3853_v16 = vadd.f32 1.0, %v6290_v31  ;;  %v7088_v10 = vld [vmem:[#allocation131_spill] sm:$0xff]  ;;  %v3857_v18 = vadd.f32 1.0, %v6369_v44 }
 0x3e0   : > { %v6509_v34 = vadd.f32 %v6024_v27, %v3796_v58  ;;  %v7079_v58 = vld [vmem:[#allocation76_spill] sm:$0xff] }
 0x3e1   : > { %v2317_v0 = vadd.f32 %v7080_v19, %v7079_v58  ;;  %v7090_v58 = vld [vmem:[#allocation162_spill] sm:$0xff] }
 0x3e2   : > { %3981 = vrot.lane.b32.xlu0 %v6509_v34, %s4786_s9 }
 0x3e3   : > { %v2809_v28 = vpop.f32.mrf.mxu2  ;;  %v2406_v26 = vadd.f32 %v7082_v30, %v2317_v0  ;;  %v7093_v30 = vld [vmem:[#allocation134_spill] sm:$0xff] }
 0x3e4   : > { %v2810_v63 = vadd.f32 %v2809_v28, %v2721_v32  ;;  %v3954_v47 = vpop.permute.xlu1 %3953  ;;  %v7083_v32 = vld [vmem:[#allocation129_spill] sm:$0xff] }
 0x3e5   : > { %v4042_v52 = vadd.f32 %v3954_v47, %v3882_v11  ;;  %v2726_v28 = vadd.f32 %v7083_v32, %v2637_v55  ;;  %v3756_v47 = vadd.f32 %v3755_v62, %v3667_v14  ;;  %v3582_v57 = vpop.f32.mrf.mxu3  ;;  %v2639_v22 = vadd.f32 %v7086_v4, %v2406_v26  ;;  %v6586_v4 = vld [vmem:[%s6737_s5] ss:$0 sm:$0xff] }
 0x3e6   : > { %v3797_v39 = vadd.f32 %v3751_v60, %v2810_v63  ;;  %v3884_v60 = vmul.f32 %v3852_v8, %v537_v17  ;;  %v3671_v63 = vpop.f32.mrf.mxu0  ;;  %v3760_v62 = vpop.f32.mrf.mxu1  ;;  %v542_v55 = vmul.f32 %v6358_v23, %v5941_v9  ;;  %v7092_v17 = vld [vmem:[#allocation89_spill] sm:$0xff]  ;;  %v7094_v9 = vld [vmem:[#allocation88_spill] sm:$0xff] }
 0x3e7   : > { %4074 = vst.msk [vmem:[%s6385_s12 + $0x38] sm:$0xff] %vm305_vm3, %v4042_v52  ;;  %v3672_v8 = vadd.f32 %v3671_v63, %v3582_v57  ;;  %v3855_v57 = vadd.f32 1.0, %v6326_v37  ;;  %v7099_v37 = vld [vmem:[#allocation141_spill] sm:$0xff] }
 0x3e8   : > { %v6524_v6 = vadd.f32 %v6024_v27, %v3797_v39  ;;  %v2320_v39 = vadd.f32 %v7085_v25, %v7084_v24  ;;  %v7096_v24 = vld [vmem:[#allocation81_spill] sm:$0xff]  ;;  %v7097_v25 = vld [vmem:[#allocation163_spill] sm:$0xff] }
 0x3ea   : > { %3983 = vrot.lane.b32.xlu1 %v6524_v6, %s4786_s9  ;;  %v2409_v53 = vadd.f32 %v7087_v13, %v2320_v39  ;;  %v540_v39 = vmul.f32 %v6358_v23, %v7097_v25  ;;  %v7108_v25 = vld [vmem:[#allocation101_spill] sm:$0xff] }
 0x3eb   : > { %v2811_v40 = vpop.f32.mrf.mxu2 }
 0x3ec   : > { %v2812_v20 = vadd.f32 %v2811_v40, %v2723_v56  ;;  %v3962_v36 = vpop.permute.xlu2 %3961  ;;  %v2728_v56 = vadd.f32 %v7088_v10, %v2639_v22  ;;  %v3887_v10 = vmul.f32 %v3855_v57, %v540_v39 }
 0x3ed   : > { %v4046_v38 = vadd.f32 %v3962_v36, %v3886_v15  ;;  %v3885_v15 = vmul.f32 %v3853_v16, %v538_v1  ;;  %v3584_v50 = vpop.f32.mrf.mxu3 }
 0x3ee   : > { %v3798_v12 = vadd.f32 %v3753_v42, %v2812_v20  ;;  %v3758_v42 = vadd.f32 %v3757_v54, %v3669_v61  ;;  %v3673_v35 = vpop.f32.mrf.mxu0  ;;  %v3762_v32 = vpop.f32.mrf.mxu1 }
 0x3ef   : > { %4078 = vst.msk [vmem:[%s6385_s12 + $0x58] sm:$0xff] %vm305_vm3, %v4046_v38  ;;  %v7089_v38 = vld [vmem:[#allocation84_spill] sm:$0xff]  ;;  %v3674_v1 = vadd.f32 %v3673_v35, %v3584_v50 }
 0x3f0   : > { %v6539_v51 = vadd.f32 %v6024_v27, %v3798_v12  ;;  %v2322_v19 = vadd.f32 %v7090_v58, %v7089_v38  ;;  %v7091_v12 = vld [vmem:[#allocation78_spill] sm:$0xff]  ;;  %v7101_v58 = vld [vmem:[#allocation85_spill] sm:$0xff] }
 0x3f1   : > { %v2642_v5 = vadd.f32 %v7091_v12, %v2409_v53 }
 0x3f2   : > { %3985 = vrot.lane.b32.xlu2 %v6539_v51, %s4786_s9  ;;  %v2411_v14 = vadd.f32 %v7092_v17, %v2322_v19  ;;  %v3856_v19 = vadd.f32 1.0, %v6347_v59 }
 0x3f3   : > { %v2814_v11 = vpop.f32.mrf.mxu2  ;;  %v2731_v26 = vadd.f32 %v7093_v30, %v2642_v5 }
 0x3f4   : > { %v2815_v3 = vadd.f32 %v2814_v11, %v2726_v28  ;;  %v3958_v52 = vpop.permute.xlu0 %3957  ;;  %v3889_v11 = vmul.f32 %v3857_v18, %v542_v55  ;;  %v2644_v63 = vadd.f32 %v7096_v24, %v2411_v14  ;;  %v7103_v55 = vld [vmem:[#allocation97_spill] sm:$0xff] }
 0x3f5   : > { %v4044_v48 = vadd.f32 %v3958_v52, %v3884_v60  ;;  %v3761_v60 = vadd.f32 %v3760_v62, %v3672_v8  ;;  %v7095_v52 = vld [vmem:[#allocation165_spill] sm:$0xff]  ;;  %v3587_v16 = vpop.f32.mrf.mxu3 }
 0x3f6   : > { %v3799_v45 = vadd.f32 %v3756_v47, %v2815_v3  ;;  %v7098_v62 = vld [vmem:[#allocation93_spill] sm:$0xff]  ;;  %v2733_v13 = vadd.f32 %v7099_v37, %v2644_v63 }
 0x3f7   : > { %4076 = vst.msk [vmem:[%s6385_s12 + $0x48] sm:$0xff] %vm305_vm3, %v4044_v48  ;;  %v2325_v48 = vadd.f32 %v7095_v52, %v7094_v9 }
 0x3f8   : > { %v6554_v33 = vadd.f32 %v6024_v27, %v3799_v45  ;;  %v3676_v45 = vpop.f32.mrf.mxu0 }
 0x3f9   : > { %v2414_v61 = vadd.f32 %v7098_v62, %v2325_v48  ;;  %v3677_v18 = vadd.f32 %v3676_v45, %v3587_v16  ;;  %v3860_v48 = vadd.f32 1.0, %v6448_v21 }
 0x3fa   : > { %3987 = vrot.lane.b32.xlu0 %v6554_v33, %s4786_s9 }
 0x3fb   : > { %v2816_v40 = vpop.f32.mrf.mxu2  ;;  %v2647_v35 = vadd.f32 %v7101_v58, %v2414_v61  ;;  %v7113_v58 = vld [vmem:[#allocation166_spill] sm:$0xff] }
 0x3fc   : > { %v2817_v31 = vadd.f32 %v2816_v40, %v2728_v56  ;;  %v3960_v20 = vpop.permute.xlu1 %3959  ;;  %v3763_v56 = vadd.f32 %v3762_v32, %v3674_v1 }
 0x3fd   : > { %v4045_v36 = vadd.f32 %v3960_v20, %v3885_v15  ;;  %v7100_v20 = vld [vmem:[#allocation92_spill] sm:$0xff]  ;;  %v3589_v14 = vpop.f32.mrf.mxu3 }
 0x3fe   : > { %v3800_v0 = vadd.f32 %v3758_v42, %v2817_v31  ;;  %v3765_v42 = vpop.f32.mrf.mxu1 }
 0x3ff   : > { %4077 = vst.msk [vmem:[%s6385_s12 + $0x50] sm:$0xff] %vm305_vm3, %v4045_v36  ;;  %v2327_v36 = vadd.f32 %v5953_v41, %v7100_v20  ;;  %v7104_v41 = vld [vmem:[#allocation148_spill] sm:$0xff]  ;;  %v3766_v59 = vadd.f32 %v3765_v42, %v3677_v18 }
 0x400   : > { %v6569_v54 = vadd.f32 %v6024_v27, %v3800_v0  ;;  %v7102_v0 = vld [vmem:[#allocation164_spill] sm:$0xff]  ;;  %v3678_v50 = vpop.f32.mrf.mxu0  ;;  %v2736_v17 = vadd.f32 %v7104_v41, %v2647_v35  ;;  %v543_v35 = vmul.f32 %v6358_v23, %v7113_v58 }
 0x401   : > { %v541_v12 = vmul.f32 %v6358_v23, %v7102_v0  ;;  %v2416_v8 = vadd.f32 %v7103_v55, %v2327_v36  ;;  %v3679_v57 = vadd.f32 %v3678_v50, %v3589_v14  ;;  %v7114_v0 = vld [vmem:[#allocation103_spill] sm:$0xff]  ;;  %v7115_v18 = vld [vmem:[#allocation152_spill] sm:$0xff] }
 0x402   : > { %3989 = vrot.lane.b32.xlu1 %v6569_v54, %s4786_s9 }
 0x403   : > { %v2819_v28 = vpop.f32.mrf.mxu2 }
 0x404   : > { %v2820_v44 = vadd.f32 %v2819_v28, %v2731_v26  ;;  %v3968_v47 = vpop.permute.xlu2 %3967  ;;  %v3888_v26 = vmul.f32 %v3856_v19, %v541_v12 }
 0x405   : > { %v4049_v3 = vadd.f32 %v3968_v47, %v3889_v11 }
 0x406   : > { %v3801_v27 = vadd.f32 %v3761_v60, %v2820_v44  ;;  %v7105_v60 = vld [vmem:[#allocation95_spill] sm:$0xff]  ;;  %v3767_v52 = vpop.f32.mrf.mxu1  ;;  %v3592_v1 = vpop.f32.mrf.mxu3 }
 0x407   : > { %4081 = vst.msk [vmem:[%s6385_s12 + $0x70] sm:$0xff] %vm305_vm3, %v4049_v3  ;;  %v2330_v44 = vadd.f32 %v5972_v46, %v7105_v60  ;;  %v7106_v3 = vld [vmem:[#allocation90_spill] sm:$0xff]  ;;  %v7109_v46 = vld [vmem:[#allocation151_spill] sm:$0xff]  ;;  %v3768_v21 = vadd.f32 %v3767_v52, %v3679_v57 }
 0x408   : > { %v6589_v22 = vadd.f32 %v6586_v4, %v3801_v27  ;;  %v2649_v9 = vadd.f32 %v7106_v3, %v2416_v8  ;;  %v7107_v27 = vld [vmem:[#allocation168_spill] sm:$0xff]  ;;  %v3681_v45 = vpop.f32.mrf.mxu0  ;;  %v7117_v60 = vld [vmem:[#allocation167_spill] sm:$0xff]  ;;  %v7118_v52 = vld [vmem:[#allocation154_spill] sm:$0xff] }
 0x409   : > { %v545_v24 = vmul.f32 %v6358_v23, %v7107_v27  ;;  %v2419_v39 = vadd.f32 %v7108_v25, %v2330_v44  ;;  %v544_v44 = vmul.f32 %v6358_v23, %v7117_v60 }
 0x40a   : > { %3991 = vrot.lane.b32.xlu2 %v6589_v22, %s4786_s9  ;;  %v2738_v16 = vadd.f32 %v7109_v46, %v2649_v9  ;;  %v3863_v46 = vadd.f32 1.0, %v6494_v29 }
 0x40b   : > { %v2821_v53 = vpop.f32.mrf.mxu2  ;;  %v3892_v61 = vmul.f32 %v3860_v48, %v545_v24 }
 0x40c   : > { %v2822_v40 = vadd.f32 %v2821_v53, %v2733_v13  ;;  %v3964_v15 = vpop.permute.xlu0 %3963 }
 0x40d   : > { %v4047_v31 = vadd.f32 %v3964_v15, %v3887_v10  ;;  %v7110_v10 = vld [vmem:[#allocation98_spill] sm:$0xff]  ;;  %v3682_v15 = vadd.f32 %v3681_v45, %v3592_v1 }
 0x40e   : > { %v3802_v38 = vadd.f32 %v3763_v56, %v2822_v40  ;;  %v7111_v56 = vld [vmem:[#allocation171_spill] sm:$0xff]  ;;  %v3770_v36 = vpop.f32.mrf.mxu1 }
 0x40f   : > { %4079 = vst.msk [vmem:[%s6385_s12 + $0x60] sm:$0xff] %vm305_vm3, %v4047_v31  ;;  %v2332_v40 = vadd.f32 %v7111_v56, %v7110_v10  ;;  %v7112_v31 = vld [vmem:[#allocation94_spill] sm:$0xff]  ;;  %v3771_v50 = vadd.f32 %v3770_v36, %v3682_v15 }
 0x410   : > { %v6604_v5 = vadd.f32 %v6586_v4, %v3802_v38  ;;  %v2652_v20 = vadd.f32 %v7112_v31, %v2419_v39  ;;  %v3858_v38 = vadd.f32 1.0, %v6403_v43  ;;  %v3594_v43 = vpop.f32.mrf.mxu3  ;;  %v7121_v15 = vld [vmem:[#allocation170_spill] sm:$0xff] }
 0x411   : > { %v2421_v12 = vadd.f32 %v7114_v0, %v2332_v40 }
 0x412   : > { %3993 = vrot.lane.b32.xlu0 %v6604_v5, %s4786_s9  ;;  %v2741_v55 = vadd.f32 %v7115_v18, %v2652_v20  ;;  %v3890_v41 = vmul.f32 %v3858_v38, %v543_v35  ;;  %v7122_v38 = vld [vmem:[#allocation175_spill] sm:$0xff] }
 0x413   : > { %v2824_v30 = vpop.f32.mrf.mxu2  ;;  %v551_v58 = vmul.f32 %v6358_v23, %v7122_v38 }
 0x414   : > { %v2825_v32 = vadd.f32 %v2824_v30, %v2736_v17  ;;  %v3966_v28 = vpop.permute.xlu1 %3965  ;;  %v3683_v30 = vpop.f32.mrf.mxu0 }
 0x415   : > { %v4048_v11 = vadd.f32 %v3966_v28, %v3888_v26 }
 0x416   : > { %v3803_v47 = vadd.f32 %v3766_v59, %v2825_v32  ;;  %v7116_v32 = vld [vmem:[#allocation99_spill] sm:$0xff]  ;;  %v3772_v9 = vpop.f32.mrf.mxu1 }
 0x417   : > { %4080 = vst.msk [vmem:[%s6385_s12 + $0x68] sm:$0xff] %vm305_vm3, %v4048_v11  ;;  %v2654_v28 = vadd.f32 %v7116_v32, %v2421_v12  ;;  %v3859_v11 = vadd.f32 1.0, %v6428_v49 }
 0x418   : > { %v6619_v63 = vadd.f32 %v6586_v4, %v3803_v47  ;;  %v3684_v47 = vadd.f32 %v3683_v30, %v3594_v43 }
 0x419   : > { %v2743_v48 = vadd.f32 %v7118_v52, %v2654_v28  ;;  %v3891_v24 = vmul.f32 %v3859_v11, %v544_v44  ;;  %v7126_v44 = vld [vmem:[#allocation105_spill] sm:$0xff] }
 0x41a   : > { %3995 = vrot.lane.b32.xlu1 %v6619_v63, %s4786_s9  ;;  %v3773_v57 = vadd.f32 %v3772_v9, %v3684_v47  ;;  %v552_v47 = vmul.f32 %v6358_v23, %v7126_v44 }
 0x41b   : > { %v2826_v62 = vpop.f32.mrf.mxu2 }
 0x41c   : > { %v2827_v37 = vadd.f32 %v2826_v62, %v2738_v16  ;;  %v3974_v13 = vpop.permute.xlu2 %3973  ;;  %v7119_v16 = vld [vmem:[#allocation172_spill] sm:$0xff] }
 0x41d   : > { %v4052_v53 = vadd.f32 %v3974_v13, %v3892_v61  ;;  %v548_v1 = vmul.f32 %v6358_v23, %v7119_v16  ;;  %v3861_v13 = vadd.f32 1.0, %v6463_v2  ;;  %v3866_v2 = vadd.f32 1.0, %v6539_v51 }
 0x41e   : > { %v3804_v42 = vadd.f32 %v3768_v21, %v2827_v37  ;;  %v3865_v51 = vadd.f32 1.0, %v6524_v6  ;;  %v3867_v6 = vadd.f32 1.0, %v6554_v33 }
 0x41f   : > { %4084 = vst.msk [vmem:[%s6385_s12 + $0x88] sm:$0xff] %vm305_vm3, %v4052_v53  ;;  %v3895_v61 = vmul.f32 %v3863_v46, %v548_v1  ;;  %v7120_v53 = vld [vmem:[#allocation169_spill] sm:$0xff]  ;;  %v3898_v35 = vmul.f32 %v3866_v2, %v551_v58  ;;  %v7132_v2 = vld [vmem:[#allocation8_spill] sm:$0xff] }
 0x420   : > { %v6634_v19 = vadd.f32 %v6586_v4, %v3804_v42  ;;  %v546_v29 = vmul.f32 %v6358_v23, %v7120_v53  ;;  %v547_v42 = vmul.f32 %v6358_v23, %v7121_v15  ;;  %v3899_v9 = vmul.f32 %v3867_v6, %v552_v47  ;;  %v7131_v15 = vld [vmem:[#allocation136_spill] sm:$0xff] }
 0x421   : > { %v559_v38 = vmul.f32 %v6358_v23, %v7132_v2 }
 0x422   : > { %3997 = vrot.lane.b32.xlu2 %v6634_v19, %s4786_s9  ;;  %v3893_v10 = vmul.f32 %v3861_v13, %v546_v29  ;;  %v3872_v33 = vadd.f32 1.0, %v6634_v19  ;;  %v3871_v19 = vadd.f32 1.0, %v6619_v63  ;;  %v7130_v29 = vld [vmem:[#allocation3_spill] sm:$0xff] }
 0x423   : > { %v2829_v8 = vpop.f32.mrf.mxu2 }
 0x424   : > { %v2830_v17 = vadd.f32 %v2829_v8, %v2741_v55  ;;  %v3970_v14 = vpop.permute.xlu0 %3969 }
 0x425   : > { %v4050_v26 = vadd.f32 %v3970_v14, %v3890_v41 }
 0x426   : > { %v3805_v59 = vadd.f32 %v3771_v50, %v2830_v17  ;;  %v7123_v50 = vld [vmem:[#allocation173_spill] sm:$0xff]  ;;  %v7124_v17 = vld [vmem:[#allocation174_spill] sm:$0xff] }
 0x427   : > { %4082 = vst.msk [vmem:[%s6385_s12 + $0x78] sm:$0xff] %vm305_vm3, %v4050_v26  ;;  %v549_v18 = vmul.f32 %v6358_v23, %v7123_v50  ;;  %v550_v14 = vmul.f32 %v6358_v23, %v7124_v17 }
 0x428   : > { %v6647_v3 = vadd.f32 %v6586_v4, %v3805_v59  ;;  %v7125_v59 = vld [vmem:[#allocation6_spill] sm:$0xff] }
 0x429   : > { %v3897_v43 = vmul.f32 %v3865_v51, %v550_v14  ;;  %v554_v32 = vmul.f32 %v6358_v23, %v7125_v59 }
 0x42a   : > { %3999 = vrot.lane.b32.xlu0 %v6647_v3, %s4786_s9 }
 0x42b   : > { %v2831_v27 = vpop.f32.mrf.mxu2 }
 0x42c   : > { %v2832_v25 = vadd.f32 %v2831_v27, %v2743_v48  ;;  %v3972_v39 = vpop.permute.xlu1 %3971  ;;  %v7127_v27 = vld [vmem:[#allocation135_spill] sm:$0xff] }
 0x42d   : > { %v4051_v49 = vadd.f32 %v3972_v39, %v3891_v24  ;;  %v553_v24 = vmul.f32 %v6358_v23, %v7127_v27 }
 0x42e   : > { %v3806_v45 = vadd.f32 %v3773_v57, %v2832_v25 }
 0x42f   : > { %4083 = vst.msk [vmem:[%s6385_s12 + $0x80] sm:$0xff] %vm305_vm3, %v4051_v49  ;;  %v7128_v49 = vld [vmem:[#allocation133_spill] sm:$0xff] }
 0x430   : > { %v6658_v62 = vadd.f32 %v6586_v4, %v3806_v45  ;;  %v3862_v4 = vadd.f32 1.0, %v6479_v7  ;;  %v3864_v7 = vadd.f32 1.0, %v6509_v34  ;;  %v3869_v34 = vadd.f32 1.0, %v6589_v22 }
 0x431   : > { %v3868_v22 = vadd.f32 1.0, %v6569_v54  ;;  %v557_v45 = vmul.f32 %v6358_v23, %v7128_v49  ;;  %v3870_v54 = vadd.f32 1.0, %v6604_v5  ;;  %v3873_v5 = vadd.f32 1.0, %v6647_v3 }
 0x432   : > { %4001 = vrot.lane.b32.xlu1 %v6658_v62, %s4786_s9  ;;  %v3894_v31 = vmul.f32 %v3862_v4, %v547_v42  ;;  %v3896_v55 = vmul.f32 %v3864_v7, %v549_v18  ;;  %v3901_v28 = vmul.f32 %v3869_v34, %v554_v32  ;;  %v558_v42 = vmul.f32 %v6358_v23, %v7131_v15 }
 0x433   : > { %v3900_v57 = vmul.f32 %v3868_v22, %v553_v24  ;;  %v3904_v46 = vmul.f32 %v3872_v33, %v557_v45  ;;  %v3874_v63 = vadd.f32 1.0, %v6658_v62 }
 0x434   : > { %v3980_v21 = vpop.permute.xlu2 %3979 }
 0x435   : > { %v4055_v37 = vadd.f32 %v3980_v21, %v3895_v61  ;;  %v7129_v61 = vld [vmem:[#allocation106_spill] sm:$0xff]  ;;  %v3906_v58 = vmul.f32 %v3874_v63, %v559_v38 }
 0x436   : > { %v555_v21 = vmul.f32 %v6358_v23, %v7129_v61 }
 0x437   : > { %4087 = vst.msk [vmem:[%s6385_s12 + $0xa0] sm:$0xff] %vm305_vm3, %v4055_v37 }
 0x438   : > { %v3902_v37 = vmul.f32 %v3870_v54, %v555_v21 }
 0x43c   : > { %v3976_v56 = vpop.permute.xlu0 %3975 }
 0x43d   : > { %v4053_v40 = vadd.f32 %v3976_v56, %v3893_v10  ;;  %v556_v10 = vmul.f32 %v6358_v23, %v7130_v29 }
 0x43f   : > { %4085 = vst.msk [vmem:[%s6385_s12 + $0x90] sm:$0xff] %vm305_vm3, %v4053_v40  ;;  %v3903_v56 = vmul.f32 %v3871_v19, %v556_v10 }
 0x444   : > { %v3978_v20 = vpop.permute.xlu1 %3977 }
 0x445   : > { %v4054_v36 = vadd.f32 %v3978_v20, %v3894_v31  ;;  %v3905_v31 = vmul.f32 %v3873_v5, %v558_v42 }
 0x447   : > { %4086 = vst.msk [vmem:[%s6385_s12 + $0x98] sm:$0xff] %vm305_vm3, %v4054_v36 }
 0x44c   : > { %v3986_v0 = vpop.permute.xlu2 %3985 }
 0x44d   : > { %v4058_v12 = vadd.f32 %v3986_v0, %v3898_v35 }
 0x44f   : > { %4090 = vst.msk [vmem:[%s6385_s12 + $0xb8] sm:$0xff] %vm305_vm3, %v4058_v12 }
 0x454   : > { %v3982_v8 = vpop.permute.xlu0 %3981 }
 0x455   : > { %v4056_v41 = vadd.f32 %v3982_v8, %v3896_v55 }
 0x457   : > { %4088 = vst.msk [vmem:[%s6385_s12 + $0xa8] sm:$0xff] %vm305_vm3, %v4056_v41 }
 0x45c   : > { %v3984_v30 = vpop.permute.xlu1 %3983 }
 0x45d   : > { %v4057_v26 = vadd.f32 %v3984_v30, %v3897_v43 }
 0x45f   : > { %4089 = vst.msk [vmem:[%s6385_s12 + $0xb0] sm:$0xff] %vm305_vm3, %v4057_v26 }
 0x464   : > { %v3992_v11 = vpop.permute.xlu2 %3991 }
 0x465   : > { %v4061_v60 = vadd.f32 %v3992_v11, %v3901_v28 }
 0x467   : > { %4093 = vst.msk [vmem:[%s6385_s12 + $0xd0] sm:$0xff] %vm305_vm3, %v4061_v60 }
 0x46c   : > { %v3988_v52 = vpop.permute.xlu0 %3987 }
 0x46d   : > { %v4059_v48 = vadd.f32 %v3988_v52, %v3899_v9 }
 0x46f   : > { %4091 = vst.msk [vmem:[%s6385_s12 + $0xc0] sm:$0xff] %vm305_vm3, %v4059_v48 }
 0x474   : > { %v3990_v25 = vpop.permute.xlu1 %3989 }
 0x475   : > { %v4060_v39 = vadd.f32 %v3990_v25, %v3900_v57 }
 0x477   : > { %4092 = vst.msk [vmem:[%s6385_s12 + $0xc8] sm:$0xff] %vm305_vm3, %v4060_v39 }
 0x47c   : > { %v3998_v16 = vpop.permute.xlu2 %3997 }
 0x47d   : > { %v4064_v1 = vadd.f32 %v3998_v16, %v3904_v46 }
 0x47f   : > { %4096 = vst.msk [vmem:[%s6385_s12 + $0xe8] sm:$0xff] %vm305_vm3, %v4064_v1 }
 0x484   : > { %v3994_v13 = vpop.permute.xlu0 %3993 }
 0x485   : > { %v4062_v53 = vadd.f32 %v3994_v13, %v3902_v37 }
 0x487   : > { %4094 = vst.msk [vmem:[%s6385_s12 + $0xd8] sm:$0xff] %vm305_vm3, %v4062_v53 }
 0x48c   : > { %v3996_v40 = vpop.permute.xlu1 %3995 }
 0x48d   : > { %v4063_v4 = vadd.f32 %v3996_v40, %v3903_v56 }
 0x48f   : > { %4095 = vst.msk [vmem:[%s6385_s12 + $0xe0] sm:$0xff] %vm305_vm3, %v4063_v4 }
 0x49c   : > { %v4000_v20 = vpop.permute.xlu0 %3999 }
 0x49d   : > { %v4065_v36 = vadd.f32 %v4000_v20, %v3905_v31 }
 0x49f   : > { %4097 = vst.msk [vmem:[%s6385_s12 + $0xf0] sm:$0xff] %vm305_vm3, %v4065_v36 }
 0x4a4   : > { %v4002_v35 = vpop.permute.xlu1 %4001 }
 0x4a5   : > { %v4066_v0 = vadd.f32 %v4002_v35, %v3906_v58 }
 0x4a7   : > { %4098 = vst.msk [vmem:[%s6385_s12 + $0xf8] sm:$0xff] %vm305_vm3, %v4066_v0 }
 0x4a8 PF: > { %s16_s21 = sadd.s32 1, %s4780_s21  }
 0x4a9   : > { %p13_p4 = scmp.ge.s32.totalorder %s16_s21, 4  }
 0x4ab   :  { %15 = sbr.rel (!%p13_p4) target bundleno = 1 (0x1), region = 81 }

</bundles_post_ra>
